<compile_context>
chip_gen: v7x
topology: tpu7x:2x2x1
jax: 0.10.0
libtpu: 0.0.40
codegen_flags: <defaults>
</compile_context>

<pallas_src>
import functools
import numpy as np
import jax
import jax.numpy as jnp
from jax import lax
from jax.experimental import pallas as pl
from jax.experimental.pallas import tpu as pltpu

_BN_EPS = 1e-5
_VMEM_LIMIT = 64 * 1024 * 1024


def _pair(v):
    return (v, v) if isinstance(v, int) else tuple(v)


def _round_up(n, m):
    return ((n + m - 1) // m) * m


# ------------------------------ Pallas kernels --------------------------------
def _matmul_shift_relu_kernel(x_ref, w_ref, shift_ref, o_ref):
    """(tm,K) @ (K,Np) + shift, ReLU, bf16 store.  BN scale pre-folded into W."""
    acc = jnp.dot(x_ref[...], w_ref[...], preferred_element_type=jnp.float32)
    o_ref[...] = jnp.maximum(acc + shift_ref[...], 0.0).astype(o_ref.dtype)


def _conv_taps_kernel(x_ref, w_ref, shift_ref, o_ref, *, kh, kw, ho, wo):
    """Fused stride-1 KxK conv + BN + ReLU for one NHWC image (no HBM im2col).

    x_ref     : (1, Hp, Wp, Cx)   bf16  spatially padded input image
    w_ref     : (kh*kw, Cx, Np)   bf16  per-tap weights, BN scale folded in
    shift_ref : (1, Np)           f32   folded conv-bias + BN shift
    o_ref     : (1, ho, wo, Np)   bf16
    """
    cx = x_ref.shape[-1]
    npad = o_ref.shape[-1]
    acc = jnp.zeros((ho * wo, npad), jnp.float32)
    for i in range(kh):                       # static, fully unrolled
        for j in range(kw):
            patch = x_ref[:, i:i + ho, j:j + wo, :].reshape(ho * wo, cx)
            acc = acc + jnp.dot(patch, w_ref[i * kw + j],
                                preferred_element_type=jnp.float32)
    y = jnp.maximum(acc + shift_ref[...], 0.0)
    o_ref[...] = y.reshape(1, ho, wo, npad).astype(o_ref.dtype)


# ------------------------------ parameter prep --------------------------------
def _fold_bn(params):
    scale = params['gamma'] / jnp.sqrt(params['var'] + _BN_EPS)
    shift = (params['b'] - params['mean']) * scale + params['beta']
    return scale, shift


def _prep_weights(params, cx):
    """-> ((taps, Cx, Np) bf16 weights with BN scale folded, (1, Np) f32 shift, ...)."""
    w = params['w']                                        # (O, C, kh, kw)
    o_ch, c, kh, kw = w.shape
    if cx < c:
        raise ValueError(f"input has {cx} channels, conv expects >= {c}")
    scale, shift = _fold_bn(params)
    npad = _round_up(o_ch, 128)
    wt = jnp.transpose(w, (2, 3, 1, 0)).reshape(kh * kw, c, o_ch)
    wt = wt * scale[None, None, :]                         # fold BN scale into RHS
    wt = jnp.pad(wt, ((0, 0), (0, cx - c), (0, npad - o_ch)))
    shift = jnp.pad(shift, (0, npad - o_ch)).reshape(1, npad)
    return wt.astype(jnp.bfloat16), shift.astype(jnp.float32), kh, kw, o_ch, npad


# ------------------------------ forward paths ---------------------------------
def _conv_fused(x, wt, shift, kh, kw, ph, pw, ho, wo, npad):
    """k>1, stride-1 conv: grid over batch, taps accumulated in-kernel."""
    b, h, w_in, cx = x.shape
    hp, wp = h + 2 * ph, w_in + 2 * pw
    xp = jnp.pad(x, ((0, 0), (ph, ph), (pw, pw), (0, 0)))
    kernel = functools.partial(_conv_taps_kernel, kh=kh, kw=kw, ho=ho, wo=wo)
    flops = 2 * b * ho * wo * cx * kh * kw * npad
    bytes_accessed = xp.size * 2 + wt.size * 2 + shift.size * 4 + b * ho * wo * npad * 2
    return pl.pallas_call(
        kernel,
        out_shape=jax.ShapeDtypeStruct((b, ho, wo, npad), jnp.bfloat16),
        grid=(b,),
        in_specs=[
            pl.BlockSpec((1, hp, wp, cx), lambda i: (i, 0, 0, 0)),
            pl.BlockSpec((kh * kw, cx, npad), lambda i: (0, 0, 0)),
            pl.BlockSpec((1, npad), lambda i: (0, 0)),
        ],
        out_specs=pl.BlockSpec((1, ho, wo, npad), lambda i: (i, 0, 0, 0)),
        compiler_params=pltpu.CompilerParams(
            dimension_semantics=("parallel",),
            vmem_limit_bytes=_VMEM_LIMIT),
        cost_estimate=pl.CostEstimate(flops=flops, transcendentals=0,
                                      bytes_accessed=bytes_accessed),
    )(xp, wt, shift)


def _conv_patches(x, wt, shift, kh, kw, sh, sw, ph, pw, ho, wo, npad):
    """1x1 convs (any stride) and the rare strided k>1 fallback."""
    b, h, w_in, cx = x.shape
    xp = jnp.pad(x, ((0, 0), (ph, ph), (pw, pw), (0, 0)))
    if (kh, kw) == (1, 1):
        patches = xp[:, :(ho - 1) * sh + 1:sh, :(wo - 1) * sw + 1:sw, :]
        patches = patches.reshape(b * ho * wo, cx)
        rhs = wt.reshape(cx, npad)
    else:
        # TODO(synk): strided k>1 convs still build an XLA-side im2col (kh*kw
        # expansion); reSAnet ConvBlocks are 1x1 or stride-1 so this path is cold.
        cols = [xp[:, i:i + (ho - 1) * sh + 1:sh, j:j + (wo - 1) * sw + 1:sw, :]
                for i in range(kh) for j in range(kw)]
        patches = jnp.concatenate(cols, axis=-1).reshape(b * ho * wo, kh * kw * cx)
        rhs = wt.reshape(kh * kw * cx, npad)
    m, k = patches.shape
    tm = min(512, _round_up(m, 8))
    mp = _round_up(m, tm)
    lhs = jnp.pad(patches, ((0, mp - m), (0, 0)))
    flops = 2 * mp * k * npad
    bytes_accessed = lhs.size * 2 + rhs.size * 2 + shift.size * 4 + mp * npad * 2
    out = pl.pallas_call(
        _matmul_shift_relu_kernel,
        out_shape=jax.ShapeDtypeStruct((mp, npad), jnp.bfloat16),
        grid=(mp // tm,),
        in_specs=[
            pl.BlockSpec((tm, k), lambda i: (i, 0)),
            pl.BlockSpec((k, npad), lambda i: (0, 0)),
            pl.BlockSpec((1, npad), lambda i: (0, 0)),
        ],
        out_specs=pl.BlockSpec((tm, npad), lambda i: (i, 0)),
        compiler_params=pltpu.CompilerParams(
            dimension_semantics=("parallel",),
            vmem_limit_bytes=_VMEM_LIMIT),
        cost_estimate=pl.CostEstimate(flops=flops, transcendentals=0,
                                      bytes_accessed=bytes_accessed),
    )(lhs, rhs, shift)
    return out[:m].reshape(b, ho, wo, npad)


def conv_block_nhwc(x, params, *, stride=1, padding=0):
    """relu(bn(conv(x))) on NHWC input.

    `x` may carry zero-valued extra trailing channels (>= the conv's in_c), so
    chained ConvBlocks stay on the 128-lane-padded bf16 layout with no slicing.
    Returns (B, Ho, Wo, round_up(out_c, 128)) bf16; padded channels are zero.
    """
    sh, sw = _pair(stride)
    ph, pw = _pair(padding)
    _, h, w_in, cx = x.shape
    wt, shift, kh, kw, _, npad = _prep_weights(params, cx)
    ho = (h + 2 * ph - kh) // sh + 1
    wo = (w_in + 2 * pw - kw) // sw + 1
    x = x.astype(jnp.bfloat16)
    if (kh, kw) != (1, 1) and (sh, sw) == (1, 1):
        return _conv_fused(x, wt, shift, kh, kw, ph, pw, ho, wo, npad)
    return _conv_patches(x, wt, shift, kh, kw, sh, sw, ph, pw, ho, wo, npad)


def conv_block_forward(x_nchw, params, *, stride=1, padding=0):
    """Drop-in PyTorch-layout ConvBlock forward: NCHW in -> NCHW f32 out."""
    out_c = params['w'].shape[0]
    x = jnp.transpose(x_nchw, (0, 2, 3, 1))
    y = conv_block_nhwc(x, params, stride=stride, padding=padding)
    return jnp.transpose(y[..., :out_c], (0, 3, 1, 2)).astype(jnp.float32)


# --------------------------- reference (plain JAX) ----------------------------
def conv_block_reference(x, params, *, stride=1, padding=0):
    sh, sw = _pair(stride)
    ph, pw = _pair(padding)
    out = lax.conv_general_dilated(
        x, params['w'], window_strides=(sh, sw),
        padding=((ph, ph), (pw, pw)),
        dimension_numbers=('NCHW', 'OIHW', 'NCHW'))
    b = params['b'].reshape(1, -1, 1, 1)
    g = params['gamma'].reshape(1, -1, 1, 1)
    bt = params['beta'].reshape(1, -1, 1, 1)
    mu = params['mean'].reshape(1, -1, 1, 1)
    var = params['var'].reshape(1, -1, 1, 1)
    out = (out + b - mu) / jnp.sqrt(var + _BN_EPS) * g + bt
    return jnp.maximum(out, 0.0)


# ------------------------------- parameters -----------------------------------
def init_conv_block_params(key, in_c, out_c, k):
    """Conv2d default-style init; BatchNorm2d at its __init__ state."""
    kh, kw = _pair(k)
    kw_, kb = jax.random.split(key)
    fan_in = in_c * kh * kw
    bound = 1.0 / np.sqrt(fan_in)
    return dict(
        w=jax.random.uniform(kw_, (out_c, in_c, kh, kw), jnp.float32, -bound, bound),
        b=jax.random.uniform(kb, (out_c,), jnp.float32, -bound, bound),
        gamma=jnp.ones((out_c,), jnp.float32),
        beta=jnp.zeros((out_c,), jnp.float32),
        mean=jnp.zeros((out_c,), jnp.float32),
        var=jnp.ones((out_c,), jnp.float32),
    )


# ---------------------------------- main ---------------------------------------
if __name__ == "__main__":
    key = jax.random.PRNGKey(0)
    kx, kp1, kp2 = jax.random.split(key, 3)

    B, Cin, H, W = 2, 4, 16, 16
    x_nchw = jax.random.normal(kx, (B, Cin, H, W), jnp.float32)
    params1 = init_conv_block_params(kp1, Cin, 32, 3)   # ConvBlock(4, 32, 3, s=1, p=1)
    params2 = init_conv_block_params(kp2, 32, 16, 1)    # ConvBlock(32, 16, 1, s=2, p=0)

    @jax.jit
    def chained(x, p1, p2):
        # NHWC end-to-end; block-1's 128-lane-padded bf16 output feeds block-2
        # directly (no slice / re-pad / transpose between the two ConvBlocks).
        xh = jnp.transpose(x, (0, 2, 3, 1))
        y1 = conv_block_nhwc(xh, p1, stride=1, padding=1)
        y2 = conv_block_nhwc(y1, p2, stride=2, padding=0)
        return y1, y2

    y1, y2 = chained(x_nchw, params1, params2)
    jax.block_until_ready(y2)

    y1_nchw = jnp.transpose(y1[..., :32], (0, 3, 1, 2)).astype(jnp.float32)
    y2_nchw = jnp.transpose(y2[..., :16], (0, 3, 1, 2)).astype(jnp.float32)
    assert y1_nchw.shape == (B, 32, H, W), y1_nchw.shape
    assert y2_nchw.shape == (B, 16, H // 2, W // 2), y2_nchw.shape

    # Block 1 (fused 3x3 stride-1 path) vs plain-JAX reference.
    ref1 = conv_block_reference(x_nchw, params1, stride=1, padding=1)
    err1 = float(jnp.max(jnp.abs(y1_nchw - ref1)))
    assert err1 < 1e-1, f"block-1 max abs err {err1}"

    # Block 2 (1x1 stride-2 path) vs reference applied to block-1's actual output.
    ref2 = conv_block_reference(y1_nchw, params2, stride=2, padding=0)
    err2 = float(jnp.max(jnp.abs(y2_nchw - ref2)))
    assert err2 < 1e-1, f"block-2 max abs err {err2}"

    # NCHW drop-in wrapper (module-equivalent API) on block 1.
    fwd1 = jax.jit(functools.partial(conv_block_forward, stride=1, padding=1))
    y1_mod = fwd1(x_nchw, params1)
    jax.block_until_ready(y1_mod)
    err3 = float(jnp.max(jnp.abs(y1_mod - ref1)))
    assert err3 < 1e-1, f"wrapper max abs err {err3}"

    print("KERNEL_OK")
</pallas_src>

<mosaic_0001>
module attributes {stable_mosaic.version = 11 : i64} {
  func.func @_conv_taps_kernel(%arg0: i32, %arg1: memref<1x18x18x4xbf16, #tpu.memory_space<vmem>>, %arg2: memref<9x4x128xbf16, #tpu.memory_space<vmem>>, %arg3: memref<1x128xf32, #tpu.memory_space<vmem>>, %arg4: memref<1x16x16x128xbf16, #tpu.memory_space<vmem>>) attributes {dimension_semantics = [#tpu.dimension_semantics<parallel>], iteration_bounds = array<i64: 2>, scalar_prefetch = 0 : i64, scratch_operands = 0 : i64, tpu.core_type = #tpu.core_type<tc>, window_params = [{transform_indices = @transform_0, window_bounds = array<i64: 1, 18, 18, 4>}, {pipeline_mode = #tpu.pipeline_mode<synchronous>, transform_indices = @transform_1, window_bounds = array<i64: 9, 4, 128>}, {pipeline_mode = #tpu.pipeline_mode<synchronous>, transform_indices = @transform_2, window_bounds = array<i64: 1, 128>}, {transform_indices = @transform_3, window_bounds = array<i64: 1, 16, 16, 128>}]} {
    %cst = arith.constant 0.000000e+00 : f32
    %0 = vector.broadcast %cst : f32 to vector<256x128xf32>
    %c0 = arith.constant 0 : index
    %c0_0 = arith.constant 0 : index
    %c0_1 = arith.constant 0 : index
    %c0_2 = arith.constant 0 : index
    %1 = vector.load %arg1[%c0, %c0_0, %c0_1, %c0_2] : memref<1x18x18x4xbf16, #tpu.memory_space<vmem>>, vector<1x16x16x4xbf16>
    %2 = vector.shape_cast %1 : vector<1x16x16x4xbf16> to vector<256x4xbf16>
    %c0_3 = arith.constant 0 : index
    %c0_4 = arith.constant 0 : index
    %c0_5 = arith.constant 0 : index
    %3 = vector.load %arg2[%c0_3, %c0_4, %c0_5] : memref<9x4x128xbf16, #tpu.memory_space<vmem>>, vector<1x4x128xbf16>
    %4 = vector.shape_cast %3 : vector<1x4x128xbf16> to vector<4x128xbf16>
    %cst_6 = arith.constant dense<0.000000e+00> : vector<256x128xf32>
    %5 = tpu.matmul %2, %4, %cst_6 {dimension_numbers = #tpu.dot_dimension_numbers<[1], [0], [0], [1], [0, 0, 1, 1], [], []>} : vector<256x4xbf16>, vector<4x128xbf16>, vector<256x128xf32> -> vector<256x128xf32>
    %6 = arith.addf %0, %5 : vector<256x128xf32>
    %c0_7 = arith.constant 0 : index
    %c0_8 = arith.constant 0 : index
    %c1 = arith.constant 1 : index
    %c0_9 = arith.constant 0 : index
    %7 = vector.load %arg1[%c0_7, %c0_8, %c1, %c0_9] : memref<1x18x18x4xbf16, #tpu.memory_space<vmem>>, vector<1x16x16x4xbf16>
    %8 = vector.shape_cast %7 : vector<1x16x16x4xbf16> to vector<256x4xbf16>
    %c1_10 = arith.constant 1 : index
    %c0_11 = arith.constant 0 : index
    %c0_12 = arith.constant 0 : index
    %9 = vector.load %arg2[%c1_10, %c0_11, %c0_12] : memref<9x4x128xbf16, #tpu.memory_space<vmem>>, vector<1x4x128xbf16>
    %10 = vector.shape_cast %9 : vector<1x4x128xbf16> to vector<4x128xbf16>
    %cst_13 = arith.constant dense<0.000000e+00> : vector<256x128xf32>
    %11 = tpu.matmul %8, %10, %cst_13 {dimension_numbers = #tpu.dot_dimension_numbers<[1], [0], [0], [1], [0, 0, 1, 1], [], []>} : vector<256x4xbf16>, vector<4x128xbf16>, vector<256x128xf32> -> vector<256x128xf32>
    %12 = arith.addf %6, %11 : vector<256x128xf32>
    %c0_14 = arith.constant 0 : index
    %c0_15 = arith.constant 0 : index
    %c2 = arith.constant 2 : index
    %c0_16 = arith.constant 0 : index
    %13 = vector.load %arg1[%c0_14, %c0_15, %c2, %c0_16] : memref<1x18x18x4xbf16, #tpu.memory_space<vmem>>, vector<1x16x16x4xbf16>
    %14 = vector.shape_cast %13 : vector<1x16x16x4xbf16> to vector<256x4xbf16>
    %c2_17 = arith.constant 2 : index
    %c0_18 = arith.constant 0 : index
    %c0_19 = arith.constant 0 : index
    %15 = vector.load %arg2[%c2_17, %c0_18, %c0_19] : memref<9x4x128xbf16, #tpu.memory_space<vmem>>, vector<1x4x128xbf16>
    %16 = vector.shape_cast %15 : vector<1x4x128xbf16> to vector<4x128xbf16>
    %cst_20 = arith.constant dense<0.000000e+00> : vector<256x128xf32>
    %17 = tpu.matmul %14, %16, %cst_20 {dimension_numbers = #tpu.dot_dimension_numbers<[1], [0], [0], [1], [0, 0, 1, 1], [], []>} : vector<256x4xbf16>, vector<4x128xbf16>, vector<256x128xf32> -> vector<256x128xf32>
    %18 = arith.addf %12, %17 : vector<256x128xf32>
    %c0_21 = arith.constant 0 : index
    %c1_22 = arith.constant 1 : index
    %c0_23 = arith.constant 0 : index
    %c0_24 = arith.constant 0 : index
    %19 = vector.load %arg1[%c0_21, %c1_22, %c0_23, %c0_24] : memref<1x18x18x4xbf16, #tpu.memory_space<vmem>>, vector<1x16x16x4xbf16>
    %20 = vector.shape_cast %19 : vector<1x16x16x4xbf16> to vector<256x4xbf16>
    %c3 = arith.constant 3 : index
    %c0_25 = arith.constant 0 : index
    %c0_26 = arith.constant 0 : index
    %21 = vector.load %arg2[%c3, %c0_25, %c0_26] : memref<9x4x128xbf16, #tpu.memory_space<vmem>>, vector<1x4x128xbf16>
    %22 = vector.shape_cast %21 : vector<1x4x128xbf16> to vector<4x128xbf16>
    %cst_27 = arith.constant dense<0.000000e+00> : vector<256x128xf32>
    %23 = tpu.matmul %20, %22, %cst_27 {dimension_numbers = #tpu.dot_dimension_numbers<[1], [0], [0], [1], [0, 0, 1, 1], [], []>} : vector<256x4xbf16>, vector<4x128xbf16>, vector<256x128xf32> -> vector<256x128xf32>
    %24 = arith.addf %18, %23 : vector<256x128xf32>
    %c0_28 = arith.constant 0 : index
    %c1_29 = arith.constant 1 : index
    %c1_30 = arith.constant 1 : index
    %c0_31 = arith.constant 0 : index
    %25 = vector.load %arg1[%c0_28, %c1_29, %c1_30, %c0_31] : memref<1x18x18x4xbf16, #tpu.memory_space<vmem>>, vector<1x16x16x4xbf16>
    %26 = vector.shape_cast %25 : vector<1x16x16x4xbf16> to vector<256x4xbf16>
    %c4 = arith.constant 4 : index
    %c0_32 = arith.constant 0 : index
    %c0_33 = arith.constant 0 : index
    %27 = vector.load %arg2[%c4, %c0_32, %c0_33] : memref<9x4x128xbf16, #tpu.memory_space<vmem>>, vector<1x4x128xbf16>
    %28 = vector.shape_cast %27 : vector<1x4x128xbf16> to vector<4x128xbf16>
    %cst_34 = arith.constant dense<0.000000e+00> : vector<256x128xf32>
    %29 = tpu.matmul %26, %28, %cst_34 {dimension_numbers = #tpu.dot_dimension_numbers<[1], [0], [0], [1], [0, 0, 1, 1], [], []>} : vector<256x4xbf16>, vector<4x128xbf16>, vector<256x128xf32> -> vector<256x128xf32>
    %30 = arith.addf %24, %29 : vector<256x128xf32>
    %c0_35 = arith.constant 0 : index
    %c1_36 = arith.constant 1 : index
    %c2_37 = arith.constant 2 : index
    %c0_38 = arith.constant 0 : index
    %31 = vector.load %arg1[%c0_35, %c1_36, %c2_37, %c0_38] : memref<1x18x18x4xbf16, #tpu.memory_space<vmem>>, vector<1x16x16x4xbf16>
    %32 = vector.shape_cast %31 : vector<1x16x16x4xbf16> to vector<256x4xbf16>
    %c5 = arith.constant 5 : index
    %c0_39 = arith.constant 0 : index
    %c0_40 = arith.constant 0 : index
    %33 = vector.load %arg2[%c5, %c0_39, %c0_40] : memref<9x4x128xbf16, #tpu.memory_space<vmem>>, vector<1x4x128xbf16>
    %34 = vector.shape_cast %33 : vector<1x4x128xbf16> to vector<4x128xbf16>
    %cst_41 = arith.constant dense<0.000000e+00> : vector<256x128xf32>
    %35 = tpu.matmul %32, %34, %cst_41 {dimension_numbers = #tpu.dot_dimension_numbers<[1], [0], [0], [1], [0, 0, 1, 1], [], []>} : vector<256x4xbf16>, vector<4x128xbf16>, vector<256x128xf32> -> vector<256x128xf32>
    %36 = arith.addf %30, %35 : vector<256x128xf32>
    %c0_42 = arith.constant 0 : index
    %c2_43 = arith.constant 2 : index
    %c0_44 = arith.constant 0 : index
    %c0_45 = arith.constant 0 : index
    %37 = vector.load %arg1[%c0_42, %c2_43, %c0_44, %c0_45] : memref<1x18x18x4xbf16, #tpu.memory_space<vmem>>, vector<1x16x16x4xbf16>
    %38 = vector.shape_cast %37 : vector<1x16x16x4xbf16> to vector<256x4xbf16>
    %c6 = arith.constant 6 : index
    %c0_46 = arith.constant 0 : index
    %c0_47 = arith.constant 0 : index
    %39 = vector.load %arg2[%c6, %c0_46, %c0_47] : memref<9x4x128xbf16, #tpu.memory_space<vmem>>, vector<1x4x128xbf16>
    %40 = vector.shape_cast %39 : vector<1x4x128xbf16> to vector<4x128xbf16>
    %cst_48 = arith.constant dense<0.000000e+00> : vector<256x128xf32>
    %41 = tpu.matmul %38, %40, %cst_48 {dimension_numbers = #tpu.dot_dimension_numbers<[1], [0], [0], [1], [0, 0, 1, 1], [], []>} : vector<256x4xbf16>, vector<4x128xbf16>, vector<256x128xf32> -> vector<256x128xf32>
    %42 = arith.addf %36, %41 : vector<256x128xf32>
    %c0_49 = arith.constant 0 : index
    %c2_50 = arith.constant 2 : index
    %c1_51 = arith.constant 1 : index
    %c0_52 = arith.constant 0 : index
    %43 = vector.load %arg1[%c0_49, %c2_50, %c1_51, %c0_52] : memref<1x18x18x4xbf16, #tpu.memory_space<vmem>>, vector<1x16x16x4xbf16>
    %44 = vector.shape_cast %43 : vector<1x16x16x4xbf16> to vector<256x4xbf16>
    %c7 = arith.constant 7 : index
    %c0_53 = arith.constant 0 : index
    %c0_54 = arith.constant 0 : index
    %45 = vector.load %arg2[%c7, %c0_53, %c0_54] : memref<9x4x128xbf16, #tpu.memory_space<vmem>>, vector<1x4x128xbf16>
    %46 = vector.shape_cast %45 : vector<1x4x128xbf16> to vector<4x128xbf16>
    %cst_55 = arith.constant dense<0.000000e+00> : vector<256x128xf32>
    %47 = tpu.matmul %44, %46, %cst_55 {dimension_numbers = #tpu.dot_dimension_numbers<[1], [0], [0], [1], [0, 0, 1, 1], [], []>} : vector<256x4xbf16>, vector<4x128xbf16>, vector<256x128xf32> -> vector<256x128xf32>
    %48 = arith.addf %42, %47 : vector<256x128xf32>
    %c0_56 = arith.constant 0 : index
    %c2_57 = arith.constant 2 : index
    %c2_58 = arith.constant 2 : index
    %c0_59 = arith.constant 0 : index
    %49 = vector.load %arg1[%c0_56, %c2_57, %c2_58, %c0_59] : memref<1x18x18x4xbf16, #tpu.memory_space<vmem>>, vector<1x16x16x4xbf16>
    %50 = vector.shape_cast %49 : vector<1x16x16x4xbf16> to vector<256x4xbf16>
    %c8 = arith.constant 8 : index
    %c0_60 = arith.constant 0 : index
    %c0_61 = arith.constant 0 : index
    %51 = vector.load %arg2[%c8, %c0_60, %c0_61] : memref<9x4x128xbf16, #tpu.memory_space<vmem>>, vector<1x4x128xbf16>
    %52 = vector.shape_cast %51 : vector<1x4x128xbf16> to vector<4x128xbf16>
    %cst_62 = arith.constant dense<0.000000e+00> : vector<256x128xf32>
    %53 = tpu.matmul %50, %52, %cst_62 {dimension_numbers = #tpu.dot_dimension_numbers<[1], [0], [0], [1], [0, 0, 1, 1], [], []>} : vector<256x4xbf16>, vector<4x128xbf16>, vector<256x128xf32> -> vector<256x128xf32>
    %54 = arith.addf %48, %53 : vector<256x128xf32>
    %c0_63 = arith.constant 0 : index
    %c0_64 = arith.constant 0 : index
    %55 = vector.load %arg3[%c0_63, %c0_64] : memref<1x128xf32, #tpu.memory_space<vmem>>, vector<1x128xf32>
    %56 = vector.broadcast %55 : vector<1x128xf32> to vector<256x128xf32>
    %57 = arith.addf %54, %56 : vector<256x128xf32>
    %cst_65 = arith.constant 0.000000e+00 : f32
    %58 = vector.broadcast %cst_65 : f32 to vector<256x128xf32>
    %59 = arith.maximumf %57, %58 : vector<256x128xf32>
    %60 = vector.shape_cast %59 : vector<256x128xf32> to vector<1x16x16x128xf32>
    %61 = arith.truncf %60 : vector<1x16x16x128xf32> to vector<1x16x16x128xbf16>
    %c0_66 = arith.constant 0 : index
    %c0_67 = arith.constant 0 : index
    %c0_68 = arith.constant 0 : index
    %c0_69 = arith.constant 0 : index
    %62 = vector.load %arg4[%c0_66, %c0_67, %c0_68, %c0_69] : memref<1x16x16x128xbf16, #tpu.memory_space<vmem>>, vector<1x16x16x128xbf16>
    tpu.vector_store %arg4[%c0_66, %c0_67, %c0_68, %c0_69], %61 {strides = array<i32>} : memref<1x16x16x128xbf16, #tpu.memory_space<vmem>>, vector<1x16x16x128xbf16>,
    return
  }
  func.func @transform_0(%arg0: i32) -> (i32, i32, i32, i32) {
    %c0_i32 = arith.constant 0 : i32
    %c0_i32_0 = arith.constant 0 : i32
    %c0_i32_1 = arith.constant 0 : i32
    %c0_i32_2 = arith.constant 0 : i32
    return %arg0, %c0_i32, %c0_i32_0, %c0_i32_1 : i32, i32, i32, i32
  }
  func.func @transform_1(%arg0: i32) -> (i32, i32, i32) {
    %c0_i32 = arith.constant 0 : i32
    %c0_i32_0 = arith.constant 0 : i32
    %c0_i32_1 = arith.constant 0 : i32
    %c0_i32_2 = arith.constant 0 : i32
    return %c0_i32, %c0_i32_0, %c0_i32_1 : i32, i32, i32
  }
  func.func @transform_2(%arg0: i32) -> (i32, i32) {
    %c0_i32 = arith.constant 0 : i32
    %c0_i32_0 = arith.constant 0 : i32
    %c0_i32_1 = arith.constant 0 : i32
    return %c0_i32, %c0_i32_0 : i32, i32
  }
  func.func @transform_3(%arg0: i32) -> (i32, i32, i32, i32) {
    %c0_i32 = arith.constant 0 : i32
    %c0_i32_0 = arith.constant 0 : i32
    %c0_i32_1 = arith.constant 0 : i32
    %c0_i32_2 = arith.constant 0 : i32
    return %arg0, %c0_i32, %c0_i32_0, %c0_i32_1 : i32, i32, i32, i32
  }
}

module attributes {stable_mosaic.version = 11 : i64} {
  func.func @_matmul_shift_relu_kernel(%arg0: i32, %arg1: memref<128x128xbf16, #tpu.memory_space<vmem>>, %arg2: memref<128x128xbf16, #tpu.memory_space<vmem>>, %arg3: memref<1x128xf32, #tpu.memory_space<vmem>>, %arg4: memref<128x128xbf16, #tpu.memory_space<vmem>>) attributes {dimension_semantics = [#tpu.dimension_semantics<parallel>], iteration_bounds = array<i64: 1>, scalar_prefetch = 0 : i64, scratch_operands = 0 : i64, tpu.core_type = #tpu.core_type<tc>, window_params = [{transform_indices = @transform_0, window_bounds = array<i64: 128, 128>}, {pipeline_mode = #tpu.pipeline_mode<synchronous>, transform_indices = @transform_1, window_bounds = array<i64: 128, 128>}, {pipeline_mode = #tpu.pipeline_mode<synchronous>, transform_indices = @transform_2, window_bounds = array<i64: 1, 128>}, {transform_indices = @transform_3, window_bounds = array<i64: 128, 128>}]} {
    %c0 = arith.constant 0 : index
    %c0_0 = arith.constant 0 : index
    %0 = vector.load %arg1[%c0, %c0_0] : memref<128x128xbf16, #tpu.memory_space<vmem>>, vector<128x128xbf16>
    %c0_1 = arith.constant 0 : index
    %c0_2 = arith.constant 0 : index
    %1 = vector.load %arg2[%c0_1, %c0_2] : memref<128x128xbf16, #tpu.memory_space<vmem>>, vector<128x128xbf16>
    %cst = arith.constant dense<0.000000e+00> : vector<128x128xf32>
    %2 = tpu.matmul %0, %1, %cst {dimension_numbers = #tpu.dot_dimension_numbers<[1], [0], [0], [1], [0, 0, 1, 1], [], []>} : vector<128x128xbf16>, vector<128x128xbf16>, vector<128x128xf32> -> vector<128x128xf32>
    %c0_3 = arith.constant 0 : index
    %c0_4 = arith.constant 0 : index
    %3 = vector.load %arg3[%c0_3, %c0_4] : memref<1x128xf32, #tpu.memory_space<vmem>>, vector<1x128xf32>
    %4 = vector.broadcast %3 : vector<1x128xf32> to vector<128x128xf32>
    %5 = arith.addf %2, %4 : vector<128x128xf32>
    %cst_5 = arith.constant 0.000000e+00 : f32
    %6 = vector.broadcast %cst_5 : f32 to vector<128x128xf32>
    %7 = arith.maximumf %5, %6 : vector<128x128xf32>
    %8 = arith.truncf %7 : vector<128x128xf32> to vector<128x128xbf16>
    %c0_6 = arith.constant 0 : index
    %c0_7 = arith.constant 0 : index
    %9 = vector.load %arg4[%c0_6, %c0_7] : memref<128x128xbf16, #tpu.memory_space<vmem>>, vector<128x128xbf16>
    tpu.vector_store %arg4[%c0_6, %c0_7], %8 {strides = array<i32>} : memref<128x128xbf16, #tpu.memory_space<vmem>>, vector<128x128xbf16>,
    return
  }
  func.func @transform_0(%arg0: i32) -> (i32, i32) {
    %c0_i32 = arith.constant 0 : i32
    %c0_i32_0 = arith.constant 0 : i32
    return %arg0, %c0_i32 : i32, i32
  }
  func.func @transform_1(%arg0: i32) -> (i32, i32) {
    %c0_i32 = arith.constant 0 : i32
    %c0_i32_0 = arith.constant 0 : i32
    %c0_i32_1 = arith.constant 0 : i32
    return %c0_i32, %c0_i32_0 : i32, i32
  }
  func.func @transform_2(%arg0: i32) -> (i32, i32) {
    %c0_i32 = arith.constant 0 : i32
    %c0_i32_0 = arith.constant 0 : i32
    %c0_i32_1 = arith.constant 0 : i32
    return %c0_i32, %c0_i32_0 : i32, i32
  }
  func.func @transform_3(%arg0: i32) -> (i32, i32) {
    %c0_i32 = arith.constant 0 : i32
    %c0_i32_0 = arith.constant 0 : i32
    return %arg0, %c0_i32 : i32, i32
  }
}

</mosaic_0001>

<bundles_post_ra>
// kernel: chained.3
= control target key start
LH: loop header
LB: loop body
LE: loop exit
PB: predicated region body
PF: predicated region fallthrough
CT: control target
= control target key end

     0   :  { %8 = vsyncpa [#allocation3], 0  ;;  %s767_s0 = inlined_call_operand.hbm [shape: bf16[128,128], index: 0, kind: input, shape index: {}]   ;;  %s768_s1 = inlined_call_operand.hbm [shape: bf16[128,128], index: 1, kind: input, shape index: {}]   ;;  %s769_s2 = inlined_call_operand.hbm [shape: f32[1,128], index: 2, kind: input, shape index: {}]   ;;  %s770_s3 = inlined_call_operand.hbm [shape: bf16[128,128], index: 3, kind: output, shape index: {}]  }
   0x1   :  { %9 = vsyncpa [#allocation6], 0 }
   0x2   :  { %10 = vsyncpa [#allocation4], 0  ;;  %s677_s12 = smov [#allocation5]   ;;  %s678_s14 = smov [#allocation2]  }
   0x3   :  { %s28_s13 = sshll.u32 %s677_s12, 4  ;;  %s16_s15 = sshll.u32 %s678_s14, 4  ;;  %s29_s13 = int_to_ptr.vmem [resolvable:$true] %s28_s13  ;;  %s703_s15 = int_to_ptr.vmem [resolvable:$true] %s16_s15 }
   0x4   :  { %s583_s18 = scalar_lea.hbm %s768_s1, 1024 }
   0x5   :  { %p584_p0 = scmp.ne.s32.totalorder %s768_s1, %s583_s18  ;;  %p587_p1 = scmp.lt.u32.totalorder %s583_s18, %s768_s1 }
   0x7   :  { %p589_p2 = pnand %p587_p1, %p584_p0 }
   0x9   :  { %592 = shalt.err (!%p589_p2)
}
   0xa   :  { %s593_s23 = scalar_lea.vmem %s29_s13, 1024  ;;  %p598_p4 = scmp.lt.s32.totalorder %s29_s13, %s29_s13 }
   0xb   :  { %p594_p3 = scmp.ne.s32.totalorder %s29_s13, %s593_s23  ;;  %p599_p5 = scmp.lt.s32.totalorder %s593_s23, %s593_s23 }
   0xd   :  { %p600_p6 = por %p599_p5, %p598_p4 }
   0xf   :  { %p601_p7 = pnand %p600_p6, %p594_p3 }
  0x11   :  { %604 = shalt.err (!%p601_p7)
}
  0x12   :  { %s679_s24 = smov 64   ;;  %s680_s25 = smov 4  }
  0x13   :  { %34 = dma.hbm_to_vmem [thread:$0]  %s768_s1, 1024, %s29_s13, [#allocation6], %s679_s24, %s679_s24, %s680_s25  }
  0x14   :  { %s605_s30 = scalar_lea.hbm %s767_s0, 1024 }
  0x15   :  { %p606_p8 = scmp.ne.s32.totalorder %s767_s0, %s605_s30  ;;  %p609_p9 = scmp.lt.u32.totalorder %s605_s30, %s767_s0 }
  0x17   :  { %p611_p10 = pnand %p609_p9, %p606_p8 }
  0x19   :  { %614 = shalt.err (!%p611_p10)
}
  0x1a   :  { %s615_s8 = scalar_lea.vmem %s703_s15, 1024  ;;  %p620_p12 = scmp.lt.s32.totalorder %s703_s15, %s703_s15 }
  0x1b   :  { %p616_p11 = scmp.ne.s32.totalorder %s703_s15, %s615_s8  ;;  %p621_p13 = scmp.lt.s32.totalorder %s615_s8, %s615_s8 }
  0x1d   :  { %p622_p0 = por %p621_p13, %p620_p12 }
  0x1f   :  { %p623_p1 = pnand %p622_p0, %p616_p11 }
  0x21   :  { %626 = shalt.err (!%p623_p1)
}
  0x22   :  { %22 = dma.hbm_to_vmem [thread:$0]  %s767_s0, 1024, %s703_s15, [#allocation3], %s679_s24, %s679_s24, %s680_s25  }
  0x23   :  { %s681_s10 = smov [#allocation7]   ;;  %s627_s14 = scalar_lea.hbm %s769_s2, 16 }
  0x24   :  { %s41_s11 = sshll.u32 %s681_s10, 4  ;;  %p628_p2 = scmp.ne.s32.totalorder %s769_s2, %s627_s14  ;;  %s42_s11 = int_to_ptr.vmem [resolvable:$true] %s41_s11 }
  0x25   :  { %p631_p3 = scmp.lt.u32.totalorder %s627_s14, %s769_s2 }
  0x27   :  { %p633_p4 = pnand %p631_p3, %p628_p2 }
  0x29   :  { %636 = shalt.err (!%p633_p4)
}
  0x2a   :  { %s637_s20 = scalar_lea.vmem %s42_s11, 16  ;;  %s641_s0 = scalar_lea.vmem %s42_s11, 32 }
  0x2b   :  { %p638_p5 = scmp.ne.s32.totalorder %s42_s11, %s637_s20  ;;  %p642_p6 = scmp.lt.s32.totalorder %s42_s11, %s42_s11 }
  0x2c   :  { %p643_p7 = scmp.lt.s32.totalorder %s641_s0, %s637_s20 }
  0x2e   :  { %p644_p8 = por %p643_p7, %p642_p6 }
  0x30   :  { %p645_p9 = pnand %p644_p8, %p638_p5 }
  0x32   :  { %648 = shalt.err (!%p645_p9)
}
  0x33   :  { %44 = dma.hbm_to_vmem [thread:$0]  %s769_s2, 16, %s42_s11, [#allocation6]  }
  0x34   :  { %671 = dma.done.wait [#allocation3], 1024  }
  0x35   :  { %672 = vsyncadd [#allocation3], 4294966272 }
  0x36   :  { %673 = dma.done.wait [#allocation6], 1040  }
  0x37   :  { %674 = vsyncadd [#allocation6], 4294966256  ;;  %v567_v0 = vld [vmem:[#allocation5] sm:$0xff]   ;;  %v568_v1 = vld [vmem:[#allocation5 + $0x8] sm:$0xff]   ;;  %s682_s2 = smov [#allocation8]  }
  0x38   :  { %513 = vmatprep.subr.bf16.mxu0 %v567_v0  ;;  %545 = vmatprep.subr.bf16.mxu1 %v567_v0  ;;  %v569_v2 = vld [vmem:[#allocation5 + $0x10] sm:$0xff]   ;;  %v570_v3 = vld [vmem:[#allocation5 + $0x18] sm:$0xff]   ;;  %v575_v4 = vld [vmem:[#allocation2] sm:$0xff]   ;;  %s388_s22 = sshll.u32 %s682_s2, 4  ;;  %s389_s22 = int_to_ptr.vmem [resolvable:$true] %s388_s22 }
  0x39   :  { %514 = vmatpush3.bf16.msra.mxu0 %v567_v0  ;;  %553 = vmatpush3.bf16.msra.mxu1 %v567_v0  ;;  %v576_v5 = vld [vmem:[#allocation2 + $0x20] sm:$0xff]   ;;  %v572_v7 = vld [vmem:[#allocation5 + $0x28] sm:$0xff]   ;;  %v573_v8 = vld [vmem:[#allocation5 + $0x30] sm:$0xff]   ;;  %s649_s23 = scalar_lea.vmem %s389_s22, 1024  ;;  %p654_p11 = scmp.lt.s32.totalorder %s389_s22, %s389_s22 }
  0x3a   :  { %515 = vmatprep.subr.bf16.mxu0 %v568_v1  ;;  %546 = vmatprep.subr.bf16.mxu1 %v568_v1  ;;  %v571_v6 = vld [vmem:[#allocation5 + $0x20] sm:$0xff]   ;;  %v574_v9 = vld [vmem:[#allocation5 + $0x38] sm:$0xff]   ;;  %v577_v10 = vld [vmem:[#allocation2 + $0x8] sm:$0xff]   ;;  %p650_p10 = scmp.ne.s32.totalorder %s389_s22, %s649_s23  ;;  %p655_p12 = scmp.lt.s32.totalorder %s649_s23, %s649_s23 }
  0x3b   :  { %529 = vmatprep.mubr.bf16.mxu0 %v575_v4  ;;  %537 = vmatprep.mubr.bf16.mxu1 %v576_v5  ;;  %v578_v11 = vld [vmem:[#allocation2 + $0x28] sm:$0xff]   ;;  %v579_v12 = vld [vmem:[#allocation2 + $0x10] sm:$0xff]   ;;  %v581_v14 = vld [vmem:[#allocation2 + $0x18] sm:$0xff]  }
  0x3c   :  { %v580_v13 = vld [vmem:[#allocation2 + $0x30] sm:$0xff]   ;;  %v582_v15 = vld [vmem:[#allocation2 + $0x38] sm:$0xff]   ;;  %v401_v16 = vld [vmem:[#allocation7] ss:$0 sm:$0xff]  ;;  %p656_p13 = por %p655_p12, %p654_p11 }
  0x3d   :  { %516 = vmatpush3.bf16.msra.mxu0 %v568_v1  ;;  %554 = vmatpush3.bf16.msra.mxu1 %v568_v1 }
  0x3e   :  { %517 = vmatprep.subr.bf16.mxu0 %v569_v2  ;;  %547 = vmatprep.subr.bf16.mxu1 %v569_v2  ;;  %p657_p0 = pnand %p656_p13, %p650_p10 }
  0x41   :  { %518 = vmatpush3.bf16.msra.mxu0 %v569_v2  ;;  %555 = vmatpush3.bf16.msra.mxu1 %v569_v2 }
  0x42   :  { %519 = vmatprep.subr.bf16.mxu0 %v570_v3  ;;  %548 = vmatprep.subr.bf16.mxu1 %v570_v3 }
  0x45   :  { %520 = vmatpush3.bf16.msra.mxu0 %v570_v3  ;;  %556 = vmatpush3.bf16.msra.mxu1 %v570_v3 }
  0x46   :  { %521 = vmatprep.subr.bf16.mxu0 %v571_v6  ;;  %549 = vmatprep.subr.bf16.mxu1 %v571_v6 }
  0x49   :  { %522 = vmatpush3.bf16.msra.mxu0 %v571_v6  ;;  %557 = vmatpush3.bf16.msra.mxu1 %v571_v6 }
  0x4a   :  { %523 = vmatprep.subr.bf16.mxu0 %v572_v7  ;;  %550 = vmatprep.subr.bf16.mxu1 %v572_v7 }
  0x4d   :  { %524 = vmatpush3.bf16.msra.mxu0 %v572_v7  ;;  %558 = vmatpush3.bf16.msra.mxu1 %v572_v7 }
  0x4e   :  { %525 = vmatprep.subr.bf16.mxu0 %v573_v8  ;;  %551 = vmatprep.subr.bf16.mxu1 %v573_v8 }
  0x51   :  { %526 = vmatpush3.bf16.msra.mxu0 %v573_v8  ;;  %559 = vmatpush3.bf16.msra.mxu1 %v573_v8 }
  0x52   :  { %527 = vmatprep.subr.bf16.mxu0 %v574_v9  ;;  %552 = vmatprep.subr.bf16.mxu1 %v574_v9 }
  0x55   :  { %528 = vmatpush3.bf16.msra.mxu0 %v574_v9  ;;  %560 = vmatpush3.bf16.msra.mxu1 %v574_v9 }
  0x58   :  { %530 = vmatmul.mubr.bf16.vlgmr.msra.gmra.mrb[0].mxu0 %v577_v10  ;;  %538 = vmatmul.mubr.bf16.vlgmr.msra.gmra.mrb[0].mxu1 %v578_v11 }
  0x59   :  { %533 = vmatprep.mubr.bf16.mxu0 %v579_v12  ;;  %541 = vmatprep.mubr.bf16.mxu1 %v580_v13 }
  0x60   :  { %534 = vmatmul.mubr.bf16.gmra.mrb[4].mxu0 %v581_v14  ;;  %542 = vmatmul.mubr.bf16.gmra.mrb[4].mxu1 %v582_v15 }
 0x12b   :  { %v531_v17 = vpop.f32.mrb[0].mxu0  ;;  %v539_v18 = vpop.f32.mrb[0].mxu1 }
 0x12c   :  { %v233_v19 = vadd.f32 %v531_v17, %v401_v16  ;;  %v265_v20 = vadd.f32 %v539_v18, %v401_v16  ;;  %v224_v21 = vpop.f32.mrb[1].mxu0  ;;  %v256_v22 = vpop.f32.mrb[1].mxu1 }
 0x12d   :  { %v225_v23 = vadd.f32 %v401_v16, %v224_v21  ;;  %v257_v24 = vadd.f32 %v401_v16, %v256_v22  ;;  %v532_v25 = vpop.f32.mrb[2].mxu0  ;;  %v540_v26 = vpop.f32.mrb[2].mxu1 }
 0x12e   :  { %v236_v27 = vadd.f32 %v532_v25, %v401_v16  ;;  %v268_v28 = vadd.f32 %v540_v26, %v401_v16  ;;  %v227_v29 = vpop.f32.mrb[3].mxu0  ;;  %v259_v30 = vpop.f32.mrb[3].mxu1  ;;  %v289_v33 = vmax.f32 %v233_v19, 0.0  ;;  %v297_v34 = vmax.f32 %v265_v20, 0.0 }
 0x12f   :  { %v228_v31 = vadd.f32 %v401_v16, %v227_v29  ;;  %v260_v32 = vadd.f32 %v401_v16, %v259_v30  ;;  %v287_v37 = vmax.f32 %v225_v23, 0.0  ;;  %v295_v38 = vmax.f32 %v257_v24, 0.0 }
 0x130   :  { %v290_v35 = vmax.f32 %v236_v27, 0.0  ;;  %v298_v36 = vmax.f32 %v268_v28, 0.0 }
 0x131   :  { %v288_v39 = vmax.f32 %v228_v31, 0.0  ;;  %v296_v40 = vmax.f32 %v260_v32, 0.0 }
 0x132   :  { %v458_v41 = vpack.c.bf16 %v290_v35, %v289_v33  ;;  %v478_v42 = vpack.c.bf16 %v298_v36, %v297_v34 }
 0x133   :  { %v453_v43 = vpack.c.bf16 %v288_v39, %v287_v37  ;;  %v473_v44 = vpack.c.bf16 %v296_v40, %v295_v38  ;;  %v535_v45 = vpop.f32.mrb[4].mxu0  ;;  %v543_v46 = vpop.f32.mrb[4].mxu1 }
 0x134   :  { %490 = vst [vmem:[#allocation8 + $0x8] sm:$0xff] %v458_v41   ;;  %494 = vst [vmem:[#allocation8 + $0x28] sm:$0xff] %v478_v42   ;;  %v249_v47 = vadd.f32 %v535_v45, %v401_v16  ;;  %v281_v48 = vadd.f32 %v543_v46, %v401_v16  ;;  %v240_v49 = vpop.f32.mrb[5].mxu0  ;;  %v272_v50 = vpop.f32.mrb[5].mxu1 }
 0x135   :  { %454 = vst [vmem:[#allocation8] sm:$0xff] %v453_v43   ;;  %493 = vst [vmem:[#allocation8 + $0x20] sm:$0xff] %v473_v44   ;;  %v241_v51 = vadd.f32 %v401_v16, %v240_v49  ;;  %v273_v52 = vadd.f32 %v401_v16, %v272_v50  ;;  %v536_v53 = vpop.f32.mrb[6].mxu0  ;;  %v544_v54 = vpop.f32.mrb[6].mxu1 }
 0x136   :  { %v252_v55 = vadd.f32 %v536_v53, %v401_v16  ;;  %v284_v56 = vadd.f32 %v544_v54, %v401_v16  ;;  %v243_v57 = vpop.f32.mrb[7].mxu0  ;;  %v275_v58 = vpop.f32.mrb[7].mxu1  ;;  %v293_v61 = vmax.f32 %v249_v47, 0.0  ;;  %v301_v62 = vmax.f32 %v281_v48, 0.0 }
 0x137   :  { %v244_v59 = vadd.f32 %v401_v16, %v243_v57  ;;  %v276_v60 = vadd.f32 %v401_v16, %v275_v58  ;;  %v291_v1 = vmax.f32 %v241_v51, 0.0  ;;  %v299_v2 = vmax.f32 %v273_v52, 0.0 }
 0x138   :  { %v294_v63 = vmax.f32 %v252_v55, 0.0  ;;  %v302_v0 = vmax.f32 %v284_v56, 0.0 }
 0x139   :  { %v292_v3 = vmax.f32 %v244_v59, 0.0  ;;  %v300_v4 = vmax.f32 %v276_v60, 0.0 }
 0x13a   :  { %v468_v5 = vpack.c.bf16 %v294_v63, %v293_v61  ;;  %v488_v6 = vpack.c.bf16 %v302_v0, %v301_v62 }
 0x13b   :  { %v463_v7 = vpack.c.bf16 %v292_v3, %v291_v1  ;;  %v483_v8 = vpack.c.bf16 %v300_v4, %v299_v2 }
 0x13c   :  { %492 = vst [vmem:[#allocation8 + $0x18] sm:$0xff] %v468_v5   ;;  %496 = vst [vmem:[#allocation8 + $0x38] sm:$0xff] %v488_v6  }
 0x13d   :  { %491 = vst [vmem:[#allocation8 + $0x10] sm:$0xff] %v463_v7   ;;  %495 = vst [vmem:[#allocation8 + $0x30] sm:$0xff] %v483_v8  }
 0x13e   :  { %660 = shalt.err (!%p657_p0)
}
 0x13f   :  { %s661_s28 = scalar_lea.hbm %s770_s3, 1024 }
 0x140   :  { %p662_p1 = scmp.ne.s32.totalorder %s770_s3, %s661_s28  ;;  %p665_p2 = scmp.lt.u32.totalorder %s661_s28, %s770_s3 }
 0x142   :  { %p667_p3 = pnand %p665_p2, %p662_p1 }
 0x144   :  { %670 = shalt.err (!%p667_p3)
}
 0x145   :  { %394 = dma.vmem_to_hbm [thread:$0]  %s389_s22, 1024, %s770_s3, [#allocation4], %s679_s24, %s679_s24, %s680_s25  }
 0x146   :  { %675 = dma.done.wait [#allocation4], 1024  }
 0x147   :  { %676 = vsyncadd [#allocation4], 4294966272 }
 0x148   :  { %398 = vsyncpa [#allocation3], 1 }
 0x149   :  { %399 = vsyncpa [#allocation6], 1 }
 0x14a   :  { %400 = vsyncpa [#allocation4], 1 }

// kernel: chained.2
= control target key start
LH: loop header
LB: loop body
LE: loop exit
PB: predicated region body
PF: predicated region fallthrough
CT: control target
= control target key end

     0   :  { %8 = vsyncpa [#allocation3], 0  ;;  %s8906_s0 = inlined_call_operand.hbm [shape: bf16[2,18,18,4], index: 0, kind: input, shape index: {}]   ;;  %s8907_s1 = inlined_call_operand.hbm [shape: bf16[9,4,128], index: 1, kind: input, shape index: {}]   ;;  %s8908_s2 = inlined_call_operand.hbm [shape: f32[1,128], index: 2, kind: input, shape index: {}]   ;;  %s8909_s3 = inlined_call_operand.hbm [shape: bf16[2,16,16,128], index: 3, kind: output, shape index: {}]  }
   0x1   :  { %10 = vsyncpa [#allocation3 + $0x1], 0 }
   0x2   :  { %11 = vsyncpa [#allocation6], 0 }
   0x3   :  { %12 = vsyncpa [#allocation4], 0 }
   0x4   :  { %14 = vsyncpa [#allocation4 + $0x1], 0  ;;  %s6911_s12 = smov 0   ;;  %s6913_s13 = smov 0  }
   0x5   :  { %s6915_s14 = smov 0   ;;  %s6917_s15 = smov 0  }
   0x6 LB: > { %s6932_s16 = sadd.s32 4294967295, %s6879_s15   ;;  %s5113_s17 = sadd.s32 4294967294, %s6879_s15   ;;  %s6879_s15 = sphi %s6917_s15, %s9015_s15   ;;  %s6875_s14 = sphi %s6915_s14, %s9014_s14   ;;  %s6871_s13 = sphi %s6913_s13, %s9013_s13   ;;  %s6867_s12 = sphi %s6911_s12, %s9012_s12  }
   0x7   : > { %p40_p0 = scmp.ne.s32.totalorder %s6871_s13, %s6867_s12  ;;  %p8910_p1 = scmp.eq.s32.totalorder %s6932_s16, 0 }
   0x8   : > { %p112_p3 = scmp.eq.s32.totalorder %s5113_s17, 1  ;;  %p5114_p5 = scmp.ge.s32.totalorder %s6879_s15, 1 }
   0x9   : > { %p6941_p4 = por %p8910_p1, %p40_p0  ;;  %p119_p7 = scmp.lt.s32.totalorder %s6879_s15, 3 }
   0xa   : > { %p6946_p6 = por %p112_p3, %p40_p0  ;;  %s6881_s21 = smov [#allocation5]  }
   0xb   : > { %s8932_s18 = scalar_select %p6941_p4, 1, 0 }
   0xc   : > { %s8933_s19 = scalar_select %p6946_p6, 1, 0 }
   0xd   : > { %p6951_p8 = pnand %p5114_p5, %p119_p7  ;;  %s131_s22 = sshll.u32 %s6881_s21, 4  ;;  %s6955_s22 = int_to_ptr.vmem [resolvable:$true] %s131_s22 }
   0xe   : > { %s6882_s24 = smov [#allocation7]   ;;  %s6723_s28 = scalar_lea.hbm %s8907_s1, 288 }
   0xf   : > { %p6559_p9 = pneg %p6951_p8  ;;  %s145_s25 = sshll.u32 %s6882_s24, 4  ;;  %s6966_s25 = int_to_ptr.vmem [resolvable:$true] %s145_s25 }
  0x10   : > { %p6724_p12 = scmp.ne.s32.totalorder %s8907_s1, %s6723_s28  ;;  %p6730_p5 = scmp.lt.u32.totalorder %s6723_s28, %s8907_s1 }
  0x11   : > { %p6962_p11 = pnand %p6559_p9, %p8910_p1 }
  0x13   : > { %p6725_p13 = pneg %p6962_p11 }
  0x15   : > { %p6726_p0 = pnand %p6725_p13, %p6724_p12 }
  0x17   : > { %p6727_p3 = pneg %p6726_p0 }
  0x19   : > { %p6732_p7 = pnand %p6730_p5, %p6727_p3 }
  0x1b   : > { %6735 = shalt.err (!%p6732_p7)
}
  0x1c   : > { %s6736_s6 = scalar_lea.vmem %s6955_s22, 288  ;;  %p6744_p2 = scmp.lt.s32.totalorder %s6955_s22, %s6955_s22 }
  0x1d   : > { %p6737_p9 = scmp.ne.s32.totalorder %s6955_s22, %s6736_s6  ;;  %p6745_p12 = scmp.lt.s32.totalorder %s6736_s6, %s6736_s6 }
  0x1f   : > { %p6739_p10 = pnand %p6737_p9, %p6725_p13  ;;  %p6746_p0 = por %p6745_p12, %p6744_p2 }
  0x21   : > { %p6740_p1 = pneg %p6739_p10 }
  0x23   : > { %p6747_p6 = pnand %p6746_p0, %p6740_p1 }
  0x25   : > { %6750 = shalt.err (!%p6747_p6)
}
  0x26   : > { %s6883_s7 = smov 32   ;;  %s6884_s8 = smov 2  }
  0x27   : > { %6562 = dma.hbm_to_vmem [thread:$0]  (!%p6962_p11), %s8907_s1, 288, %s6955_s22, [#allocation6], %s6883_s7, %s6883_s7, %s6884_s8  }
  0x28   : > { %s6751_s21 = scalar_lea.hbm %s8908_s2, 16 }
  0x29   : > { %p6752_p2 = scmp.ne.s32.totalorder %s8908_s2, %s6751_s21  ;;  %p6758_p10 = scmp.lt.u32.totalorder %s6751_s21, %s8908_s2 }
  0x2b   : > { %p6754_p1 = pnand %p6752_p2, %p6725_p13 }
  0x2d   : > { %p6755_p6 = pneg %p6754_p1 }
  0x2f   : > { %p6760_p3 = pnand %p6758_p10, %p6755_p6 }
  0x31   : > { %6763 = shalt.err (!%p6760_p3)
}
  0x32   : > { %s6764_s22 = scalar_lea.vmem %s6966_s25, 16  ;;  %s6771_s29 = scalar_lea.vmem %s6966_s25, 32 }
  0x33   : > { %p6765_p5 = scmp.ne.s32.totalorder %s6966_s25, %s6764_s22  ;;  %p6772_p12 = scmp.lt.s32.totalorder %s6966_s25, %s6966_s25 }
  0x34   : > { %p6773_p0 = scmp.lt.s32.totalorder %s6771_s29, %s6764_s22 }
  0x35   : > { %p6767_p7 = pnand %p6765_p5, %p6725_p13 }
  0x36   : > { %p6774_p2 = por %p6773_p0, %p6772_p12 }
  0x37   : > { %p6768_p9 = pneg %p6767_p7 }
  0x39   : > { %p6775_p1 = pnand %p6774_p2, %p6768_p9 }
  0x3b   : > { %6778 = shalt.err (!%p6775_p1)
}
  0x3c   : > { %6565 = dma.hbm_to_vmem [thread:$0]  (!%p6962_p11), %s8908_s2, 16, %s6966_s25, [#allocation6]  }
  0x3d   : > { %s7022_s5 = sadd.s32 1, %s6879_s15   ;;  %s27_s23 = sadd.s32 1, %s6875_s14 }
  0x3e   : > { %s24_s6 = ssub.s32 %s6879_s15, %s7022_s5  ;;  %p34_p13 = scmp.ne.s32.totalorder %s6875_s14, %s6871_s13 }
  0x3f   : > { %p25_p6 = scmp.eq.s32.totalorder %s24_s6, 0  ;;  %p35_p10 = scmp.eq.s32.totalorder %s6879_s15, 0 }
  0x40   : > { %p8936_p3 = scmp.eq.s32.totalorder %s6932_s16, 1  ;;  %p6576_p7 = scmp.lt.s32.totalorder %s6879_s15, 2 }
  0x41   : > { %s7038_s8 = scalar_select %p25_p6, %s6875_s14, %s27_s23  }
  0x42   : > { %p7032_p5 = por %p8936_p3, %p34_p13  ;;  %p36_p9 = por %p35_p10, %p34_p13 }
  0x43   : > { %s156_s9 = sand.u32 1, %s6875_s14   ;;  %s6545_s25 = smul.u32 3456, %s6879_s15 }
  0x44   : > { %s8937_s7 = scalar_select %p7032_p5, 1, 0 }
  0x45   : > { %s6544_s10 = smul.u32 216, %s156_s9  ;;  %p7042_p11 = pnand %p6576_p7, %p36_p9 }
  0x46   : > { %s7049_s24 = scalar_lea.hbm %s8906_s0, %s6545_s25  ;;  %s7053_s28 = scalar_lea.sflag [#allocation3], %s156_s9 }
  0x47   : > { %s160_s26 = scalar_lea.vmem [#allocation2], %s6544_s10  ;;  %s6779_s22 = scalar_lea.hbm %s7049_s24, 3456 }
  0x48   : > { %s167_s27 = sshll.u32 %s160_s26, 4  ;;  %p6780_p12 = scmp.ne.s32.totalorder %s7049_s24, %s6779_s22  ;;  %s7051_s27 = int_to_ptr.vmem [resolvable:$true] %s167_s27 }
  0x49   : > { %p6781_p0 = pneg %p7042_p11  ;;  %s6784_s4 = scalar_lea.hbm %s8906_s0, 6912 }
  0x4a   : > { %p6785_p13 = scmp.lt.u32.totalorder %s7049_s24, %s8906_s0  ;;  %p6786_p6 = scmp.lt.u32.totalorder %s6784_s4, %s6779_s22 }
  0x4b   : > { %p6782_p2 = pnand %p6781_p0, %p6780_p12  ;;  %p6788_p3 = scmp.lt.u32.totalorder %s6779_s22, %s7049_s24 }
  0x4c   : > { %p6787_p10 = por %p6786_p6, %p6785_p13 }
  0x4d   : > { %p6783_p1 = pneg %p6782_p2 }
  0x4e   : > { %p6789_p7 = por %p6788_p3, %p6787_p10 }
  0x50   : > { %p6790_p9 = pnand %p6789_p7, %p6783_p1 }
  0x52   : > { %6793 = shalt.err (!%p6790_p9)
}
  0x53   : > { %s6794_s9 = scalar_lea.vmem %s7051_s27, 3456  ;;  %s6885_s10 = smov [#allocation2]  }
  0x54   : > { %p6795_p12 = scmp.ne.s32.totalorder %s7051_s27, %s6794_s9  ;;  %s6799_s25 = sshll.u32 %s6885_s10, 4  ;;  %s6800_s25 = int_to_ptr.vmem [resolvable:$false] %s6799_s25 }
  0x55   : > { %s6801_s17 = scalar_lea.vmem %s6800_s25, 6912  ;;  %p6802_p4 = scmp.lt.s32.totalorder %s7051_s27, %s6800_s25 }
  0x56   : > { %p6797_p2 = pnand %p6795_p12, %p6781_p0  ;;  %p6803_p13 = scmp.lt.s32.totalorder %s6801_s17, %s6794_s9 }
  0x58   : > { %p6798_p5 = pneg %p6797_p2  ;;  %p6804_p6 = por %p6803_p13, %p6802_p4 }
  0x5a   : > { %p6805_p10 = pnand %p6804_p6, %p6798_p5 }
  0x5c   : > { %6808 = shalt.err (!%p6805_p10)
}
  0x5d   : > { %s6886_s21 = smov 64   ;;  %s6887_s26 = smov 4  }
  0x5e   : > { %6569 = dma.hbm_to_vmem [thread:$0]  (!%p7042_p11), %s7049_s24, 3456, %s7051_s27, %s7053_s28, %s6886_s21, %s6886_s21, %s6887_s26  }
  0x5f   : > { %179 = sbr.rel (%p6951_p8) target bundleno = 697 (0x2b9), region = 32 }
  0x66   : > { %s7084_s22 = sand.u32 1, %s6871_s13   ;;  %p8939_p4 = scmp.ne.s32.totalorder %s8932_s18, 0 }
  0x67   : > { %s6546_s29 = smul.u32 216, %s7084_s22  ;;  %s182_s30 = scalar_lea.sflag [#allocation3], %s7084_s22 }
  0x69   : > { %s7088_s4 = scalar_lea.vmem [#allocation2], %s6546_s29 }
  0x6a   : > { %6854 = dma.done.wait (%p8939_p4), %s182_s30, 3456  }
  0x6b   : > { %6856 = vsyncadd (%p8939_p4), %s182_s30, 4294963840  ;;  %p8940_p5 = scmp.eq.s32.totalorder %s6932_s16, 0 }
  0x6d   : > { %6858 = dma.done.wait (%p8940_p5), [#allocation6], 304   ;;  %p8941_p8 = pmov %p8940_p5 }
  0x6e   : > { %vm752_vm0 = vcmask 1041408   ;;  %vm266_vm1 = vsmask.f32 3328  ;;  %vm267_vm2 = vsmask.f32 7440  ;;  %vm703_vm4 = vcmask 31744  }
  0x6f   : > { %6860 = vsyncadd (%p8941_p8), [#allocation6], 4294966992  ;;  %v654_v0 = vld [vmem:[#allocation5 + $0x2] sm:$0x3]  ;;  %v2458_v1 = vld [vmem:[#allocation5 + $0x8] sm:$0x3] }
  0x70   : > { %v217_v2 = vld [vmem:[%s7088_s4] sm:$0xf]  ;;  %6534 = vmatprep.subr.msk.bf16.mxu1 %vm752_vm0, %v654_v0  ;;  %6538 = vmatprep.subr.msk.bf16.mxu0 %vm752_vm0, %v2458_v1  ;;  %v754_v3 = vsel %vm752_vm0, %v654_v0, 0  ;;  %v7103_v4 = vsel %vm752_vm0, %v2458_v1, 0  ;;  %v218_v5 = vld [vmem:[%s7088_s4 + $0x4] sm:$0xf]  ;;  %vm7126_vm3 = vmor %vm266_vm1, %vm267_vm2 }
  0x71   : > { %8942 = vst [vmem:[#allocation12_spill] sm:$0xff] %v7103_v4  ;;  %v250_v6 = vld [vmem:[%s7088_s4 + $0x8] sm:$0x1]  ;;  %5971 = vmatpush3.bf16.msra.mxu1 %v754_v3  ;;  %6107 = vmatpush3.bf16.msra.mxu0 %v7103_v4  ;;  %v270_v7 = vshrl.u32 %v217_v2, 16  ;;  %v273_v8 = vshll.u32 %v217_v2, 16  ;;  %v279_v9 = vshll.u32 %v218_v5, 16 }
  0x72   : > { %v283_v10 = vshrl.u32 %v218_v5, 16  ;;  %v249_v11 = vld [vmem:[#allocation5] sm:$0x3]  ;;  %v289_v12 = vshll.u32 %v250_v6, 16  ;;  %v5299_v13 = vld [vmem:[%s7088_s4 + $0xc] sm:$0xf] }
  0x73   : > { %6535 = vmatprep.subr.msk.bf16.mxu1 %vm752_vm0, %v249_v11  ;;  %v7111_v14 = vld [vmem:[%s7088_s4 + $0x10] sm:$0xf]  ;;  %v272_v15 = vrot.slane %v270_v7, 4  ;;  %v275_v16 = vrot.slane %v273_v8, 5  ;;  %v281_v17 = vrot.slane %v279_v9, 5  ;;  %v2074_v21 = vshrl.u32 %v5299_v13, 16 }
  0x74   : > { %v285_v18 = vrot.slane %v283_v10, 4  ;;  %v7114_v19 = vld [vmem:[%s7088_s4 + $0x14] sm:$0x1]  ;;  %v291_v20 = vrot.slane %v289_v12, 5  ;;  %v2077_v22 = vshll.u32 %v5299_v13, 16  ;;  %v2083_v23 = vshll.u32 %v7111_v14, 16 }
  0x75   : > { %v7117_v24 = vld [vmem:[#allocation5 + $0xa] sm:$0x3]  ;;  %v276_v25 = vor.u32 %v275_v16, %v272_v15  ;;  %v2087_v27 = vshrl.u32 %v7111_v14, 16  ;;  %v2093_v28 = vshll.u32 %v7114_v19, 16  ;;  %v219_v29 = vld [vmem:[%s7088_s4 + $0xc] sm:$0xf] }
  0x76   : > { %v286_v26 = vor.u32 %v285_v18, %v281_v17  ;;  %6540 = vmatprep.subr.msk.bf16.mxu0 %vm752_vm0, %v7117_v24  ;;  %v2076_v31 = vrot.slane %v2074_v21, 4  ;;  %v2079_v32 = vrot.slane %v2077_v22, 5  ;;  %v2085_v33 = vrot.slane %v2083_v23, 5  ;;  %v220_v34 = vld [vmem:[%s7088_s4 + $0x10] sm:$0xf]  ;;  %s5122_s18 = sshll.u32 %s7084_s22, 7 }
  0x77   : > { %v277_v35 = vrot.slane %v276_v25, 4  ;;  %v2089_v37 = vrot.slane %v2087_v27, 4  ;;  %v2095_v39 = vrot.slane %v2093_v28, 5  ;;  %v251_v40 = vld [vmem:[%s7088_s4 + $0x14] sm:$0x1]  ;;  %v294_v41 = vshrl.u32 %v219_v29, 16 }
  0x78   : > { %v287_v36 = vrot.slane %v286_v26, 4  ;;  %v2080_v38 = vor.u32 %v2079_v32, %v2076_v31  ;;  %v297_v42 = vshll.u32 %v219_v29, 16  ;;  %v303_v46 = vshll.u32 %v220_v34, 16  ;;  %v5302_v55 = vld [vmem:[%s7088_s4 + $0x18] sm:$0xf]  ;;  %s8805_s20 = scalar_lea.vmem [#allocation8], %s5122_s18 }
  0x79   : > { %v282_v43 = vsel %vm7126_vm3, %v277_v35, %v281_v17  ;;  %v2090_v45 = vor.u32 %v2089_v37, %v2085_v33  ;;  %v296_v49 = vrot.slane %v294_v41, 4  ;;  %v307_v53 = vshrl.u32 %v220_v34, 16  ;;  %v7143_v60 = vld [vmem:[%s7088_s4 + $0x1c] sm:$0xf]  ;;  %v7146_v61 = vld [vmem:[%s7088_s4 + $0x20] sm:$0x1] }
  0x7a   : > { %v292_v44 = vsel %vm7126_vm3, %v287_v36, %v291_v20  ;;  %v2081_v48 = vrot.slane %v2080_v38, 4  ;;  %v299_v50 = vrot.slane %v297_v42, 5  ;;  %v305_v52 = vrot.slane %v303_v46, 5  ;;  %v221_v16 = vld [vmem:[%s7088_s4 + $0x18] sm:$0xf]  ;;  %s5721_s11 = sshll.u32 %s6932_s16, 11 }
  0x7b   : > { %v5123_v47 = vcombine.low %v282_v43, %v292_v44  ;;  %v2091_v51 = vrot.slane %v2090_v45, 4  ;;  %v313_v54 = vshll.u32 %v251_v40, 16  ;;  %v2817_v57 = vrot.slane %v7111_v14, 5  ;;  %v222_v22 = vld [vmem:[%s7088_s4 + $0x1c] sm:$0xf]  ;;  %s5021_s24 = sshll.u32 %s8805_s20, 4  ;;  %s8858_s23 = scalar_lea.hbm %s8909_s3, %s5721_s11  ;;  %s8860_s24 = int_to_ptr.vmem [resolvable:$true] %s5021_s24 }
  0x7c   : > { %v2086_v56 = vsel %vm7126_vm3, %v2081_v48, %v2085_v33  ;;  %v2820_v58 = vrot.slane %v7114_v19, 5  ;;  %v300_v59 = vor.u32 %v299_v50, %v296_v49  ;;  %v309_v63 = vrot.slane %v307_v53, 4  ;;  %v252_v28 = vld [vmem:[%s7088_s4 + $0x20] sm:$0x1]  ;;  %v5305_v34 = vld [vmem:[%s7088_s4 + $0x24] sm:$0xf] }
  0x7d   : > { %5972 = vmatprep.mubr.msk.bf16.mxu1 %vm703_vm4, %v5123_v47  ;;  %v2096_v62 = vsel %vm7126_vm3, %v2091_v51, %v2095_v39  ;;  %v315_v0 = vrot.slane %v313_v54, 5  ;;  %v1046_v1 = vsel %vm752_vm0, %v249_v11, 0  ;;  %v2098_v5 = vshrl.u32 %v5302_v55, 16  ;;  %v7172_v43 = vld [vmem:[%s7088_s4 + $0x28] sm:$0xf]  ;;  %s5008_s16 = scalar_lea.sflag [#allocation4], %s7084_s22 }
  0x7e   : > { %v5347_v2 = vcombine.low %v2086_v56, %v2096_v62  ;;  %v301_v3 = vrot.slane %v300_v59, 4  ;;  %v2101_v6 = vshll.u32 %v5302_v55, 16  ;;  %v310_v7 = vor.u32 %v309_v63, %v305_v52  ;;  %v7178_v46 = vld [vmem:[%s7088_s4 + $0x2c] sm:$0x1]  ;;  %s6809_s6 = scalar_lea.vmem %s8860_s24, 2048  ;;  %p9009_p0 = scmp.ne.s32.totalorder %s8937_s7, 0 }
  0x7f   : > { %v2107_v8 = vshll.u32 %v7143_v60, 16  ;;  %v2111_v9 = vshrl.u32 %v7143_v60, 16  ;;  %v2117_v10 = vshll.u32 %v7146_v61, 16  ;;  %v2100_v13 = vrot.slane %v2098_v5, 4  ;;  %p6810_p11 = scmp.ne.s32.totalorder %s8860_s24, %s6809_s6  ;;  %s6888_s9 = smov [#allocation8]  }
  0x80   : > { %6108 = vmatprep.mubr.msk.bf16.mxu0 %vm703_vm4, %v5347_v2  ;;  %v306_v12 = vsel %vm7126_vm3, %v301_v3, %v305_v52  ;;  %v2103_v11 = vrot.slane %v2101_v6, 5  ;;  %v2824_v15 = vrot.slane %v7143_v60, 5  ;;  %v311_v17 = vrot.slane %v310_v7, 4  ;;  %v223_v52 = vld [vmem:[%s7088_s4 + $0x24] sm:$0xf]  ;;  %s6813_s10 = sshll.u32 %s6888_s9, 4  ;;  %s6814_s10 = int_to_ptr.vmem [resolvable:$false] %s6813_s10 }
  0x81   : > { %v2109_v18 = vrot.slane %v2107_v8, 5  ;;  %v2113_v20 = vrot.slane %v2111_v9, 4  ;;  %v2119_v21 = vrot.slane %v2117_v10, 5  ;;  %v2827_v26 = vrot.slane %v7146_v61, 5  ;;  %p6811_p1 = pnand %p6810_p11, %p9009_p0  ;;  %s6815_s25 = scalar_lea.vmem %s6814_s10, 4096 }
  0x82   : > { %v2104_v23 = vor.u32 %v2103_v11, %v2100_v13  ;;  %v7162_v25 = vrot.slane %v2824_v15, 4  ;;  %v3026_v27 = vsel %vm752_vm0, %v7117_v24, 0  ;;  %v316_v29 = vsel %vm7126_vm3, %v311_v17, %v315_v0  ;;  %v5308_v13 = vld [vmem:[%s7088_s4 + $0x30] sm:$0xf]  ;;  %p6816_p7 = scmp.lt.s32.totalorder %s8860_s24, %s6814_s10  ;;  %p6817_p9 = scmp.lt.s32.totalorder %s6815_s25, %s6809_s6 }
  0x83   : > { %v2114_v31 = vor.u32 %v2113_v20, %v2109_v18  ;;  %v318_v32 = vshrl.u32 %v221_v16, 16  ;;  %v321_v33 = vshll.u32 %v221_v16, 16  ;;  %v5124_v35 = vcombine.low %v306_v12, %v316_v29  ;;  %v253_v12 = vld [vmem:[%s7088_s4 + $0x2c] sm:$0x1]  ;;  %p6812_p3 = pneg %p6811_p1 }
  0x84   : > { %v2105_v36 = vrot.slane %v2104_v23, 4  ;;  %v327_v37 = vshll.u32 %v222_v22, 16  ;;  %v331_v38 = vshrl.u32 %v222_v22, 16  ;;  %v337_v42 = vshll.u32 %v252_v28, 16  ;;  %p6818_p12 = por %p6817_p9, %p6816_p7 }
  0x85   : > { %v2115_v39 = vrot.slane %v2114_v31, 4  ;;  %v320_v40 = vrot.slane %v318_v32, 4  ;;  %v323_v41 = vrot.slane %v321_v33, 5  ;;  %5973 = vmatmul.mubr.msk.bf16.vlgmr.msra.gmra.mrb[0].mxu1 %vm703_vm4, %v5124_v35  ;;  %v2122_v47 = vshrl.u32 %v5305_v34, 16 }
  0x86   : > { %v2110_v24 = vsel %vm7126_vm3, %v2105_v36, %v2109_v18  ;;  %v329_v44 = vrot.slane %v327_v37, 5  ;;  %v333_v45 = vrot.slane %v331_v38, 4  ;;  %6005 = vmatpush3.bf16.msra.mxu1 %v1046_v1  ;;  %v339_v50 = vrot.slane %v337_v42, 5  ;;  %v224_v1 = vld [vmem:[%s7088_s4 + $0x28] sm:$0xf]  ;;  %p6819_p2 = pnand %p6818_p12, %p6812_p3 }
  0x87   : > { %v2120_v48 = vsel %vm7126_vm3, %v2115_v39, %v2119_v21  ;;  %v324_v49 = vor.u32 %v323_v41, %v320_v40  ;;  %v2125_v51 = vshll.u32 %v5305_v34, 16  ;;  %v2124_v55 = vrot.slane %v2122_v47, 4  ;;  %v7201_v36 = vld [vmem:[%s7088_s4 + $0x38] sm:$0x1]  ;;  %v225_v42 = vld [vmem:[%s7088_s4 + $0x30] sm:$0xf] }
  0x88   : > { %v5348_v53 = vcombine.low %v2110_v24, %v2120_v48  ;;  %v334_v54 = vor.u32 %v333_v45, %v329_v44  ;;  %v2131_v56 = vshll.u32 %v7172_v43, 16  ;;  %v2135_v63 = vshrl.u32 %v7172_v43, 16  ;;  %v226_v48 = vld [vmem:[%s7088_s4 + $0x34] sm:$0xf] }
  0x89   : > { %v325_v59 = vrot.slane %v324_v49, 4  ;;  %v2127_v62 = vrot.slane %v2125_v51, 5  ;;  %v2141_v0 = vshll.u32 %v7178_v46, 16  ;;  %v342_v5 = vshrl.u32 %v223_v52, 16 }
  0x8a   : > { %6109 = vmatmul.mubr.msk.bf16.vlgmr.msra.gmra.mrb[0].mxu0 %vm703_vm4, %v5348_v53  ;;  %v335_v2 = vrot.slane %v334_v54, 4  ;;  %v2133_v3 = vrot.slane %v2131_v56, 5  ;;  %v345_v6 = vshll.u32 %v223_v52, 16  ;;  %v2137_v9 = vrot.slane %v2135_v63, 4  ;;  %v254_v56 = vld [vmem:[%s7088_s4 + $0x38] sm:$0x1] }
  0x8b   : > { %6141 = vmatpush3.bf16.msra.mxu0 %v3026_v27  ;;  %v330_v7 = vsel %vm7126_vm3, %v325_v59, %v329_v44  ;;  %v2128_v8 = vor.u32 %v2127_v62, %v2124_v55  ;;  %v2143_v10 = vrot.slane %v2141_v0, 5  ;;  %v344_v16 = vrot.slane %v342_v5, 4  ;;  %v7195_v27 = vld [vmem:[%s7088_s4 + $0x34] sm:$0xf] }
  0x8c   : > { %v340_v11 = vsel %vm7126_vm3, %v335_v2, %v339_v50  ;;  %v347_v17 = vrot.slane %v345_v6, 5  ;;  %v351_v18 = vshll.u32 %v224_v1, 16  ;;  %v2138_v22 = vor.u32 %v2137_v9, %v2133_v3  ;;  %v5311_v2 = vld [vmem:[%s7088_s4 + $0x3c] sm:$0xf] }
  0x8d   : > { %v5125_v20 = vcombine.low %v330_v7, %v340_v11  ;;  %v2129_v21 = vrot.slane %v2128_v8, 4  ;;  %v355_v23 = vshrl.u32 %v224_v1, 16  ;;  %v361_v31 = vshll.u32 %v253_v12, 16  ;;  %v7218_v8 = vld [vmem:[%s7088_s4 + $0x40] sm:$0xf] }
  0x8e   : > { %v348_v28 = vor.u32 %v347_v17, %v344_v16  ;;  %v353_v29 = vrot.slane %v351_v18, 5  ;;  %v2146_v32 = vshrl.u32 %v5308_v13, 16  ;;  %v2139_v34 = vrot.slane %v2138_v22, 4  ;;  %v7223_v18 = vld [vmem:[%s7088_s4 + $0x44] sm:$0x1] }
  0x8f   : > { %5976 = vmatprep.mubr.msk.bf16.mxu1 %vm703_vm4, %v5125_v20  ;;  %v2134_v33 = vsel %vm7126_vm3, %v2129_v21, %v2133_v3  ;;  %v357_v35 = vrot.slane %v355_v23, 4  ;;  %v2149_v37 = vshll.u32 %v5308_v13, 16  ;;  %v363_v39 = vrot.slane %v361_v31, 5  ;;  %v7228_v31 = vld [vmem:[#allocation5 + $0xc] sm:$0x3] }
  0x90   : > { %v349_v38 = vrot.slane %v348_v28, 4  ;;  %v2148_v40 = vrot.slane %v2146_v32, 4  ;;  %v2155_v41 = vshll.u32 %v7195_v27, 16  ;;  %v2144_v24 = vsel %vm7126_vm3, %v2139_v34, %v2143_v10  ;;  %6541 = vmatprep.subr.msk.bf16.mxu0 %vm752_vm0, %v7228_v31 }
  0x91   : > { %v358_v44 = vor.u32 %v357_v35, %v353_v29  ;;  %v2151_v45 = vrot.slane %v2149_v37, 5  ;;  %v2159_v47 = vshrl.u32 %v7195_v27, 16  ;;  %v5349_v49 = vcombine.low %v2134_v33, %v2144_v24 }
  0x92   : > { %v354_v50 = vsel %vm7126_vm3, %v349_v38, %v353_v29  ;;  %v2157_v51 = vrot.slane %v2155_v41, 5  ;;  %v2165_v52 = vshll.u32 %v7201_v36, 16  ;;  %v366_v59 = vshrl.u32 %v225_v42, 16  ;;  %v227_v29 = vld [vmem:[%s7088_s4 + $0x3c] sm:$0xf] }
  0x93   : > { %v359_v53 = vrot.slane %v358_v44, 4  ;;  %v2152_v54 = vor.u32 %v2151_v45, %v2148_v40  ;;  %v2161_v55 = vrot.slane %v2159_v47, 4  ;;  %6112 = vmatprep.mubr.msk.bf16.mxu0 %vm703_vm4, %v5349_v49  ;;  %v369_v63 = vshll.u32 %v225_v42, 16  ;;  %v228_v44 = vld [vmem:[%s7088_s4 + $0x40] sm:$0xf] }
  0x94   : > { %v2167_v62 = vrot.slane %v2165_v52, 5  ;;  %v375_v0 = vshll.u32 %v226_v48, 16  ;;  %v379_v1 = vshrl.u32 %v226_v48, 16  ;;  %v368_v7 = vrot.slane %v366_v59, 4  ;;  %v5314_v52 = vld [vmem:[%s7088_s4 + $0x48] sm:$0xf] }
  0x95   : > { %v364_v3 = vsel %vm7126_vm3, %v359_v53, %v363_v39  ;;  %v2153_v5 = vrot.slane %v2152_v54, 4  ;;  %v2162_v6 = vor.u32 %v2161_v55, %v2157_v51  ;;  %v371_v10 = vrot.slane %v369_v63, 5 }
  0x96   : > { %v5126_v9 = vcombine.low %v354_v50, %v364_v3  ;;  %v377_v12 = vrot.slane %v375_v0, 5  ;;  %v381_v13 = vrot.slane %v379_v1, 4  ;;  %v385_v17 = vshll.u32 %v254_v56, 16  ;;  %v255_v50 = vld [vmem:[%s7088_s4 + $0x44] sm:$0x1] }
  0x97   : > { %v2158_v11 = vsel %vm7126_vm3, %v2153_v5, %v2157_v51  ;;  %v2163_v16 = vrot.slane %v2162_v6, 4  ;;  %v2170_v20 = vshrl.u32 %v5311_v2, 16  ;;  %v372_v21 = vor.u32 %v371_v10, %v368_v7  ;;  %v7246_v3 = vld [vmem:[%s7088_s4 + $0x4c] sm:$0xf] }
  0x98   : > { %5977 = vmatmul.mubr.msk.bf16.gmra.mrb[4].mxu1 %vm703_vm4, %v5126_v9  ;;  %v382_v22 = vor.u32 %v381_v13, %v377_v12  ;;  %v2173_v23 = vshll.u32 %v5311_v2, 16  ;;  %v2179_v28 = vshll.u32 %v7218_v8, 16  ;;  %v387_v33 = vrot.slane %v385_v17, 5  ;;  %v7251_v13 = vld [vmem:[%s7088_s4 + $0x50] sm:$0x1] }
  0x99   : > { %v2168_v32 = vsel %vm7126_vm3, %v2163_v16, %v2167_v62  ;;  %v2172_v34 = vrot.slane %v2170_v20, 4  ;;  %v2183_v35 = vshrl.u32 %v7218_v8, 16  ;;  %v373_v38 = vrot.slane %v372_v21, 4 }
  0x9a   : > { %v5350_v37 = vcombine.low %v2158_v11, %v2168_v32  ;;  %v383_v39 = vrot.slane %v382_v22, 4  ;;  %v2175_v40 = vrot.slane %v2173_v23, 5  ;;  %v2181_v41 = vrot.slane %v2179_v28, 5  ;;  %v7254_v11 = vld [vmem:[%s7088_s4 + $0x48] sm:$0xf] }
  0x9b   : > { %v2185_v42 = vrot.slane %v2183_v35, 4  ;;  %v2189_v24 = vshll.u32 %v7223_v18, 16  ;;  %v390_v45 = vshrl.u32 %v227_v29, 16  ;;  %v378_v47 = vsel %vm7126_vm3, %v373_v38, %v377_v12  ;;  %v7262_v35 = vld [vmem:[%s7088_s4 + $0x4c] sm:$0xf] }
  0x9c   : > { %6113 = vmatmul.mubr.msk.bf16.gmra.mrb[4].mxu0 %vm703_vm4, %v5350_v37  ;;  %v388_v48 = vsel %vm7126_vm3, %v383_v39, %v387_v33  ;;  %v2176_v49 = vor.u32 %v2175_v40, %v2172_v34  ;;  %v393_v51 = vshll.u32 %v227_v29, 16  ;;  %v399_v63 = vshll.u32 %v228_v44, 16 }
  0x9d   : > { %v5127_v53 = vcombine.low %v378_v47, %v388_v48  ;;  %v2186_v54 = vor.u32 %v2185_v42, %v2181_v41  ;;  %v2191_v55 = vrot.slane %v2189_v24, 5  ;;  %v392_v56 = vrot.slane %v390_v45, 4  ;;  %v5317_v48 = vld [vmem:[%s7088_s4 + $0x54] sm:$0xf] }
  0x9e   : > { %v2177_v59 = vrot.slane %v2176_v49, 4  ;;  %v395_v62 = vrot.slane %v393_v51, 5  ;;  %v403_v0 = vshrl.u32 %v228_v44, 16  ;;  %v409_v2 = vshll.u32 %v255_v50, 16 }
  0x9f   : > { %5980 = vmatprep.mubr.msk.bf16.mxu1 %vm703_vm4, %v5127_v53  ;;  %v2187_v1 = vrot.slane %v2186_v54, 4  ;;  %v2194_v5 = vshrl.u32 %v5314_v52, 16  ;;  %v2197_v6 = vshll.u32 %v5314_v52, 16  ;;  %v401_v10 = vrot.slane %v399_v63, 5  ;;  %v7276_v53 = vld [vmem:[%s7088_s4 + $0x58] sm:$0xf] }
  0xa0   : > { %v2182_v7 = vsel %vm7126_vm3, %v2177_v59, %v2181_v41  ;;  %v396_v9 = vor.u32 %v395_v62, %v392_v56  ;;  %v405_v12 = vrot.slane %v403_v0, 4  ;;  %v411_v17 = vrot.slane %v409_v2, 5  ;;  %v256_v41 = vld [vmem:[%s7088_s4 + $0x50] sm:$0x1] }
  0xa1   : > { %v2192_v16 = vsel %vm7126_vm3, %v2187_v1, %v2191_v55  ;;  %v2196_v20 = vrot.slane %v2194_v5, 4  ;;  %v2199_v21 = vrot.slane %v2197_v6, 5  ;;  %v2203_v29 = vshll.u32 %v7246_v3, 16  ;;  %v7281_v1 = vld [vmem:[%s7088_s4 + $0x5c] sm:$0x1] }
  0xa2   : > { %v5351_v22 = vcombine.low %v2182_v7, %v2192_v16  ;;  %v397_v23 = vrot.slane %v396_v9, 4  ;;  %v406_v28 = vor.u32 %v405_v12, %v401_v10  ;;  %v2207_v33 = vshrl.u32 %v7246_v3, 16 }
  0xa3   : > { %v2200_v32 = vor.u32 %v2199_v21, %v2196_v20  ;;  %v2213_v34 = vshll.u32 %v7251_v13, 16  ;;  %v414_v37 = vshrl.u32 %v7254_v11, 16  ;;  %v2205_v40 = vrot.slane %v2203_v29, 5  ;;  %v7287_v20 = vld [vmem:[%s7088_s4 + $0x54] sm:$0xf] }
  0xa4   : > { %6116 = vmatprep.mubr.msk.bf16.mxu0 %vm703_vm4, %v5351_v22  ;;  %v402_v38 = vsel %vm7126_vm3, %v397_v23, %v401_v10  ;;  %v407_v39 = vrot.slane %v406_v28, 4  ;;  %v417_v42 = vshll.u32 %v7254_v11, 16  ;;  %v2209_v44 = vrot.slane %v2207_v33, 4  ;;  %v7293_v29 = vld [vmem:[%s7088_s4 + $0x58] sm:$0xf] }
  0xa5   : > { %v2201_v24 = vrot.slane %v2200_v32, 4  ;;  %v2215_v45 = vrot.slane %v2213_v34, 5  ;;  %v416_v47 = vrot.slane %v414_v37, 4  ;;  %v423_v51 = vshll.u32 %v7262_v35, 16 }
  0xa6   : > { %v412_v49 = vsel %vm7126_vm3, %v407_v39, %v411_v17  ;;  %v419_v50 = vrot.slane %v417_v42, 5  ;;  %v427_v52 = vshrl.u32 %v7262_v35, 16  ;;  %v2210_v56 = vor.u32 %v2209_v44, %v2205_v40 }
  0xa7   : > { %v5128_v54 = vcombine.low %v402_v38, %v412_v49  ;;  %v2206_v55 = vsel %vm7126_vm3, %v2201_v24, %v2205_v40  ;;  %v433_v59 = vshll.u32 %v256_v41, 16  ;;  %v425_v63 = vrot.slane %v423_v51, 5  ;;  %v257_v40 = vld [vmem:[%s7088_s4 + $0x5c] sm:$0x1] }
  0xa8   : > { %v420_v62 = vor.u32 %v419_v50, %v416_v47  ;;  %v429_v0 = vrot.slane %v427_v52, 4  ;;  %v2218_v2 = vshrl.u32 %v5317_v48, 16  ;;  %v2211_v5 = vrot.slane %v2210_v56, 4  ;;  %v7306_v49 = vld [vmem:[#allocation5 + $0x4] sm:$0x3] }
  0xa9   : > { %5981 = vmatmul.mubr.msk.bf16.gmra.mrb[8].mxu1 %vm703_vm4, %v5128_v54  ;;  %v435_v6 = vrot.slane %v433_v59, 5  ;;  %v2221_v7 = vshll.u32 %v5317_v48, 16  ;;  %v2227_v9 = vshll.u32 %v7276_v53, 16  ;;  %v2231_v17 = vshrl.u32 %v7276_v53, 16  ;;  %v5320_v48 = vld [vmem:[%s7088_s4 + $0x60] sm:$0xf]  ;;  %6536 = vmatprep.subr.msk.bf16.mxu1 %vm752_vm0, %v7306_v49 }
  0xaa   : > { %v421_v10 = vrot.slane %v420_v62, 4  ;;  %v430_v12 = vor.u32 %v429_v0, %v425_v63  ;;  %v2220_v16 = vrot.slane %v2218_v2, 4  ;;  %v2216_v21 = vsel %vm7126_vm3, %v2211_v5, %v2215_v45  ;;  %v7317_v5 = vld [vmem:[%s7088_s4 + $0x68] sm:$0x1] }
  0xab   : > { %v2223_v22 = vrot.slane %v2221_v7, 5  ;;  %v2229_v23 = vrot.slane %v2227_v9, 5  ;;  %v2237_v28 = vshll.u32 %v7281_v1, 16  ;;  %v5352_v32 = vcombine.low %v2206_v55, %v2216_v21  ;;  %v7309_v55 = vld [vmem:[%s7088_s4 + $0x64] sm:$0xf] }
  0xac   : > { %v426_v33 = vsel %vm7126_vm3, %v421_v10, %v425_v63  ;;  %v431_v34 = vrot.slane %v430_v12, 4  ;;  %v2233_v37 = vrot.slane %v2231_v17, 4  ;;  %v438_v41 = vshrl.u32 %v7287_v20, 16  ;;  %v7323_v17 = vld [vmem:[%s7088_s4 + $0x60] sm:$0xf] }
  0xad   : > { %v2224_v38 = vor.u32 %v2223_v22, %v2220_v16  ;;  %v2239_v39 = vrot.slane %v2237_v28, 5  ;;  %v441_v42 = vshll.u32 %v7287_v20, 16  ;;  %vm1257_vm5 = vcmask 1042432   ;;  %6117 = vmatmul.mubr.msk.bf16.gmra.mrb[8].mxu0 %vm703_vm4, %v5352_v32 }
  0xae   : > { %vm1258_vm6 = vcmask 1046532   ;;  %v436_v24 = vsel %vm7126_vm3, %v431_v34, %v435_v6  ;;  %v2234_v44 = vor.u32 %v2233_v37, %v2229_v23  ;;  %v447_v45 = vshll.u32 %v7293_v29, 16 }
  0xaf   : > { %v451_v47 = vshrl.u32 %v7293_v29, 16  ;;  %v5129_v50 = vcombine.low %v426_v33, %v436_v24  ;;  %v2225_v51 = vrot.slane %v2224_v38, 4  ;;  %v440_v52 = vrot.slane %v438_v41, 4  ;;  %v258_v41 = vld [vmem:[%s7088_s4 + $0x68] sm:$0x1]  ;;  %vm7346_vm7 = vmor %vm1257_vm5, %vm1258_vm6 }
  0xb0   : > { %v443_v54 = vrot.slane %v441_v42, 5  ;;  %v2235_v56 = vrot.slane %v2234_v44, 4  ;;  %v449_v59 = vrot.slane %v447_v45, 5  ;;  %v457_v63 = vshll.u32 %v257_v40, 16 }
  0xb1   : > { %v453_v62 = vrot.slane %v451_v47, 4  ;;  %5984 = vmatprep.mubr.msk.bf16.mxu1 %vm703_vm4, %v5129_v50  ;;  %v2230_v0 = vsel %vm7126_vm3, %v2225_v51, %v2229_v23  ;;  %v2242_v6 = vshrl.u32 %v5320_v48, 16  ;;  %v2245_v7 = vshll.u32 %v5320_v48, 16  ;;  %v7326_v23 = vld [vmem:[%s7088_s4 + $0x64] sm:$0xf] }
  0xb2   : > { %v444_v2 = vor.u32 %v443_v54, %v440_v52  ;;  %v2240_v9 = vsel %vm7126_vm3, %v2235_v56, %v2239_v39  ;;  %v459_v12 = vrot.slane %v457_v63, 5  ;;  %v2251_v16 = vshll.u32 %v7309_v55, 16  ;;  %v5379_v50 = vld [vmem:[%s7088_s4 + $0xc] sm:$0xe] }
  0xb3   : > { %v454_v10 = vor.u32 %v453_v62, %v449_v59  ;;  %v5353_v21 = vcombine.low %v2230_v0, %v2240_v9  ;;  %v2244_v28 = vrot.slane %v2242_v6, 4  ;;  %v2247_v32 = vrot.slane %v2245_v7, 5 }
  0xb4   : > { %v445_v22 = vrot.slane %v444_v2, 4  ;;  %v2253_v34 = vrot.slane %v2251_v16, 5  ;;  %v2255_v37 = vshrl.u32 %v7309_v55, 16  ;;  %v2261_v38 = vshll.u32 %v7317_v5, 16 }
  0xb5   : > { %v455_v33 = vrot.slane %v454_v10, 4  ;;  %6120 = vmatprep.mubr.msk.bf16.mxu0 %vm703_vm4, %v5353_v21  ;;  %v2248_v40 = vor.u32 %v2247_v32, %v2244_v28  ;;  %v462_v42 = vshrl.u32 %v7323_v17, 16  ;;  %v465_v24 = vshll.u32 %v7323_v17, 16  ;;  %v7356_v28 = vld [vmem:[%s7088_s4 + $0x70] sm:$0xf] }
  0xb6   : > { %v450_v39 = vsel %vm7126_vm3, %v445_v22, %v449_v59  ;;  %v2257_v45 = vrot.slane %v2255_v37, 4  ;;  %v2263_v47 = vrot.slane %v2261_v38, 5  ;;  %v471_v48 = vshll.u32 %v7326_v23, 16  ;;  %v7341_v59 = vld [vmem:[%s7088_s4 + $0x6c] sm:$0xf] }
  0xb7   : > { %v460_v44 = vsel %vm7126_vm3, %v455_v33, %v459_v12  ;;  %v2249_v52 = vrot.slane %v2248_v40, 4  ;;  %v464_v54 = vrot.slane %v462_v42, 4  ;;  %v467_v56 = vrot.slane %v465_v24, 5  ;;  %v259_v38 = vld [vmem:[%s7088_s4 + $0x74] sm:$0x1] }
  0xb8   : > { %v5130_v51 = vcombine.low %v450_v39, %v460_v44  ;;  %v2258_v62 = vor.u32 %v2257_v45, %v2253_v34  ;;  %v473_v63 = vrot.slane %v471_v48, 5  ;;  %v475_v0 = vshrl.u32 %v7326_v23, 16  ;;  %v5380_v40 = vld [vmem:[%s7088_s4 + $0x18] sm:$0xe]  ;;  %v7379_v48 = vld [vmem:[%s7088_s4 + $0x7c] sm:$0xf] }
  0xb9   : > { %v481_v2 = vshll.u32 %v258_v41, 16  ;;  %v2254_v7 = vsel %vm7126_vm3, %v2249_v52, %v2253_v34  ;;  %v468_v9 = vor.u32 %v467_v56, %v464_v54  ;;  %v5395_v10 = vrot.slane %v5379_v50, 9  ;;  %v260_v54 = vld [vmem:[%s7088_s4 + $0x80] sm:$0x1]  ;;  %v5381_v56 = vld [vmem:[%s7088_s4 + $0x24] sm:$0xe] }
  0xba   : > { %5985 = vmatmul.mubr.msk.bf16.gmra.mrb[12].mxu1 %vm703_vm4, %v5130_v51  ;;  %v2819_v12 = vrot.slane %v2817_v57, 4  ;;  %v2259_v16 = vrot.slane %v2258_v62, 4  ;;  %v477_v21 = vrot.slane %v475_v0, 4  ;;  %v486_v32 = vshrl.u32 %v7341_v59, 16 }
  0xbb   : > { %v483_v22 = vrot.slane %v481_v2, 5  ;;  %v469_v33 = vrot.slane %v468_v9, 4  ;;  %v2818_v34 = vsel %vm7346_vm7, %v5395_v10, %v2817_v57  ;;  %v489_v39 = vshll.u32 %v7341_v59, 16 }
  0xbc   : > { %v2821_v37 = vsel %vm7346_vm7, %v2819_v12, %v2820_v58  ;;  %v2264_v41 = vsel %vm7126_vm3, %v2259_v16, %v2263_v47  ;;  %v478_v42 = vor.u32 %v477_v21, %v473_v63  ;;  %v488_v14 = vrot.slane %v486_v32, 4  ;;  %v7376_v58 = vld [vmem:[%s7088_s4 + $0x78] sm:$0xf]  ;;  %v7400_v12 = vld [vmem:[%s7088_s4 + $0x84] sm:$0xf] }
  0xbd   : > { %v5411_v24 = vcombine.low %v2818_v34, %v2821_v37  ;;  %v5354_v44 = vcombine.low %v2254_v7, %v2264_v41  ;;  %v474_v57 = vsel %vm7126_vm3, %v469_v33, %v473_v63  ;;  %v491_v19 = vrot.slane %v489_v39, 5 }
  0xbe   : > { %v495_v45 = vshll.u32 %v7356_v28, 16  ;;  %v479_v50 = vrot.slane %v478_v42, 4  ;;  %v499_v51 = vshrl.u32 %v7356_v28, 16  ;;  %v505_v52 = vshll.u32 %v259_v38, 16  ;;  %v7410_v38 = vld [vmem:[%s7088_s4 + $0x88] sm:$0xf] }
  0xbf   : > { %v5396_v47 = vrot.slane %v5380_v40, 9  ;;  %6121 = vmatmul.mubr.msk.bf16.gmra.mrb[12].mxu0 %vm703_vm4, %v5354_v44  ;;  %v492_v62 = vor.u32 %v491_v19, %v488_v14  ;;  %v2828_v63 = vsel %vm7346_vm7, %v7162_v25, %v2827_v26  ;;  %v3385_v2 = vsel %vm752_vm0, %v7228_v31, 0  ;;  %v5382_v14 = vld [vmem:[%s7088_s4 + $0x30] sm:$0xe]  ;;  %v7414_v44 = vld [vmem:[#allocation5 + $0xe] sm:$0x3] }
  0xc0   : > { %v497_v0 = vrot.slane %v495_v45, 5  ;;  %v484_v7 = vsel %vm7126_vm3, %v479_v50, %v483_v22  ;;  %6142 = vmatprep.mubr.msk.bf16.mxu0 %vm703_vm4, %v5411_v24  ;;  %v501_v9 = vrot.slane %v499_v51, 4  ;;  %v507_v10 = vrot.slane %v505_v52, 5  ;;  %v261_v24 = vld [vmem:[%s7088_s4 + $0x8c] sm:$0x1] }
  0xc1   : > { %v2825_v61 = vsel %vm7346_vm7, %v5396_v47, %v2824_v15  ;;  %v5131_v16 = vcombine.low %v474_v57, %v484_v7  ;;  %v493_v25 = vrot.slane %v492_v62, 4  ;;  %v510_v31 = vshrl.u32 %v7376_v58, 16 }
  0xc2   : > { %v5412_v26 = vcombine.low %v2825_v61, %v2828_v63  ;;  %v502_v21 = vor.u32 %v501_v9, %v497_v0  ;;  %v513_v22 = vshll.u32 %v7376_v58, 16  ;;  %v519_v32 = vshll.u32 %v7379_v48, 16 }
  0xc3   : > { %v523_v60 = vshrl.u32 %v7379_v48, 16  ;;  %5988 = vmatprep.mubr.msk.bf16.mxu1 %vm703_vm4, %v5131_v16  ;;  %v498_v15 = vsel %vm7126_vm3, %v493_v25, %v497_v0  ;;  %v512_v33 = vrot.slane %v510_v31, 4  ;;  %v529_v34 = vshll.u32 %v260_v54, 16 }
  0xc4   : > { %v5397_v37 = vrot.slane %v5381_v56, 9  ;;  %v503_v39 = vrot.slane %v502_v21, 4  ;;  %v515_v40 = vrot.slane %v513_v22, 5  ;;  %v521_v41 = vrot.slane %v519_v32, 5  ;;  %v7440_v32 = vld [vmem:[%s7088_s4 + $0x94] sm:$0xf] }
  0xc5   : > { %v525_v42 = vrot.slane %v523_v60, 4  ;;  %v531_v57 = vrot.slane %v529_v34, 5  ;;  %v2831_v19 = vrot.slane %v7172_v43, 5  ;;  %v2834_v45 = vrot.slane %v7178_v46, 5  ;;  %v7426_v43 = vld [vmem:[%s7088_s4 + $0x90] sm:$0xf] }
  0xc6   : > { %v534_v50 = vshrl.u32 %v7400_v12, 16  ;;  %v508_v51 = vsel %vm7126_vm3, %v503_v39, %v507_v10  ;;  %v516_v52 = vor.u32 %v515_v40, %v512_v33  ;;  %v537_v54 = vshll.u32 %v7400_v12, 16 }
  0xc7   : > { %v526_v47 = vor.u32 %v525_v42, %v521_v41  ;;  %v5132_v56 = vcombine.low %v498_v15, %v508_v51  ;;  %6143 = vmatmul.mubr.msk.bf16.vlgmr.msra.gmra.mrb[0].mxu0 %vm703_vm4, %v5412_v26  ;;  %v2832_v62 = vsel %vm7346_vm7, %v5397_v37, %v2831_v19  ;;  %v2833_v0 = vrot.slane %v2831_v19, 4  ;;  %v262_v37 = vld [vmem:[%s7088_s4 + $0x98] sm:$0x1] }
  0xc8   : > { %v536_v63 = vrot.slane %v534_v50, 4  ;;  %6175 = vmatpush3.bf16.msra.mxu0 %v3385_v2  ;;  %v517_v46 = vrot.slane %v516_v52, 4  ;;  %v539_v9 = vrot.slane %v537_v54, 5  ;;  %v543_v10 = vshll.u32 %v7410_v38, 16  ;;  %v7457_v52 = vld [vmem:[%s7088_s4 + $0x9c] sm:$0xf] }
  0xc9   : > { %v527_v7 = vrot.slane %v526_v47, 4  ;;  %5989 = vmatmul.mubr.msk.bf16.gmra.mrb[16].mxu1 %vm703_vm4, %v5132_v56  ;;  %v2835_v61 = vsel %vm7346_vm7, %v2833_v0, %v2834_v45  ;;  %v547_v16 = vshrl.u32 %v7410_v38, 16  ;;  %v553_v25 = vshll.u32 %v261_v24, 16  ;;  %6542 = vmatprep.subr.msk.bf16.mxu0 %vm752_vm0, %v7414_v44  ;;  %v5383_v45 = vld [vmem:[%s7088_s4 + $0x3c] sm:$0xe] }
  0xca   : > { %v5398_v26 = vrot.slane %v5382_v14, 9  ;;  %v522_v2 = vsel %vm7126_vm3, %v517_v46, %v521_v41  ;;  %v5413_v21 = vcombine.low %v2832_v62, %v2835_v61  ;;  %v540_v22 = vor.u32 %v539_v9, %v536_v63  ;;  %v7460_v0 = vld [vmem:[%s7088_s4 + $0xa0] sm:$0xf] }
  0xcb   : > { %v532_v31 = vsel %vm7126_vm3, %v527_v7, %v531_v57  ;;  %v545_v15 = vrot.slane %v543_v10, 5  ;;  %v549_v33 = vrot.slane %v547_v16, 4  ;;  %v555_v34 = vrot.slane %v553_v25, 5 }
  0xcc   : > { %v5133_v60 = vcombine.low %v522_v2, %v532_v31  ;;  %6146 = vmatprep.mubr.msk.bf16.mxu0 %vm703_vm4, %v5413_v21  ;;  %v541_v39 = vrot.slane %v540_v22, 4  ;;  %v2838_v40 = vrot.slane %v7195_v27, 5  ;;  %v2841_v41 = vrot.slane %v7201_v36, 5 }
  0xcd   : > { %v558_v42 = vshrl.u32 %v7426_v43, 16  ;;  %v550_v24 = vor.u32 %v549_v33, %v545_v15  ;;  %v561_v14 = vshll.u32 %v7426_v43, 16  ;;  %v567_v57 = vshll.u32 %v7440_v32, 16 }
  0xce   : > { %5992 = vmatprep.mubr.msk.bf16.mxu1 %vm703_vm4, %v5133_v60  ;;  %v571_v19 = vshrl.u32 %v7440_v32, 16  ;;  %v546_v50 = vsel %vm7126_vm3, %v541_v39, %v545_v15  ;;  %v2839_v27 = vsel %vm7346_vm7, %v5398_v26, %v2838_v40  ;;  %v2840_v36 = vrot.slane %v2838_v40, 4  ;;  %v263_v26 = vld [vmem:[%s7088_s4 + $0xa4] sm:$0x1]  ;;  %v5384_v60 = vld [vmem:[%s7088_s4 + $0x48] sm:$0xe] }
  0xcf   : > { %v560_v51 = vrot.slane %v558_v42, 4  ;;  %v551_v47 = vrot.slane %v550_v24, 4  ;;  %v563_v54 = vrot.slane %v561_v14, 5  ;;  %v569_v56 = vrot.slane %v567_v57, 5 }
  0xd0   : > { %v573_v62 = vrot.slane %v571_v19, 4  ;;  %v2842_v63 = vsel %vm7346_vm7, %v2840_v36, %v2841_v41  ;;  %v577_v46 = vshll.u32 %v262_v37, 16  ;;  %v5399_v7 = vrot.slane %v5383_v45, 9  ;;  %v7475_v37 = vld [vmem:[%s7088_s4 + $0xa8] sm:$0xf] }
  0xd1   : > { %v2845_v9 = vrot.slane %v7218_v8, 5  ;;  %v556_v10 = vsel %vm7126_vm3, %v551_v47, %v555_v34  ;;  %v5414_v61 = vcombine.low %v2839_v27, %v2842_v63  ;;  %v564_v16 = vor.u32 %v563_v54, %v560_v51  ;;  %v7488_v19 = vld [vmem:[%s7088_s4 + $0xac] sm:$0xf]  ;;  %v264_v51 = vld [vmem:[%s7088_s4 + $0xb0] sm:$0x1] }
  0xd2   : > { %v574_v25 = vor.u32 %v573_v62, %v569_v56  ;;  %v5134_v2 = vcombine.low %v546_v50, %v556_v10  ;;  %v579_v31 = vrot.slane %v577_v46, 5  ;;  %v2848_v33 = vrot.slane %v7223_v18, 5 }
  0xd3   : > { %v2846_v21 = vsel %vm7346_vm7, %v5399_v7, %v2845_v9  ;;  %v2847_v22 = vrot.slane %v2845_v9, 4  ;;  %6147 = vmatmul.mubr.msk.bf16.gmra.mrb[4].mxu0 %vm703_vm4, %v5414_v61  ;;  %v565_v15 = vrot.slane %v564_v16, 4  ;;  %v582_v34 = vshrl.u32 %v7457_v52, 16 }
  0xd4   : > { %v575_v8 = vrot.slane %v574_v25, 4  ;;  %5993 = vmatmul.mubr.msk.bf16.gmra.mrb[20].mxu1 %vm703_vm4, %v5134_v2  ;;  %v585_v39 = vshll.u32 %v7457_v52, 16  ;;  %v591_v40 = vshll.u32 %v7460_v0, 16  ;;  %v595_v41 = vshrl.u32 %v7460_v0, 16 }
  0xd5   : > { %v601_v42 = vshll.u32 %v263_v26, 16  ;;  %v570_v24 = vsel %vm7126_vm3, %v565_v15, %v569_v56  ;;  %v2849_v14 = vsel %vm7346_vm7, %v2847_v22, %v2848_v33  ;;  %v584_v57 = vrot.slane %v582_v34, 4 }
  0xd6   : > { %v580_v18 = vsel %vm7126_vm3, %v575_v8, %v579_v31  ;;  %v5415_v50 = vcombine.low %v2846_v21, %v2849_v14  ;;  %v587_v27 = vrot.slane %v585_v39, 5  ;;  %v593_v36 = vrot.slane %v591_v40, 5  ;;  %v7507_v40 = vld [vmem:[%s7088_s4 + $0xb4] sm:$0xf]  ;;  %v7513_v14 = vld [vmem:[%s7088_s4 + $0xb8] sm:$0xf] }
  0xd7   : > { %v5135_v45 = vcombine.low %v570_v24, %v580_v18  ;;  %v597_v47 = vrot.slane %v595_v41, 4  ;;  %v603_v54 = vrot.slane %v601_v42, 5  ;;  %v5400_v62 = vrot.slane %v5384_v60, 9 }
  0xd8   : > { %v2852_v56 = vrot.slane %v7246_v3, 5  ;;  %6150 = vmatprep.mubr.msk.bf16.mxu0 %vm703_vm4, %v5415_v50  ;;  %v588_v63 = vor.u32 %v587_v27, %v584_v57  ;;  %v2855_v46 = vrot.slane %v7251_v13, 5  ;;  %v606_v7 = vshrl.u32 %v7475_v37, 16  ;;  %v5385_v3 = vld [vmem:[%s7088_s4 + $0x54] sm:$0xe] }
  0xd9   : > { %5996 = vmatprep.mubr.msk.bf16.mxu1 %vm703_vm4, %v5135_v45  ;;  %v609_v9 = vshll.u32 %v7475_v37, 16  ;;  %v598_v10 = vor.u32 %v597_v47, %v593_v36  ;;  %v615_v25 = vshll.u32 %v7488_v19, 16  ;;  %v619_v21 = vshrl.u32 %v7488_v19, 16 }
  0xda   : > { %v2853_v61 = vsel %vm7346_vm7, %v5400_v62, %v2852_v56  ;;  %v2854_v16 = vrot.slane %v2852_v56, 4  ;;  %v589_v26 = vrot.slane %v588_v63, 4  ;;  %v608_v2 = vrot.slane %v606_v7, 4 }
  0xdb   : > { %v611_v31 = vrot.slane %v609_v9, 5  ;;  %v599_v13 = vrot.slane %v598_v10, 4  ;;  %v617_v60 = vrot.slane %v615_v25, 5  ;;  %v625_v15 = vshll.u32 %v264_v51, 16 }
  0xdc   : > { %v2856_v22 = vsel %vm7346_vm7, %v2854_v16, %v2855_v46  ;;  %v594_v8 = vsel %vm7126_vm3, %v589_v26, %v593_v36  ;;  %v621_v39 = vrot.slane %v619_v21, 4  ;;  %v5401_v24 = vrot.slane %v5385_v3, 9  ;;  %v7518_v36 = vld [vmem:[%s7088_s4 + $0xbc] sm:$0x1]  ;;  %v5386_v46 = vld [vmem:[%s7088_s4 + $0x60] sm:$0xe] }
  0xdd   : > { %v5416_v33 = vcombine.low %v2853_v61, %v2856_v22  ;;  %v612_v34 = vor.u32 %v611_v31, %v608_v2  ;;  %v604_v41 = vsel %vm7126_vm3, %v599_v13, %v603_v54  ;;  %v627_v42 = vrot.slane %v625_v15, 5  ;;  %v5387_v16 = vld [vmem:[%s7088_s4 + $0x6c] sm:$0xe]  ;;  %v5324_v31 = vld [vmem:[%s7088_s4 + $0x70] sm:$0xf] }
  0xde   : > { %v2859_v18 = vrot.slane %v7276_v53, 5  ;;  %v5136_v57 = vcombine.low %v594_v8, %v604_v41  ;;  %v622_v50 = vor.u32 %v621_v39, %v617_v60  ;;  %v2862_v27 = vrot.slane %v7281_v1, 5  ;;  %v5325_v21 = vld [vmem:[%s7088_s4 + $0x74] sm:$0x1] }
  0xdf   : > { %6151 = vmatmul.mubr.msk.bf16.gmra.mrb[8].mxu0 %vm703_vm4, %v5416_v33  ;;  %v613_v45 = vrot.slane %v612_v34, 4  ;;  %v630_v54 = vshrl.u32 %v7507_v40, 16  ;;  %v633_v53 = vshll.u32 %v7507_v40, 16  ;;  %v639_v1 = vshll.u32 %v7513_v14, 16 }
  0xe0   : > { %v2860_v51 = vsel %vm7346_vm7, %v5401_v24, %v2859_v18  ;;  %v2861_v47 = vrot.slane %v2859_v18, 4  ;;  %5997 = vmatmul.mubr.msk.bf16.gmra.mrb[24].mxu1 %vm703_vm4, %v5136_v57  ;;  %v623_v56 = vrot.slane %v622_v50, 4  ;;  %v643_v63 = vshrl.u32 %v7513_v14, 16 }
  0xe1   : > { %v618_v62 = vsel %vm7126_vm3, %v613_v45, %v617_v60  ;;  %v632_v9 = vrot.slane %v630_v54, 4  ;;  %v635_v10 = vrot.slane %v633_v53, 5  ;;  %v649_v61 = vshll.u32 %v7518_v36, 16  ;;  %v6668_v54 = vld [vmem:[%s7088_s4] sm:$0xf] }
  0xe2   : > { %v2863_v7 = vsel %vm7346_vm7, %v2861_v47, %v2862_v27  ;;  %v628_v25 = vsel %vm7126_vm3, %v623_v56, %v627_v42  ;;  %v641_v26 = vrot.slane %v639_v1, 5  ;;  %v645_v2 = vrot.slane %v643_v63, 4  ;;  %v5388_v27 = vld [vmem:[%s7088_s4 + $0x78] sm:$0xe]  ;;  %v7555_v53 = vld [vmem:[%s7088_s4 + $0x4] sm:$0xf] }
  0xe3   : > { %v5417_v3 = vcombine.low %v2860_v51, %v2863_v7  ;;  %v5137_v13 = vcombine.low %v618_v62, %v628_v25  ;;  %v636_v22 = vor.u32 %v635_v10, %v632_v9  ;;  %v651_v60 = vrot.slane %v649_v61, 5  ;;  %v7559_v56 = vld [vmem:[%s7088_s4 + $0x7c] sm:$0xf]  ;;  %v7562_v1 = vld [vmem:[%s7088_s4 + $0x80] sm:$0x1] }
  0xe4   : > { %v5402_v15 = vrot.slane %v5386_v46, 9  ;;  %v646_v8 = vor.u32 %v645_v2, %v641_v26  ;;  %v2866_v33 = vrot.slane %v7309_v55, 5  ;;  %v2869_v34 = vrot.slane %v7317_v5, 5  ;;  %v5389_v63 = vld [vmem:[%s7088_s4 + $0x84] sm:$0xe] }
  0xe5   : > { %6154 = vmatprep.mubr.msk.bf16.mxu0 %vm703_vm4, %v5417_v3  ;;  %v5403_v39 = vrot.slane %v5387_v16, 9  ;;  %6000 = vmatprep.mubr.msk.bf16.mxu1 %vm703_vm4, %v5137_v13  ;;  %v637_v41 = vrot.slane %v636_v22, 4  ;;  %v2873_v42 = vrot.slane %v5324_v31, 5  ;;  %v2876_v24 = vrot.slane %v5325_v21, 5  ;;  %v5330_v10 = vld [vmem:[%s7088_s4 + $0x88] sm:$0xf] }
  0xe6   : > { %v647_v18 = vrot.slane %v646_v8, 4  ;;  %v2867_v57 = vsel %vm7346_vm7, %v5402_v15, %v2866_v33  ;;  %v2868_v45 = vrot.slane %v2866_v33, 4  ;;  %v5155_v62 = vcombine.low %v6668_v54, %v7555_v53  ;;  %v5331_v61 = vld [vmem:[%s7088_s4 + $0x8c] sm:$0x1]  ;;  %v5333_v3 = vld [vmem:[%s7088_s4 + $0x94] sm:$0xf] }
  0xe7   : > { %v642_v55 = vsel %vm7126_vm3, %v637_v41, %v641_v26  ;;  %v2874_v5 = vsel %vm7346_vm7, %v5403_v39, %v2873_v42  ;;  %v2875_v50 = vrot.slane %v2873_v42, 4  ;;  %v5404_v25 = vrot.slane %v5388_v27, 9  ;;  %v5334_v22 = vld [vmem:[%s7088_s4 + $0x98] sm:$0x1]  ;;  %v6670_v39 = vld [vmem:[%s7088_s4 + $0xc] sm:$0xf] }
  0xe8   : > { %v652_v51 = vsel %vm7126_vm3, %v647_v18, %v651_v60  ;;  %v2870_v47 = vsel %vm7346_vm7, %v2868_v45, %v2869_v34  ;;  %v2880_v26 = vrot.slane %v7559_v56, 5  ;;  %v2883_v2 = vrot.slane %v7562_v1, 5  ;;  %v5390_v60 = vld [vmem:[%s7088_s4 + $0x90] sm:$0xe]  ;;  %v5336_v34 = vld [vmem:[%s7088_s4 + $0xa0] sm:$0xf] }
  0xe9   : > { %v5138_v46 = vcombine.low %v642_v55, %v652_v51  ;;  %v5418_v7 = vcombine.low %v2867_v57, %v2870_v47  ;;  %v2877_v9 = vsel %vm7346_vm7, %v2875_v50, %v2876_v24  ;;  %v5405_v31 = vrot.slane %v5389_v63, 9  ;;  %v7583_v41 = vld [vmem:[%s7088_s4 + $0x10] sm:$0xf]  ;;  %v5337_v57 = vld [vmem:[%s7088_s4 + $0xa4] sm:$0x1] }
  0xea   : > { %v5419_v16 = vcombine.low %v2874_v5, %v2877_v9  ;;  %v2887_v21 = vrot.slane %v5330_v10, 5  ;;  %v2890_v13 = vrot.slane %v5331_v61, 5  ;;  %v2881_v15 = vsel %vm7346_vm7, %v5404_v25, %v2880_v26  ;;  %v5391_v45 = vld [vmem:[%s7088_s4 + $0x9c] sm:$0xe]  ;;  %v6672_v5 = vld [vmem:[%s7088_s4 + $0x18] sm:$0xf] }
  0xeb   : > { %6001 = vmatmul.mubr.msk.bf16.gmra.mrb[28].mxu1 %vm703_vm4, %v5138_v46  ;;  %6155 = vmatmul.mubr.msk.bf16.gmra.mrb[12].mxu0 %vm703_vm4, %v5418_v7  ;;  %v2882_v8 = vrot.slane %v2880_v26, 4  ;;  %v2894_v33 = vrot.slane %v5333_v3, 5  ;;  %v5156_v42 = vcombine.low %v6670_v39, %v7583_v41  ;;  %v7594_v50 = vld [vmem:[%s7088_s4 + $0x1c] sm:$0xf]  ;;  %v5406_v51 = vrot.slane %v5390_v60, 9 }
  0xec   : > { %6006 = vmatprep.mubr.msk.bf16.mxu1 %vm703_vm4, %v5155_v62  ;;  %6158 = vmatprep.mubr.msk.bf16.mxu0 %vm703_vm4, %v5419_v16  ;;  %v2888_v24 = vsel %vm7346_vm7, %v5405_v31, %v2887_v21  ;;  %v2889_v18 = vrot.slane %v2887_v21, 4  ;;  %v5157_v27 = vcombine.low %v6672_v5, %v7594_v50  ;;  %v2897_v47 = vrot.slane %v5334_v22, 5  ;;  %v5339_v7 = vld [vmem:[%s7088_s4 + $0xac] sm:$0xf]  ;;  %v5342_v9 = vld [vmem:[%s7088_s4 + $0xb8] sm:$0xf] }
  0xed   : > { %v2884_v55 = vsel %vm7346_vm7, %v2882_v8, %v2883_v2  ;;  %v2896_v63 = vrot.slane %v2894_v33, 4  ;;  %v2901_v46 = vrot.slane %v5336_v34, 5  ;;  %v1471_v10 = vsel %vm752_vm0, %v7306_v49, 0  ;;  %v7603_v26 = vld [vmem:[#allocation5 + $0x6] sm:$0x3] }
  0xee   : > { %v5420_v54 = vcombine.low %v2881_v15, %v2884_v55  ;;  %v2891_v62 = vsel %vm7346_vm7, %v2889_v18, %v2890_v13  ;;  %v5407_v16 = vrot.slane %v5391_v45, 9  ;;  %v2904_v25 = vrot.slane %v5337_v57, 5  ;;  %v5340_v31 = vld [vmem:[%s7088_s4 + $0xb0] sm:$0x1]  ;;  %v5392_v60 = vld [vmem:[%s7088_s4 + $0xa8] sm:$0xe] }
  0xef   : > { %v5421_v61 = vcombine.low %v2888_v24, %v2891_v62  ;;  %v2903_v3 = vrot.slane %v2901_v46, 4  ;;  %v2895_v49 = vsel %vm7346_vm7, %v5406_v51, %v2894_v33  ;;  %v2898_v2 = vsel %vm7346_vm7, %v2896_v63, %v2897_v47  ;;  %v5343_v8 = vld [vmem:[%s7088_s4 + $0xbc] sm:$0x1]  ;;  %v5393_v33 = vld [vmem:[%s7088_s4 + $0xb4] sm:$0xe] }
  0xf0   : > { %v2908_v21 = vrot.slane %v5339_v7, 5  ;;  %v2902_v13 = vsel %vm7346_vm7, %v5407_v16, %v2901_v46  ;;  %v2915_v15 = vrot.slane %v5342_v9, 5  ;;  %v6674_v34 = vld [vmem:[%s7088_s4 + $0x24] sm:$0xf]  ;;  %v7625_v39 = vld [vmem:[%s7088_s4 + $0x28] sm:$0xf]  ;;  %v5422_v24 = vcombine.low %v2895_v49, %v2898_v2 }
  0xf1   : > { %v2905_v22 = vsel %vm7346_vm7, %v2903_v3, %v2904_v25  ;;  %v6676_v18 = vld [vmem:[%s7088_s4 + $0x30] sm:$0xf]  ;;  %v7630_v57 = vld [vmem:[%s7088_s4 + $0x34] sm:$0xf]  ;;  %v5345_v55 = vld [vmem:[%s7088_s4 + $0xc4] sm:$0xf] }
  0xf2   : > { %v5159_v45 = vcombine.low %v6676_v18, %v7630_v57  ;;  %v5423_v5 = vcombine.low %v2902_v13, %v2905_v22  ;;  %v2910_v51 = vrot.slane %v2908_v21, 4  ;;  %v2911_v47 = vrot.slane %v5340_v31, 5  ;;  %v5346_v16 = vld [vmem:[%s7088_s4 + $0xc8] sm:$0x1]  ;;  %v5394_v25 = vld [vmem:[%s7088_s4 + $0xc0] sm:$0xe] }
  0xf3   : > { %6007 = vmatmul.mubr.msk.bf16.vlgmr.msra.gmra.mrb[0].mxu1 %vm703_vm4, %v5156_v42  ;;  %6159 = vmatmul.mubr.msk.bf16.gmra.mrb[16].mxu0 %vm703_vm4, %v5420_v54  ;;  %v5158_v42 = vcombine.low %v6674_v34, %v7625_v39  ;;  %v5409_v54 = vrot.slane %v5393_v33, 9  ;;  %v2917_v62 = vrot.slane %v2915_v15, 4  ;;  %v2918_v63 = vrot.slane %v5343_v8, 5  ;;  %v6678_v3 = vld [vmem:[%s7088_s4 + $0x3c] sm:$0xf] }
  0xf4   : > { %6039 = vmatpush3.bf16.msra.mxu1 %v1471_v10  ;;  %6010 = vmatprep.mubr.msk.bf16.mxu1 %vm703_vm4, %v5157_v27  ;;  %v5408_v27 = vrot.slane %v5392_v60, 9  ;;  %v2912_v7 = vsel %vm7346_vm7, %v2910_v51, %v2911_v47  ;;  %v2922_v9 = vrot.slane %v5345_v55, 5  ;;  %v7650_v49 = vld [vmem:[%s7088_s4 + $0x40] sm:$0xf]  ;;  %v5410_v22 = vrot.slane %v5394_v25, 9  ;;  %v6631_v25 = vld [vmem:[%s7088_s4 + $0x24] sm:$0xff]  }
  0xf5   : > { %6162 = vmatprep.mubr.msk.bf16.mxu0 %vm703_vm4, %v5421_v61  ;;  %6537 = vmatprep.subr.msk.bf16.mxu1 %vm752_vm0, %v7603_v26  ;;  %v2916_v10 = vsel %vm7346_vm7, %v5409_v54, %v2915_v15  ;;  %v2919_v61 = vsel %vm7346_vm7, %v2917_v62, %v2918_v63  ;;  %v5160_v2 = vcombine.low %v6678_v3, %v7650_v49  ;;  %v2925_v8 = vrot.slane %v5346_v16, 5  ;;  %v1210_v51 = vld [vmem:[%s7088_s4 + $0xc] sm:$0xe]  ;;  %v7679_v47 = vld [vmem:[%s7088_s4 + $0x8] sm:$0x1] }
  0xf6   : > { %v2909_v46 = vsel %vm7346_vm7, %v5408_v27, %v2908_v21  ;;  %v5161_v21 = vcombine.low %v7254_v11, %v7262_v35  ;;  %v5425_v13 = vcombine.low %v2916_v10, %v2919_v61  ;;  %v2924_v60 = vrot.slane %v2922_v9, 4  ;;  %v1211_v63 = vld [vmem:[%s7088_s4 + $0x18] sm:$0xe]  ;;  %v1212_v61 = vld [vmem:[%s7088_s4 + $0x24] sm:$0xe] }
  0xf7   : > { %v5424_v31 = vcombine.low %v2909_v46, %v2912_v7  ;;  %v2299_v15 = vshll.u32 %v7559_v56, 16  ;;  %v2303_v33 = vshrl.u32 %v7559_v56, 16  ;;  %v2923_v11 = vsel %vm7346_vm7, %v5410_v22, %v2922_v9  ;;  %v1213_v16 = vld [vmem:[%s7088_s4 + $0x30] sm:$0xe] }
  0xf8   : > { %v2926_v35 = vsel %vm7346_vm7, %v2924_v60, %v2925_v8  ;;  %v5163_v18 = vcombine.low %v7323_v17, %v7326_v23  ;;  %v1269_v27 = vrot.slane %v7583_v41, 5  ;;  %v1209_v23 = vld [vmem:[%s7088_s4] sm:$0xe]  ;;  %v5164_v54 = vcombine.low %v7341_v59, %v7356_v28 }
  0xf9   : > { %v7665_v34 = vrot.slane %v2299_v15, 5  ;;  %v2305_v56 = vrot.slane %v2303_v33, 4  ;;  %v1262_v62 = vrot.slane %v7555_v53, 5  ;;  %v4111_v46 = vsel %vm752_vm0, %v7414_v44, 0  ;;  %v1214_v44 = vld [vmem:[%s7088_s4 + $0x3c] sm:$0xe] }
  0xfa   : > { %v5188_v7 = vrot.slane %v1210_v51, 9  ;;  %v1271_v9 = vrot.slane %v1269_v27, 4  ;;  %v1276_v10 = vrot.slane %v7594_v50, 5  ;;  %v5165_v3 = vcombine.low %v7376_v58, %v7379_v48  ;;  %v6633_v53 = vld [vmem:[%s7088_s4 + $0x30] sm:$0xff]   ;;  %v7712_v58 = vld [vmem:[#allocation5 + $0x10] sm:$0x3] }
  0xfb   : > { %6011 = vmatmul.mubr.msk.bf16.gmra.mrb[4].mxu1 %vm703_vm4, %v5158_v42  ;;  %6163 = vmatmul.mubr.msk.bf16.gmra.mrb[20].mxu0 %vm703_vm4, %v5422_v24  ;;  %8947 = vst [vmem:[#allocation13_spill] sm:$0xff] %v7665_v34  ;;  %v5162_v42 = vcombine.low %v7287_v20, %v7293_v29  ;;  %v5426_v24 = vcombine.low %v2923_v11, %v2926_v35  ;;  %v1265_v20 = vrot.slane %v7679_v47, 5  ;;  %v6681_v29 = vld [vmem:[%s7088_s4 + $0x14] sm:$0x1]  ;;  %v1283_v28 = vrot.slane %v7625_v39, 5 }
  0xfc   : > { %6014 = vmatprep.mubr.msk.bf16.mxu1 %vm703_vm4, %v5159_v45  ;;  %6166 = vmatprep.mubr.msk.bf16.mxu0 %vm703_vm4, %v5423_v5  ;;  %v6629_v45 = vld [vmem:[%s7088_s4 + $0x18] sm:$0xff]   ;;  %v2306_v55 = vor.u32 %v2305_v56, %v7665_v34  ;;  %v2309_v5 = vshll.u32 %v7562_v1, 16  ;;  %v1272_v17 = vrot.slane %v6681_v29, 5  ;;  %v5167_v59 = vcombine.low %v7426_v43, %v7440_v32  ;;  %v6682_v33 = vld [vmem:[%s7088_s4 + $0x20] sm:$0x1] }
  0xfd   : > { %v1264_v60 = vrot.slane %v1262_v62, 4  ;;  %v1297_v39 = vrot.slane %v7650_v49, 5  ;;  %v7721_v8 = vsel %vm7346_vm7, %v5188_v7, %v1269_v27  ;;  %v1279_v11 = vrot.slane %v6682_v33, 5  ;;  %v6683_v56 = vld [vmem:[%s7088_s4 + $0x2c] sm:$0x1] }
  0xfe   : > { %v7686_v1 = vrot.slane %v2306_v55, 4  ;;  %v7688_v41 = vrot.slane %v2309_v5, 5  ;;  %v7725_v15 = vsel %vm7346_vm7, %v1271_v9, %v1272_v17  ;;  %v5190_v49 = vrot.slane %v1212_v61, 9  ;;  %v1215_v27 = vld [vmem:[%s7088_s4 + $0x48] sm:$0xe]  ;;  %v6635_v17 = vld [vmem:[%s7088_s4 + $0x3c] sm:$0xff]  }
  0xff   : > { %v1285_v35 = vrot.slane %v1283_v28, 4  ;;  %v5192_v5 = vrot.slane %v1214_v44, 9  ;;  %v6685_v51 = vld [vmem:[%s7088_s4 + $0x4c] sm:$0xf]  ;;  %v7752_v9 = vsel %vm7346_vm7, %v1264_v60, %v1265_v20  ;;  %v5193_v44 = vrot.slane %v1215_v27, 9 }
 0x100   : > { %8948 = vst [vmem:[#allocation14_spill] sm:$0xff] %v7686_v1  ;;  %8949 = vst [vmem:[#allocation15_spill] sm:$0xff] %v7688_v41  ;;  %v1304_v29 = vrot.slane %v6685_v51, 5  ;;  %v7769_v47 = vsel %vm7346_vm7, %v5190_v49, %v1283_v28  ;;  %v6687_v60 = vld [vmem:[%s7088_s4 + $0x50] sm:$0x1] }
 0x101   : > { %v6689_v51 = vld [vmem:[%s7088_s4 + $0x5c] sm:$0x1]  ;;  %v5509_v43 = vld [vmem:[%s7088_s4 + $0x20] sm:$0x1]  ;;  %v5511_v32 = vld [vmem:[%s7088_s4 + $0x28] sm:$0xf] }
 0x102   : > { %v1306_v28 = vrot.slane %v1304_v29, 4  ;;  %v8029_v34 = vld [vmem:[%s7088_s4 + $0x64] sm:$0xf] }
 0x103   : > { %6015 = vmatmul.mubr.msk.bf16.gmra.mrb[8].mxu1 %vm703_vm4, %v5160_v2  ;;  %6167 = vmatmul.mubr.msk.bf16.gmra.mrb[24].mxu0 %vm703_vm4, %v5424_v31  ;;  %v5166_v2 = vcombine.low %v7400_v12, %v7410_v38  ;;  %v5187_v31 = vrot.slane %v1209_v23, 9  ;;  %v5510_v12 = vld [vmem:[%s7088_s4 + $0x24] sm:$0xf]  ;;  %8962 = vst [vmem:[#allocation22_spill] sm:$0xff] %v8029_v34 }
 0x104   : > { %6018 = vmatprep.mubr.msk.bf16.mxu1 %vm703_vm4, %v5161_v21  ;;  %6170 = vmatprep.mubr.msk.bf16.mxu0 %vm703_vm4, %v5425_v13  ;;  %v5189_v21 = vrot.slane %v1211_v63, 9  ;;  %v1290_v13 = vrot.slane %v7630_v57, 5  ;;  %v1278_v57 = vrot.slane %v1276_v10, 4  ;;  %v1299_v63 = vrot.slane %v1297_v39, 4 }
 0x105   : > { %v7739_v23 = vsel %vm7346_vm7, %v5187_v31, %v1262_v62 }
 0x106   : > { %v7762_v61 = vsel %vm7346_vm7, %v1278_v57, %v1279_v11  ;;  %v1307_v57 = vrot.slane %v6687_v60, 5  ;;  %v3656_v60 = vshll.u32 %v5510_v12, 16 }
 0x108   : > { %v3658_v50 = vrot.slane %v3656_v60, 5  ;;  %v7886_v60 = vld [vmem:[%s7088_s4 + $0x38] sm:$0x1] }
 0x109   : > { %8953 = vst [vmem:[#allocation17_spill] sm:$0xff] %v7886_v60 }
 0x10b   : > { %6019 = vmatmul.mubr.msk.bf16.gmra.mrb[12].mxu1 %vm703_vm4, %v5162_v42  ;;  %6171 = vmatmul.mubr.msk.bf16.gmra.mrb[28].mxu0 %vm703_vm4, %v5426_v24  ;;  %v1286_v42 = vrot.slane %v6683_v56, 5  ;;  %v5191_v24 = vrot.slane %v1213_v16, 9  ;;  %v1216_v16 = vld [vmem:[%s7088_s4 + $0x54] sm:$0xe] }
 0x10c   : > { %6022 = vmatprep.mubr.msk.bf16.mxu1 %vm703_vm4, %v5163_v18  ;;  %6176 = vmatprep.mubr.msk.bf16.mxu0 %vm703_vm4, %v6629_v45  ;;  %v1292_v18 = vrot.slane %v1290_v13, 4  ;;  %v6684_v45 = vld [vmem:[%s7088_s4 + $0x38] sm:$0x1] }
 0x10d   : > { %v1293_v55 = vrot.slane %v6684_v45, 5  ;;  %v7773_v20 = vsel %vm7346_vm7, %v1285_v35, %v1286_v42  ;;  %v3662_v45 = vshll.u32 %v5511_v32, 16 }
 0x10f   : > { %v7782_v31 = vsel %vm7346_vm7, %v1292_v18, %v1293_v55  ;;  %v7811_v55 = vsel %vm7346_vm7, %v5193_v44, %v1304_v29  ;;  %v1314_v29 = vrot.slane %v6689_v51, 5  ;;  %v1218_v51 = vld [vmem:[%s7088_s4 + $0x6c] sm:$0xe]  ;;  %v6641_v18 = vld [vmem:[%s7088_s4 + $0x60] sm:$0xff]  }
 0x113   : > { %6023 = vmatmul.mubr.msk.bf16.gmra.mrb[16].mxu1 %vm703_vm4, %v5164_v54  ;;  %6177 = vmatmul.mubr.msk.bf16.vlgmr.msra.gmra.mrb[0].mxu0 %vm703_vm4, %v6631_v25  ;;  %v7743_v54 = vsel %vm752_vm0, %v7603_v26, 0  ;;  %v7758_v26 = vsel %vm7346_vm7, %v5189_v21, %v1276_v10  ;;  %v5507_v25 = vld [vmem:[%s7088_s4 + $0x18] sm:$0xf]  ;;  %v7777_v10 = vsel %vm7346_vm7, %v5191_v24, %v1290_v13  ;;  %v7786_v21 = vsel %vm7346_vm7, %v5192_v5, %v1297_v39  ;;  %v7798_v39 = vld [vmem:[%s7088_s4 + $0x60] sm:$0xe] }
 0x114   : > { %6209 = vmatpush3.bf16.msra.mxu0 %v4111_v46  ;;  %6026 = vmatprep.mubr.msk.bf16.mxu1 %vm703_vm4, %v5165_v3  ;;  %v6686_v46 = vld [vmem:[%s7088_s4 + $0x44] sm:$0x1]  ;;  %v6637_v3 = vld [vmem:[%s7088_s4 + $0x48] sm:$0xff]   ;;  %v5194_v13 = vrot.slane %v1216_v16, 9  ;;  %v3629_v11 = vshrl.u32 %v5507_v25, 16  ;;  %v3632_v49 = vshll.u32 %v5507_v25, 16  ;;  %v8965_v4 = vcombine.low %v7777_v10, %v7782_v31 }
 0x115   : > { %6180 = vmatprep.mubr.msk.bf16.mxu0 %vm703_vm4, %v6633_v53  ;;  %v1300_v7 = vrot.slane %v6686_v46, 5  ;;  %6543 = vmatprep.subr.msk.bf16.mxu0 %vm752_vm0, %v7712_v58  ;;  %v5508_v53 = vld [vmem:[%s7088_s4 + $0x1c] sm:$0xf]  ;;  %v6688_v5 = vld [vmem:[%s7088_s4 + $0x58] sm:$0xf] }
 0x116   : > { %v3638_v42 = vshll.u32 %v5508_v53, 16  ;;  %v3642_v24 = vshrl.u32 %v5508_v53, 16  ;;  %v1311_v27 = vrot.slane %v6688_v5, 5  ;;  %v6639_v46 = vld [vmem:[%s7088_s4 + $0x54] sm:$0xff]   ;;  %v3631_v16 = vrot.slane %v3629_v11, 4 }
 0x117   : > { %v7791_v33 = vsel %vm7346_vm7, %v1299_v63, %v1300_v7  ;;  %v5195_v7 = vrot.slane %v7798_v39, 9  ;;  %v3634_v25 = vrot.slane %v3632_v49, 5  ;;  %v6692_v39 = vld [vmem:[%s7088_s4 + $0x68] sm:$0x1] }
 0x118   : > { %v7837_v44 = vrot.slane %v3638_v42, 5  ;;  %v3644_v53 = vrot.slane %v3642_v24, 4  ;;  %v1313_v5 = vrot.slane %v1311_v27, 4  ;;  %v1321_v11 = vrot.slane %v6692_v39, 5  ;;  %v6693_v39 = vld [vmem:[%s7088_s4 + $0x74] sm:$0x1] }
 0x119   : > { %v3635_v35 = vor.u32 %v3634_v25, %v3631_v16  ;;  %v3648_v42 = vshll.u32 %v5509_v43, 16  ;;  %v7851_v16 = vrot.slane %v3662_v45, 5  ;;  %v8951_v25 = vcombine.low %v7475_v37, %v7488_v19  ;;  %v7867_v45 = vld [vmem:[%s7088_s4 + $0x2c] sm:$0x1] }
 0x11a   : > { %8952 = vst [vmem:[#allocation16_spill] sm:$0xff] %v7867_v45 }
 0x11b   : > { %6027 = vmatmul.mubr.msk.bf16.gmra.mrb[20].mxu1 %vm703_vm4, %v5166_v2  ;;  %6181 = vmatmul.mubr.msk.bf16.gmra.mrb[4].mxu0 %vm703_vm4, %v6635_v17  ;;  %v7824_v2 = vsel %vm7346_vm7, %v1306_v28, %v1307_v57  ;;  %v6690_v17 = vld [vmem:[%s7088_s4 + $0x64] sm:$0xf]  ;;  %v3653_v28 = vshrl.u32 %v5510_v12, 16  ;;  %v5514_v57 = vld [vmem:[%s7088_s4 + $0x34] sm:$0xf]  ;;  %v3645_v12 = vor.u32 %v3644_v53, %v7837_v44 }
 0x11c   : > { %6030 = vmatprep.mubr.msk.bf16.mxu1 %vm703_vm4, %v5167_v59  ;;  %6184 = vmatprep.mubr.msk.bf16.mxu0 %vm703_vm4, %v6637_v3  ;;  %v1318_v63 = vrot.slane %v6690_v17, 5  ;;  %v7833_v59 = vsel %vm7346_vm7, %v5194_v13, %v1311_v27  ;;  %v5513_v3 = vld [vmem:[%s7088_s4 + $0x30] sm:$0xf]  ;;  %v3666_v13 = vshrl.u32 %v5511_v32, 16  ;;  %v3686_v22 = vshll.u32 %v5514_v57, 16 }
 0x11d   : > { %v6691_v17 = vld [vmem:[%s7088_s4 + $0x70] sm:$0xf]  ;;  %v3677_v62 = vshrl.u32 %v5513_v3, 16  ;;  %v3680_v49 = vshll.u32 %v5513_v3, 16  ;;  %v3690_v24 = vshrl.u32 %v5514_v57, 16  ;;  %v5196_v27 = vrot.slane %v1218_v51, 9 }
 0x11e   : > { %v1325_v38 = vrot.slane %v6691_v17, 5  ;;  %v1320_v56 = vrot.slane %v1318_v63, 4  ;;  %v3655_v48 = vrot.slane %v3653_v28, 4  ;;  %v8950_v32 = vcombine.low %v7457_v52, %v7460_v0  ;;  %v6694_v51 = vld [vmem:[%s7088_s4 + $0x7c] sm:$0xf] }
 0x11f   : > { %v1328_v3 = vrot.slane %v6693_v39, 5  ;;  %v3668_v43 = vrot.slane %v3666_v13, 4  ;;  %v7860_v52 = vsel %vm7346_vm7, %v1313_v5, %v1314_v29  ;;  %v7864_v0 = vsel %vm7346_vm7, %v5195_v7, %v1318_v63  ;;  %v1219_v5 = vld [vmem:[%s7088_s4 + $0x78] sm:$0xe]  ;;  %v5516_v39 = vld [vmem:[%s7088_s4 + $0x3c] sm:$0xf] }
 0x120   : > { %v1327_v17 = vrot.slane %v1325_v38, 4  ;;  %v3682_v37 = vrot.slane %v3680_v49, 5  ;;  %v7871_v19 = vsel %vm7346_vm7, %v1320_v56, %v1321_v11  ;;  %v7875_v53 = vrot.slane %v3686_v22, 5  ;;  %v6643_v56 = vld [vmem:[%s7088_s4 + $0x6c] sm:$0xff]  }
 0x121   : > { %v3692_v29 = vrot.slane %v3690_v24, 4  ;;  %v7877_v28 = vrot.slane %v3645_v12, 4  ;;  %v7879_v63 = vrot.slane %v3648_v42, 5  ;;  %v7883_v7 = vsel %vm7346_vm7, %v5196_v27, %v1325_v38  ;;  %v6644_v38 = vld [vmem:[%s7088_s4 + $0x78] sm:$0xff]   ;;  %v1220_v27 = vld [vmem:[%s7088_s4 + $0x84] sm:$0xe] }
 0x122   : > { %v3669_v22 = vor.u32 %v3668_v43, %v7851_v16  ;;  %v3672_v57 = vshll.u32 %v7867_v45, 16  ;;  %v1332_v13 = vrot.slane %v6694_v51, 5  ;;  %v3696_v12 = vshll.u32 %v7886_v60, 16  ;;  %v6696_v51 = vld [vmem:[%s7088_s4 + $0x80] sm:$0x1] }
 0x123   : > { %6031 = vmatmul.mubr.msk.bf16.gmra.mrb[24].mxu1 %vm703_vm4, %v8950_v32  ;;  %6185 = vmatmul.mubr.msk.bf16.gmra.mrb[8].mxu0 %vm703_vm4, %v6639_v46  ;;  %v3679_v46 = vrot.slane %v3677_v62, 4  ;;  %v3659_v62 = vor.u32 %v3658_v50, %v3655_v48  ;;  %v3693_v24 = vor.u32 %v3692_v29, %v7875_v53  ;;  %v6695_v32 = vld [vmem:[%s7088_s4 + $0x88] sm:$0xf]  ;;  %v6697_v43 = vld [vmem:[%s7088_s4 + $0x8c] sm:$0x1] }
 0x124   : > { %6034 = vmatprep.mubr.msk.bf16.mxu1 %vm703_vm4, %v8951_v25  ;;  %6188 = vmatprep.mubr.msk.bf16.mxu0 %vm703_vm4, %v6641_v18  ;;  %v7873_v18 = vrot.slane %v3635_v35, 4  ;;  %v7891_v35 = vsel %vm7346_vm7, %v1327_v17, %v1328_v3  ;;  %v1339_v17 = vrot.slane %v6695_v32, 5  ;;  %v3651_v3 = vsel %vm7126_vm3, %v7877_v28, %v7879_v63  ;;  %v7926_v28 = vld [vmem:[%s7088_s4 + $0x40] sm:$0xf] }
 0x125   : > { %v3683_v49 = vor.u32 %v3682_v37, %v3679_v46  ;;  %v3660_v25 = vrot.slane %v3659_v62, 4  ;;  %v8954_v46 = vcombine.low %v7507_v40, %v7513_v14  ;;  %v3670_v37 = vrot.slane %v3669_v22, 4  ;;  %8955 = vst [vmem:[#allocation18_spill] sm:$0xff] %v7926_v28 }
 0x126   : > { %v3641_v42 = vsel %vm7126_vm3, %v7873_v18, %v7837_v44  ;;  %v5197_v44 = vrot.slane %v1219_v5, 9  ;;  %v3674_v18 = vrot.slane %v3672_v57, 5  ;;  %v1334_v29 = vrot.slane %v1332_v13, 4  ;;  %v5519_v5 = vld [vmem:[%s7088_s4 + $0x48] sm:$0xf] }
 0x127   : > { %v1335_v32 = vrot.slane %v6696_v51, 5  ;;  %v8956_v63 = vcombine.low %v7739_v23, %v7752_v9  ;;  %v3684_v40 = vrot.slane %v3683_v49, 4  ;;  %v5198_v62 = vrot.slane %v1220_v27, 9  ;;  %v7945_v27 = vld [vmem:[%s7088_s4 + $0x4c] sm:$0xf] }
 0x128   : > { %v3704_v22 = vshll.u32 %v5516_v39, 16  ;;  %v3694_v57 = vrot.slane %v3693_v24, 4  ;;  %v1341_v51 = vrot.slane %v1339_v17, 4  ;;  %v1342_v11 = vrot.slane %v6697_v43, 5  ;;  %v6645_v24 = vld [vmem:[%s7088_s4 + $0x84] sm:$0xff]  }
 0x129   : > { %v3665_v23 = vsel %vm7126_vm3, %v3660_v25, %v7851_v16  ;;  %v7940_v9 = vsel %vm7346_vm7, %v5197_v44, %v1332_v13  ;;  %v3714_v49 = vshrl.u32 %v7926_v28, 16  ;;  %v3725_v43 = vshrl.u32 %v5519_v5, 16  ;;  %v7962_v44 = vld [vmem:[%s7088_s4 + $0x44] sm:$0x1] }
 0x12a   : > { %v3728_v16 = vshll.u32 %v5519_v5, 16  ;;  %v3689_v13 = vsel %vm7126_vm3, %v3684_v40, %v7875_v53  ;;  %v7959_v25 = vsel %vm7346_vm7, %v5198_v62, %v1339_v17  ;;  %8957 = vst [vmem:[#allocation19_spill] sm:$0xff] %v7962_v44  ;;  %v3706_v48 = vrot.slane %v3704_v22, 5  ;;  %v5522_v22 = vld [vmem:[%s7088_s4 + $0x54] sm:$0xf] }
 0x12b   : > { %6035 = vmatmul.mubr.msk.bf16.gmra.mrb[28].mxu1 %vm703_vm4, %v8954_v46  ;;  %6189 = vmatmul.mubr.msk.bf16.gmra.mrb[12].mxu0 %vm703_vm4, %v6643_v56  ;;  %v3701_v56 = vshrl.u32 %v5516_v39, 16  ;;  %v3698_v46 = vrot.slane %v3696_v12, 5  ;;  %v3675_v12 = vsel %vm7126_vm3, %v3670_v37, %v3674_v18  ;;  %v7952_v39 = vsel %vm7346_vm7, %v1334_v29, %v1335_v32  ;;  %v6646_v37 = vld [vmem:[%s7088_s4 + $0x90] sm:$0xff]  }
 0x12c   : > { %6040 = vmatprep.mubr.msk.bf16.mxu1 %vm703_vm4, %v8956_v63  ;;  %6192 = vmatprep.mubr.msk.bf16.mxu0 %vm703_vm4, %v6644_v38  ;;  %v3710_v38 = vshll.u32 %v7926_v28, 16  ;;  %v7969_v29 = vsel %vm7346_vm7, %v1341_v51, %v1342_v11  ;;  %v3734_v32 = vshll.u32 %v7945_v27, 16  ;;  %v3738_v53 = vshrl.u32 %v7945_v27, 16  ;;  %v1222_v11 = vld [vmem:[%s7088_s4 + $0x9c] sm:$0xe] }
 0x12d   : > { %v3703_v63 = vrot.slane %v3701_v56, 4  ;;  %v3699_v18 = vsel %vm7126_vm3, %v3694_v57, %v3698_v46  ;;  %v7973_v40 = vcombine.low %v3641_v42, %v3651_v3  ;;  %v7975_v17 = vcombine.low %v3665_v23, %v3675_v12  ;;  %v7989_v46 = vld [vmem:[%s7088_s4 + $0x58] sm:$0xf] }
 0x12e   : > { %v7977_v62 = vrot.slane %v3710_v38, 5  ;;  %v3716_v56 = vrot.slane %v3714_v49, 4  ;;  %v8958_v5 = vcombine.low %v7721_v8, %v7725_v15  ;;  %v3720_v42 = vshll.u32 %v7962_v44, 16  ;;  %8959 = vst [vmem:[#allocation20_spill] sm:$0xff] %v7989_v46  ;;  %v1221_v49 = vld [vmem:[%s7088_s4 + $0x90] sm:$0xe] }
 0x12f   : > { %v3727_v3 = vrot.slane %v3725_v43, 4  ;;  %v3730_v57 = vrot.slane %v3728_v16, 5  ;;  %v8960_v51 = vcombine.low %v7758_v26, %v7762_v61  ;;  %v7998_v8 = vsel %vm752_vm0, %v7712_v58, 0  ;;  %v5525_v58 = vld [vmem:[%s7088_s4 + $0x60] sm:$0xf] }
 0x130   : > { %v8000_v15 = vcombine.low %v3689_v13, %v3699_v18  ;;  %v3707_v38 = vor.u32 %v3706_v48, %v3703_v63  ;;  %v3740_v26 = vrot.slane %v3738_v53, 4  ;;  %v3749_v61 = vshrl.u32 %v5522_v22, 16  ;;  %v6698_v12 = vld [vmem:[#allocation5 + $0x8] sm:$0x3]  ;;  %v6699_v48 = vld [vmem:[%s7088_s4 + $0x94] sm:$0xf] }
 0x131   : > { %v3717_v43 = vor.u32 %v3716_v56, %v7977_v62  ;;  %v1346_v16 = vrot.slane %v6699_v48, 5  ;;  %v8013_v13 = vld [vmem:[%s7088_s4 + $0x50] sm:$0x1]  ;;  %v3758_v63 = vshll.u32 %v7989_v46, 16  ;;  %v6647_v18 = vld [vmem:[%s7088_s4 + $0x9c] sm:$0xff]   ;;  %v8019_v53 = vrot.slane %v3720_v42, 5 }
 0x132   : > { %8961 = vst [vmem:[#allocation21_spill] sm:$0xff] %v8013_v13  ;;  %v8022_v56 = vrot.slane %v3707_v38, 4  ;;  %v6701_v23 = vld [vmem:[%s7088_s4 + $0x98] sm:$0x1]  ;;  %v3773_v50 = vshrl.u32 %v5525_v58, 16  ;;  %v3776_v44 = vshll.u32 %v5525_v58, 16 }
 0x133   : > { %6041 = vmatmul.mubr.msk.bf16.vlgmr.msra.gmra.mrb[0].mxu1 %vm703_vm4, %v8958_v5  ;;  %6193 = vmatmul.mubr.msk.bf16.gmra.mrb[16].mxu0 %vm703_vm4, %v6645_v24  ;;  %v3752_v24 = vshll.u32 %v5522_v22, 16  ;;  %v5199_v22 = vrot.slane %v1221_v49, 9  ;;  %v3731_v5 = vor.u32 %v3730_v57, %v3727_v3  ;;  %v1349_v48 = vrot.slane %v6701_v23, 5  ;;  %v8032_v49 = vld [vmem:[%s7088_s4 + $0x5c] sm:$0x1] }
 0x134   : > { %6073 = vmatpush3.bf16.msra.mxu1 %v7743_v54  ;;  %6044 = vmatprep.mubr.msk.bf16.mxu1 %vm703_vm4, %v8960_v51  ;;  %v8006_v54 = vrot.slane %v3734_v32, 5  ;;  %v6648_v32 = vld [vmem:[%s7088_s4 + $0xa8] sm:$0xff]   ;;  %v6700_v51 = vld [vmem:[%s7088_s4 + $0xa0] sm:$0xf]  ;;  %v3744_v60 = vshll.u32 %v8013_v13, 16  ;;  %v3751_v45 = vrot.slane %v3749_v61, 4  ;;  %v8964_v23 = vcombine.low %v7769_v47, %v7773_v20 }
 0x135   : > { %6196 = vmatprep.mubr.msk.bf16.mxu0 %vm703_vm4, %v6646_v37  ;;  %6539 = vmatprep.subr.msk.bf16.mxu1 %vm752_vm0, %v6698_v12  ;;  %v3762_v37 = vshrl.u32 %v7989_v46, 16  ;;  %v1353_v12 = vrot.slane %v6700_v51, 5  ;;  %v3754_v42 = vrot.slane %v3752_v24, 5  ;;  %v3718_v3 = vrot.slane %v3717_v43, 4  ;;  %8963 = vst [vmem:[#allocation23_spill] sm:$0xff] %v8032_v49 }
 0x136   : > { %v3741_v28 = vor.u32 %v3740_v26, %v8006_v54  ;;  %v1348_v57 = vrot.slane %v1346_v16, 4  ;;  %v8034_v38 = vrot.slane %v3758_v63, 5  ;;  %v3732_v26 = vrot.slane %v3731_v5, 4  ;;  %v6702_v24 = vld [vmem:[%s7088_s4 + $0xa4] sm:$0x1] }
 0x137   : > { %v3764_v51 = vrot.slane %v3762_v37, 4  ;;  %v5200_v58 = vrot.slane %v1222_v11, 9  ;;  %v1355_v61 = vrot.slane %v1353_v12, 4  ;;  %v1356_v43 = vrot.slane %v6702_v24, 5 }
 0x138   : > { %v3775_v47 = vrot.slane %v3773_v50, 4  ;;  %v3778_v20 = vrot.slane %v3776_v44, 5  ;;  %v3782_v63 = vshll.u32 %v8029_v34, 16  ;;  %v3786_v37 = vshrl.u32 %v8029_v34, 16  ;;  %v1223_v50 = vld [vmem:[%s7088_s4 + $0xa8] sm:$0xe] }
 0x139   : > { %v3742_v11 = vrot.slane %v3741_v28, 4  ;;  %v3755_v5 = vor.u32 %v3754_v42, %v3751_v45  ;;  %v8056_v10 = vsel %vm7346_vm7, %v5199_v22, %v1346_v16  ;;  %v3765_v31 = vor.u32 %v3764_v51, %v8034_v38  ;;  %v6703_v44 = vld [vmem:[%s7088_s4 + $0xac] sm:$0xf]  ;;  %v8077_v22 = vld [vmem:[%s7088_s4 + $0x68] sm:$0x1] }
 0x13a   : > { %v1360_v28 = vrot.slane %v6703_v44, 5  ;;  %v3723_v45 = vsel %vm7126_vm3, %v3718_v3, %v8019_v53  ;;  %v8074_v16 = vsel %vm7346_vm7, %v5200_v58, %v1353_v12  ;;  %8967 = vst [vmem:[#allocation25_spill] sm:$0xff] %v8077_v22  ;;  %v8082_v42 = vsel %vm7346_vm7, %v1355_v61, %v1356_v43  ;;  %v1224_v58 = vld [vmem:[%s7088_s4 + $0xb4] sm:$0xe]  ;;  %v6704_v61 = vld [vmem:[%s7088_s4 + $0xb0] sm:$0x1] }
 0x13b   : > { %6045 = vmatmul.mubr.msk.bf16.gmra.mrb[4].mxu1 %vm703_vm4, %v8964_v23  ;;  %6197 = vmatmul.mubr.msk.bf16.gmra.mrb[20].mxu0 %vm703_vm4, %v6647_v18  ;;  %v3746_v18 = vrot.slane %v3744_v60, 5  ;;  %v3768_v23 = vshll.u32 %v8032_v49, 16  ;;  %v8067_v60 = vsel %vm7346_vm7, %v1348_v57, %v1349_v48  ;;  %8966 = vst [vmem:[#allocation24_spill] sm:$0xff] %v8074_v16  ;;  %8968 = vst [vmem:[#allocation26_spill] sm:$0xff] %v8082_v42  ;;  %v8084_v3 = vrot.slane %v3782_v63, 5 }
 0x13c   : > { %6048 = vmatprep.mubr.msk.bf16.mxu1 %vm703_vm4, %v8965_v4  ;;  %6200 = vmatprep.mubr.msk.bf16.mxu0 %vm703_vm4, %v6648_v32  ;;  %v3713_v4 = vsel %vm7126_vm3, %v8022_v56, %v7977_v62  ;;  %v6649_v32 = vld [vmem:[%s7088_s4 + $0xb4] sm:$0xff]   ;;  %v3737_v62 = vsel %vm7126_vm3, %v3732_v26, %v8006_v54  ;;  %v6650_v56 = vld [vmem:[%s7088_s4 + $0xc0] sm:$0xff]   ;;  %v3779_v53 = vor.u32 %v3778_v20, %v3775_v47  ;;  %v3788_v48 = vrot.slane %v3786_v37, 4  ;;  %v5528_v57 = vld [vmem:[%s7088_s4 + $0x6c] sm:$0xf] }
 0x13d   : > { %v3747_v54 = vsel %vm7126_vm3, %v3742_v11, %v3746_v18  ;;  %v8089_v51 = vrot.slane %v3755_v5, 4  ;;  %v8091_v26 = vrot.slane %v3768_v23, 5  ;;  %v5201_v12 = vrot.slane %v1223_v50, 9  ;;  %v6651_v50 = vld [vmem:[%s7088_s4 + $0xcc] sm:$0xff]   ;;  %v8211_v34 = vld [vmem:[%s7088_s4 + $0x98] sm:$0x1] }
 0x13e   : > { %v8094_v24 = vrot.slane %v3765_v31, 4  ;;  %v1362_v44 = vrot.slane %v1360_v28, 4  ;;  %v1363_v43 = vrot.slane %v6704_v61, 5  ;;  %v3792_v47 = vshll.u32 %v8077_v22, 16  ;;  %v8117_v31 = vld [vmem:[%s7088_s4 + $0x70] sm:$0xf] }
 0x13f   : > { %v8969_v20 = vcombine.low %v7786_v21, %v7791_v33  ;;  %v8103_v63 = vcombine.low %v3713_v4, %v3723_v45  ;;  %v3797_v11 = vshrl.u32 %v5528_v57, 16  ;;  %v3800_v18 = vshll.u32 %v5528_v57, 16  ;;  %8971 = vst [vmem:[#allocation27_spill] sm:$0xff] %v8117_v31  ;;  %v8145_v57 = vld [vmem:[%s7088_s4 + $0x7c] sm:$0xf] }
 0x140   : > { %v8970_v5 = vcombine.low %v7811_v55, %v7824_v2  ;;  %v8112_v21 = vrot.slane %v3779_v53, 4  ;;  %v3789_v33 = vor.u32 %v3788_v48, %v8084_v3  ;;  %v5202_v23 = vrot.slane %v1224_v58, 9  ;;  %8972 = vst [vmem:[#allocation28_spill] sm:$0xff] %v8145_v57  ;;  %v8174_v48 = vld [vmem:[%s7088_s4 + $0x94] sm:$0xf] }
 0x141   : > { %v1367_v4 = vrot.slane %v7513_v14, 5  ;;  %v8130_v45 = vsel %vm7346_vm7, %v5201_v12, %v1360_v28  ;;  %v8141_v53 = vrot.slane %v3792_v47, 5  ;;  %v5534_v28 = vld [vmem:[%s7088_s4 + $0x84] sm:$0xf]  ;;  %v8150_v12 = vrot.slane %v3800_v18, 5  ;;  %8975 = vst [vmem:[#allocation31_spill] sm:$0xff] %v8174_v48 }
 0x142   : > { %v3806_v58 = vshll.u32 %v8117_v31, 16  ;;  %v3810_v61 = vshrl.u32 %v8117_v31, 16  ;;  %v8168_v18 = vld [vmem:[%s7088_s4 + $0x74] sm:$0x1]  ;;  %v3830_v14 = vshll.u32 %v8145_v57, 16  ;;  %v3834_v37 = vshrl.u32 %v8145_v57, 16 }
 0x143   : > { %6049 = vmatmul.mubr.msk.bf16.gmra.mrb[8].mxu1 %vm703_vm4, %v8969_v20  ;;  %6201 = vmatmul.mubr.msk.bf16.gmra.mrb[24].mxu0 %vm703_vm4, %v6649_v32  ;;  %v8120_v32 = vcombine.low %v3737_v62, %v3747_v54  ;;  %v8139_v62 = vsel %vm7346_vm7, %v1362_v44, %v1363_v43  ;;  %v8148_v54 = vrot.slane %v3797_v11, 4  ;;  %v8155_v20 = vld [vmem:[%s7088_s4 + $0x88] sm:$0xf]  ;;  %v8161_v43 = vrot.slane %v3789_v33, 4  ;;  %8974 = vst [vmem:[#allocation30_spill] sm:$0xff] %v8168_v18 }
 0x144   : > { %6052 = vmatprep.mubr.msk.bf16.mxu1 %vm703_vm4, %v8970_v5  ;;  %6204 = vmatprep.mubr.msk.bf16.mxu0 %vm703_vm4, %v6650_v56  ;;  %v5531_v56 = vld [vmem:[%s7088_s4 + $0x78] sm:$0xf]  ;;  %8973 = vst [vmem:[#allocation29_spill] sm:$0xff] %v8155_v20  ;;  %v8165_v47 = vsel %vm7346_vm7, %v5202_v23, %v1367_v4  ;;  %v1369_v11 = vrot.slane %v1367_v4, 4  ;;  %v5537_v5 = vld [vmem:[%s7088_s4 + $0x90] sm:$0xf]  ;;  %v8976_v4 = vcombine.low %v7833_v59, %v7860_v52 }
 0x145   : > { %v3821_v55 = vshrl.u32 %v5531_v56, 16  ;;  %v3824_v2 = vshll.u32 %v5531_v56, 16  ;;  %v3845_v44 = vshrl.u32 %v5534_v28, 16  ;;  %v3848_v33 = vshll.u32 %v5534_v28, 16  ;;  %v5540_v31 = vld [vmem:[%s7088_s4 + $0x9c] sm:$0xf] }
 0x146   : > { %v3854_v1 = vshll.u32 %v8155_v20, 16  ;;  %v3858_v23 = vshrl.u32 %v8155_v20, 16  ;;  %v3803_v56 = vor.u32 %v8150_v12, %v8148_v54  ;;  %v8185_v41 = vrot.slane %v3806_v58, 5  ;;  %v8198_v12 = vld [vmem:[%s7088_s4 + $0xa0] sm:$0xf] }
 0x147   : > { %v3812_v28 = vrot.slane %v3810_v61, 4  ;;  %v3816_v57 = vshll.u32 %v8168_v18, 16  ;;  %v8977_v20 = vcombine.low %v7864_v0, %v7871_v19  ;;  %v3869_v59 = vshrl.u32 %v5537_v5, 16  ;;  %8978 = vst [vmem:[#allocation32_spill] sm:$0xff] %v8198_v12  ;;  %v8201_v58 = vld [vmem:[%s7088_s4 + $0x80] sm:$0x1] }
 0x148   : > { %v3872_v52 = vshll.u32 %v5537_v5, 16  ;;  %v3882_v54 = vshrl.u32 %v8174_v48, 16  ;;  %v3823_v61 = vrot.slane %v3821_v55, 4  ;;  %v8203_v18 = vrot.slane %v3830_v14, 5  ;;  %v8206_v19 = vld [vmem:[%s7088_s4 + $0x8c] sm:$0x1] }
 0x149   : > { %v3836_v0 = vrot.slane %v3834_v37, 4  ;;  %v8208_v22 = vrot.slane %v3854_v1, 5  ;;  %v3860_v5 = vrot.slane %v3858_v23, 4  ;;  %v3893_v49 = vshrl.u32 %v5540_v31, 16 }
 0x14a   : > { %v3902_v42 = vshll.u32 %v8198_v12, 16  ;;  %v3906_v16 = vshrl.u32 %v8198_v12, 16  ;;  %v3871_v55 = vrot.slane %v3869_v59, 4  ;;  %v3884_v37 = vrot.slane %v3882_v54, 4 }
 0x14b   : > { %6053 = vmatmul.mubr.msk.bf16.gmra.mrb[12].mxu1 %vm703_vm4, %v8976_v4  ;;  %6205 = vmatmul.mubr.msk.bf16.gmra.mrb[28].mxu0 %vm703_vm4, %v6651_v50  ;;  %v3878_v50 = vshll.u32 %v8174_v48, 16  ;;  %v3826_v4 = vrot.slane %v3824_v2, 5  ;;  %v3896_v48 = vshll.u32 %v5540_v31, 16  ;;  %v3874_v2 = vrot.slane %v3872_v52, 5 }
 0x14c   : > { %6056 = vmatprep.mubr.msk.bf16.mxu1 %vm703_vm4, %v8977_v20  ;;  %6210 = vmatprep.mubr.msk.bf16.mxu0 %vm703_vm4, %v7973_v40  ;;  %v3847_v20 = vrot.slane %v3845_v44, 4  ;;  %v3850_v40 = vrot.slane %v3848_v33, 5  ;;  %v3813_v46 = vor.u32 %v3812_v28, %v8185_v41  ;;  %v3837_v1 = vor.u32 %v3836_v0, %v8203_v18 }
 0x14d   : > { %v8215_v14 = vrot.slane %v3878_v50, 5  ;;  %v3827_v44 = vor.u32 %v3826_v4, %v3823_v61  ;;  %v3840_v33 = vshll.u32 %v8201_v58, 16  ;;  %v3861_v31 = vor.u32 %v3860_v5, %v8208_v22  ;;  %v5543_v4 = vld [vmem:[%s7088_s4 + $0xa8] sm:$0xf] }
 0x14e   : > { %v3851_v23 = vor.u32 %v3850_v40, %v3847_v20  ;;  %v3864_v13 = vshll.u32 %v8206_v19, 16  ;;  %v3888_v12 = vshll.u32 %v8211_v34, 16  ;;  %v8979_v59 = vcombine.low %v7883_v7, %v7891_v35 }
 0x14f   : > { %v3895_v28 = vrot.slane %v3893_v49, 4  ;;  %v3898_v52 = vrot.slane %v3896_v48, 5  ;;  %v8229_v50 = vrot.slane %v3902_v42, 5  ;;  %v3908_v54 = vrot.slane %v3906_v16, 4  ;;  %v8244_v42 = vld [vmem:[%s7088_s4 + $0xa4] sm:$0x1] }
 0x150   : > { %v8980_v61 = vcombine.low %v7940_v9, %v7952_v39  ;;  %v8981_v7 = vrot.slane %v7518_v36, 5  ;;  %v3875_v49 = vor.u32 %v3874_v2, %v3871_v55  ;;  %v3885_v48 = vor.u32 %v3884_v37, %v8215_v14  ;;  %v8252_v2 = vld [vmem:[%s7088_s4 + $0xac] sm:$0xf] }
 0x151   : > { %v3814_v9 = vrot.slane %v3813_v46, 4  ;;  %v3828_v39 = vrot.slane %v3827_v44, 4  ;;  %v3842_v16 = vrot.slane %v3840_v33, 5  ;;  %v3838_v36 = vrot.slane %v3837_v1, 4 }
 0x152   : > { %v8240_v35 = vsel %vm7346_vm7, %v1369_v11, %v8981_v7  ;;  %v3852_v0 = vrot.slane %v3851_v23, 4  ;;  %v3862_v20 = vrot.slane %v3861_v31, 4  ;;  %v3866_v11 = vrot.slane %v3864_v13, 5 }
 0x153   : > { %6057 = vmatmul.mubr.msk.bf16.gmra.mrb[16].mxu1 %vm703_vm4, %v8979_v59  ;;  %6211 = vmatmul.mubr.msk.bf16.vlgmr.msra.gmra.mrb[0].mxu0 %vm703_vm4, %v7975_v17  ;;  %v3818_v17 = vrot.slane %v3816_v57, 5  ;;  %v3890_v40 = vrot.slane %v3888_v12, 5  ;;  %v3899_v57 = vor.u32 %v3898_v52, %v3895_v28  ;;  %v3909_v5 = vor.u32 %v3908_v54, %v8229_v50 }
 0x154   : > { %6243 = vmatpush3.bf16.msra.mxu0 %v7998_v8  ;;  %6060 = vmatprep.mubr.msk.bf16.mxu1 %vm703_vm4, %v8980_v61  ;;  %v3804_v8 = vrot.slane %v3803_v56, 4  ;;  %v3912_v55 = vshll.u32 %v8244_v42, 16  ;;  %v3876_v37 = vrot.slane %v3875_v49, 4  ;;  %v3886_v59 = vrot.slane %v3885_v48, 4 }
 0x155   : > { %6214 = vmatprep.mubr.msk.bf16.mxu0 %vm703_vm4, %v8000_v15  ;;  %v3917_v15 = vshrl.u32 %v5543_v4, 16  ;;  %v3920_v56 = vshll.u32 %v5543_v4, 16  ;;  %v3795_v46 = vsel %vm7126_vm3, %v8161_v43, %v8141_v53  ;;  %v3819_v12 = vsel %vm7126_vm3, %v3814_v9, %v3818_v17  ;;  %v5592_v9 = vld [vmem:[%s7088_s4 + $0x54] sm:$0xe] }
 0x156   : > { %v3809_v13 = vsel %vm7126_vm3, %v3804_v8, %v8185_v41  ;;  %v3833_v44 = vsel %vm7126_vm3, %v3828_v39, %v8203_v18  ;;  %v3843_v1 = vsel %vm7126_vm3, %v3838_v36, %v3842_v16  ;;  %v3857_v33 = vsel %vm7126_vm3, %v3852_v0, %v8208_v22 }
 0x157   : > { %v3926_v53 = vshll.u32 %v8252_v2, 16  ;;  %v3930_v43 = vshrl.u32 %v8252_v2, 16  ;;  %v8982_v41 = vcombine.low %v7959_v25, %v7969_v29  ;;  %v3867_v18 = vsel %vm7126_vm3, %v3862_v20, %v3866_v11 }
 0x158   : > { %v3900_v23 = vrot.slane %v3899_v57, 4  ;;  %v3910_v31 = vrot.slane %v3909_v5, 4  ;;  %v3914_v22 = vrot.slane %v3912_v55, 5  ;;  %v8983_v28 = vcombine.low %v8056_v10, %v8067_v60 }
 0x159   : > { %v3881_v25 = vsel %vm7126_vm3, %v3876_v37, %v8215_v14  ;;  %v3891_v29 = vsel %vm7126_vm3, %v3886_v59, %v3890_v40  ;;  %v8294_v52 = vrot.slane %v3920_v56, 5  ;;  %v8984_v10 = vsel %vm7126_vm3, %v8094_v24, %v8091_v26  ;;  %v8316_v26 = vld [vmem:[%s7088_s4 + $0xb0] sm:$0x1]  ;;  %v5546_v24 = vld [vmem:[%s7088_s4 + $0xb4] sm:$0xf] }
 0x15a   : > { %v8985_v60 = vsel %vm7126_vm3, %v8089_v51, %v8034_v38  ;;  %v5217_v14 = vcombine.low %v8130_v45, %v8139_v62  ;;  %v8986_v54 = vsel %vm7126_vm3, %v8112_v21, %v8084_v3  ;;  %v5218_v7 = vcombine.low %v8165_v47, %v8240_v35  ;;  %v8326_v45 = vld [vmem:[%s7088_s4 + $0xb8] sm:$0xf]  ;;  %v5591_v62 = vld [vmem:[%s7088_s4 + $0x48] sm:$0xe]  ;;  %v5594_v56 = vld [vmem:[%s7088_s4 + $0x6c] sm:$0xe] }
 0x15b   : > { %6061 = vmatmul.mubr.msk.bf16.gmra.mrb[20].mxu1 %vm703_vm4, %v8982_v41  ;;  %6215 = vmatmul.mubr.msk.bf16.gmra.mrb[4].mxu0 %vm703_vm4, %v8103_v63  ;;  %v8292_v63 = vrot.slane %v3917_v15, 4  ;;  %v5561_v61 = vcombine.low %v8986_v54, %v3795_v46  ;;  %v8319_v17 = vcombine.low %v3809_v13, %v3819_v12  ;;  %v8321_v38 = vcombine.low %v3833_v44, %v3843_v1  ;;  %v8987_v40 = vld [vmem:[#allocation21_spill] sm:$0xff]  ;;  %v8988_v59 = vld [vmem:[#allocation20_spill] sm:$0xff]  ;;  %v8990_v13 = vld [vmem:[#allocation26_spill] sm:$0xff] }
 0x15c   : > { %6064 = vmatprep.mubr.msk.bf16.mxu1 %vm703_vm4, %v8983_v28  ;;  %6218 = vmatprep.mubr.msk.bf16.mxu0 %vm703_vm4, %v8120_v32  ;;  %v5560_v32 = vcombine.low %v8985_v60, %v8984_v10  ;;  %v8323_v51 = vrot.slane %v3926_v53, 5  ;;  %v3932_v49 = vrot.slane %v3930_v43, 4  ;;  %v8329_v48 = vcombine.low %v3857_v33, %v3867_v18  ;;  %v8989_v46 = vld [vmem:[#allocation24_spill] sm:$0xff]  ;;  %v8992_v33 = vld [vmem:[#allocation23_spill] sm:$0xff] }
 0x15d   : > { %v8331_v3 = vcombine.low %v3881_v25, %v3891_v29  ;;  %v3905_v21 = vsel %vm7126_vm3, %v3900_v23, %v8229_v50  ;;  %v3915_v8 = vsel %vm7126_vm3, %v3910_v31, %v3914_v22  ;;  %v3923_v39 = vor.u32 %v8294_v52, %v8292_v63  ;;  %v5593_v50 = vld [vmem:[%s7088_s4 + $0x60] sm:$0xe]  ;;  %v8994_v25 = vld [vmem:[#allocation25_spill] sm:$0xff]  ;;  %v8438_v47 = vld [vmem:[%s7088_s4 + $0xbc] sm:$0x1] }
 0x15e   : > { %v3936_v16 = vshll.u32 %v8316_v26, 16  ;;  %v3941_v4 = vshrl.u32 %v5546_v24, 16  ;;  %v3944_v36 = vshll.u32 %v5546_v24, 16  ;;  %v3950_v0 = vshll.u32 %v8326_v45, 16  ;;  %v8993_v23 = vld [vmem:[#allocation22_spill] sm:$0xff]  ;;  %v8995_v52 = vld [vmem:[#allocation27_spill] sm:$0xff] }
 0x15f   : > { %v5607_v20 = vrot.slane %v5591_v62, 9  ;;  %v4400_v11 = vrot.slane %v7945_v27, 5  ;;  %v4403_v57 = vrot.slane %v8987_v40, 5  ;;  %v8346_v5 = vcombine.low %v3905_v21, %v3915_v8  ;;  %v5549_v22 = vld [vmem:[%s7088_s4 + $0xc0] sm:$0xf] }
 0x160   : > { %v3933_v55 = vor.u32 %v3932_v49, %v8323_v51  ;;  %v5608_v37 = vrot.slane %v5592_v9, 9  ;;  %v4407_v15 = vrot.slane %v8988_v59, 5  ;;  %v8991_v12 = vcombine.low %v8989_v46, %v8990_v13  ;;  %v8996_v21 = vld [vmem:[#allocation30_spill] sm:$0xff]  ;;  %v6652_v9 = vld [vmem:[%s7088_s4 + $0xc] sm:$0xff]  }
 0x161   : > { %v3954_v27 = vshrl.u32 %v8326_v45, 16  ;;  %v8359_v44 = vsel %vm7346_vm7, %v5607_v20, %v4400_v11  ;;  %v4402_v1 = vrot.slane %v4400_v11, 4  ;;  %v4410_v53 = vrot.slane %v8992_v33, 5  ;;  %v5596_v33 = vld [vmem:[%s7088_s4 + $0x84] sm:$0xe] }
 0x162   : > { %v8366_v43 = vsel %vm7346_vm7, %v5608_v37, %v4407_v15  ;;  %v4409_v41 = vrot.slane %v4407_v15, 4  ;;  %v5609_v18 = vrot.slane %v5593_v50, 9  ;;  %v4414_v31 = vrot.slane %v8993_v23, 5  ;;  %v5595_v50 = vld [vmem:[%s7088_s4 + $0x78] sm:$0xe]  ;;  %v8998_v23 = vld [vmem:[#allocation15_spill] sm:$0xff] }
 0x163   : > { %6065 = vmatmul.mubr.msk.bf16.gmra.mrb[24].mxu1 %vm703_vm4, %v8991_v12  ;;  %6219 = vmatmul.mubr.msk.bf16.gmra.mrb[8].mxu0 %vm703_vm4, %v5560_v32  ;;  %v8372_v28 = vsel %vm7346_vm7, %v4402_v1, %v4403_v57  ;;  %v4417_v29 = vrot.slane %v8994_v25, 5  ;;  %v5610_v63 = vrot.slane %v5594_v56, 9  ;;  %v4421_v10 = vrot.slane %v8995_v52, 5  ;;  %v8997_v1 = vld [vmem:[#allocation28_spill] sm:$0xff] }
 0x164   : > { %6068 = vmatprep.mubr.msk.bf16.mxu1 %vm703_vm4, %v5217_v14  ;;  %6222 = vmatprep.mubr.msk.bf16.mxu0 %vm703_vm4, %v5561_v61  ;;  %v5623_v60 = vcombine.low %v8359_v44, %v8372_v28  ;;  %v8380_v32 = vsel %vm7346_vm7, %v4409_v41, %v4410_v53  ;;  %v8384_v14 = vsel %vm7346_vm7, %v5609_v18, %v4414_v31  ;;  %v4416_v54 = vrot.slane %v4414_v31, 4  ;;  %v8387_v61 = vld [vmem:[%s7088_s4 + $0xc4] sm:$0xf]  ;;  %v8999_v31 = vld [vmem:[#allocation14_spill] sm:$0xff] }
 0x165   : > { %v5624_v24 = vcombine.low %v8366_v43, %v8380_v32  ;;  %v8393_v49 = vsel %vm7346_vm7, %v5610_v63, %v4421_v10  ;;  %v4423_v62 = vrot.slane %v4421_v10, 4  ;;  %v4424_v8 = vrot.slane %v8996_v21, 5  ;;  %v6653_v63 = vld [vmem:[%s7088_s4 + $0x18] sm:$0xff]  }
 0x166   : > { %v8397_v20 = vrot.slane %v3936_v16, 5  ;;  %v8399_v11 = vrot.slane %v3941_v4, 4  ;;  %v3965_v40 = vshrl.u32 %v5549_v22, 16  ;;  %v8403_v57 = vsel %vm7346_vm7, %v4416_v54, %v4417_v29  ;;  %v5326_v4 = vld [vmem:[%s7088_s4 + $0x78] sm:$0xf] }
 0x167   : > { %v8406_v37 = vrot.slane %v3923_v39, 4  ;;  %v8408_v59 = vrot.slane %v3944_v36, 5  ;;  %v5625_v15 = vcombine.low %v8384_v14, %v8403_v57  ;;  %v8414_v16 = vsel %vm7346_vm7, %v4423_v62, %v4424_v8  ;;  %v9000_v54 = vld [vmem:[#allocation29_spill] sm:$0xff]  ;;  %v6654_v8 = vld [vmem:[%s7088_s4 + $0x24] sm:$0xff]  }
 0x168   : > { %v8417_v56 = vrot.slane %v3933_v55, 4  ;;  %v8419_v46 = vrot.slane %v3950_v0, 5  ;;  %v3968_v13 = vshll.u32 %v5549_v22, 16  ;;  %v5626_v39 = vcombine.low %v8393_v49, %v8414_v16  ;;  %v5338_v57 = vld [vmem:[%s7088_s4 + $0xa8] sm:$0xf] }
 0x169   : > { %v8429_v36 = vrot.slane %v3954_v27, 4  ;;  %v3974_v12 = vshll.u32 %v8387_v61, 16  ;;  %v5611_v55 = vrot.slane %v5595_v50, 9  ;;  %v4428_v0 = vrot.slane %v8997_v1, 5  ;;  %v5552_v50 = vld [vmem:[%s7088_s4 + $0xcc] sm:$0xf] }
 0x16a   : > { %v3967_v35 = vrot.slane %v3965_v40, 4  ;;  %v2293_v27 = vshll.u32 %v5326_v4, 16  ;;  %v3978_v53 = vshrl.u32 %v8387_v61, 16  ;;  %v3970_v22 = vrot.slane %v3968_v13, 5 }
 0x16b   : > { %6069 = vmatmul.mubr.msk.bf16.gmra.mrb[28].mxu1 %vm703_vm4, %v5218_v7  ;;  %6223 = vmatmul.mubr.msk.bf16.gmra.mrb[12].mxu0 %vm703_vm4, %v8319_v17  ;;  %v4431_v7 = vrot.slane %v8201_v58, 5  ;;  %v2290_v17 = vshrl.u32 %v5326_v4, 16  ;;  %v8444_v41 = vsel %vm7346_vm7, %v5611_v55, %v4428_v0  ;;  %v4430_v18 = vrot.slane %v4428_v0, 4  ;;  %v8467_v4 = vld [vmem:[%s7088_s4 + $0xd0] sm:$0xf] }
 0x16c   : > { %6074 = vmatprep.mubr.msk.bf16.mxu1 %vm703_vm4, %v6652_v9  ;;  %6226 = vmatprep.mubr.msk.bf16.mxu0 %vm703_vm4, %v8321_v38  ;;  %v2312_v38 = vsel %vm7126_vm3, %v8999_v31, %v8998_v23  ;;  %v2295_v58 = vrot.slane %v2293_v27, 5  ;;  %v5612_v29 = vrot.slane %v5596_v33, 9  ;;  %v3960_v52 = vshll.u32 %v8438_v47, 16 }
 0x16d   : > { %v2292_v25 = vrot.slane %v2290_v17, 4  ;;  %v8454_v10 = vsel %vm7346_vm7, %v4430_v18, %v4431_v7  ;;  %v4435_v62 = vrot.slane %v9000_v54, 5  ;;  %v4438_v21 = vrot.slane %v8206_v19, 5  ;;  %v5597_v7 = vld [vmem:[%s7088_s4 + $0x90] sm:$0xe] }
 0x16e   : > { %v3929_v9 = vsel %vm7126_vm3, %v8406_v37, %v8323_v51  ;;  %v3947_v40 = vor.u32 %v8408_v59, %v8399_v11  ;;  %v5627_v13 = vcombine.low %v8444_v41, %v8454_v10  ;;  %v8471_v1 = vrot.slane %v3974_v12, 5  ;;  %v8485_v37 = vld [vmem:[%s7088_s4 + $0xc8] sm:$0x1] }
 0x16f   : > { %v2296_v55 = vor.u32 %v2295_v58, %v2292_v25  ;;  %v3980_v0 = vrot.slane %v3978_v53, 4  ;;  %v8475_v19 = vsel %vm7346_vm7, %v5612_v29, %v4435_v62  ;;  %v4437_v33 = vrot.slane %v4435_v62, 4  ;;  %v6655_v29 = vld [vmem:[%s7088_s4 + $0x30] sm:$0xff]   ;;  %v9003_v62 = vld [vmem:[#allocation31_spill] sm:$0xff] }
 0x170   : > { %v3939_v51 = vsel %vm7126_vm3, %v8417_v56, %v8397_v20  ;;  %v3957_v11 = vor.u32 %v8429_v36, %v8419_v46  ;;  %v3971_v59 = vor.u32 %v3970_v22, %v3967_v35  ;;  %v3989_v17 = vshrl.u32 %v5552_v50, 16  ;;  %v9001_v56 = vld [vmem:[#allocation12_spill] sm:$0xff]  ;;  %v9002_v35 = vld [vmem:[#allocation13_spill] sm:$0xff] }
 0x171   : > { %v2297_v12 = vrot.slane %v2296_v55, 4  ;;  %v3992_v27 = vshll.u32 %v5552_v50, 16  ;;  %v3998_v53 = vshll.u32 %v8467_v4, 16  ;;  %v8493_v20 = vsel %vm7346_vm7, %v4437_v33, %v4438_v21 }
 0x172   : > { %v4002_v36 = vshrl.u32 %v8467_v4, 16  ;;  %v5613_v23 = vrot.slane %v5597_v7, 9  ;;  %v3962_v31 = vrot.slane %v3960_v52, 5  ;;  %v3981_v22 = vor.u32 %v3980_v0, %v8471_v1  ;;  %v8515_v52 = vld [vmem:[%s7088_s4 + $0xd4] sm:$0x1] }
 0x173   : > { %6075 = vmatmul.mubr.msk.bf16.vlgmr.msra.gmra.mrb[0].mxu1 %vm703_vm4, %v6653_v63  ;;  %6227 = vmatmul.mubr.msk.bf16.gmra.mrb[16].mxu0 %vm703_vm4, %v8329_v48  ;;  %v2302_v18 = vsel %vm7126_vm3, %v2297_v12, %v9002_v35  ;;  %v5628_v48 = vcombine.low %v8475_v19, %v8493_v20  ;;  %v3984_v25 = vshll.u32 %v8485_v37, 16  ;;  %v5567_v63 = vcombine.low %v3929_v9, %v3939_v51  ;;  %v6656_v12 = vld [vmem:[%s7088_s4 + $0x3c] sm:$0xff]   ;;  %v6720_v19 = vld [vmem:[%s7088_s4 + $0xc4] sm:$0xf] }
 0x174   : > { %6277 = vmatpush3.bf16.msra.mxu1 %v9001_v56  ;;  %6078 = vmatprep.mubr.msk.bf16.mxu1 %vm703_vm4, %v6654_v8  ;;  %v8507_v58 = vcombine.low %v2302_v18, %v2312_v38  ;;  %v3948_v54 = vrot.slane %v3947_v40, 4  ;;  %v4442_v21 = vrot.slane %v9003_v62, 5  ;;  %v4445_v8 = vrot.slane %v8211_v34, 5  ;;  %v5599_v62 = vld [vmem:[%s7088_s4 + $0xa8] sm:$0xe] }
 0x175   : > { %6230 = vmatprep.mubr.msk.bf16.mxu0 %vm703_vm4, %v8331_v3  ;;  %v3958_v50 = vrot.slane %v3957_v11, 4  ;;  %v3972_v55 = vrot.slane %v3971_v59, 4  ;;  %v3991_v33 = vrot.slane %v3989_v17, 4  ;;  %v3994_v7 = vrot.slane %v3992_v27, 5  ;;  %v5598_v3 = vld [vmem:[%s7088_s4 + $0x9c] sm:$0xe] }
 0x176   : > { %v8517_v0 = vrot.slane %v3998_v53, 5  ;;  %v4004_v56 = vrot.slane %v4002_v36, 4  ;;  %v8521_v38 = vsel %vm7346_vm7, %v5613_v23, %v4442_v21  ;;  %v4444_v9 = vrot.slane %v4442_v21, 4  ;;  %v9004_v53 = vld [vmem:[#allocation32_spill] sm:$0xff]  ;;  %v5587_v23 = vld [vmem:[%s7088_s4 + $0x18] sm:$0xe] }
 0x177   : > { %v3982_v40 = vrot.slane %v3981_v22, 4  ;;  %v3986_v51 = vrot.slane %v3984_v25, 5  ;;  %v3953_v34 = vsel %vm7126_vm3, %v3948_v54, %v8419_v46  ;;  %v5614_v59 = vrot.slane %v5598_v3, 9  ;;  %v6705_v25 = vld [vmem:[%s7088_s4 + $0x1c] sm:$0xf] }
 0x178   : > { %v8528_v11 = vsel %vm7346_vm7, %v4444_v9, %v4445_v8  ;;  %v3963_v17 = vsel %vm7126_vm3, %v3958_v50, %v3962_v31  ;;  %v4008_v27 = vshll.u32 %v8515_v52, 16  ;;  %v4449_v36 = vrot.slane %v9004_v53, 5  ;;  %v6706_v9 = vld [vmem:[%s7088_s4 + $0x20] sm:$0x1] }
 0x179   : > { %v5629_v46 = vcombine.low %v8521_v38, %v8528_v11  ;;  %v3995_v35 = vor.u32 %v3994_v7, %v3991_v33  ;;  %v4005_v18 = vor.u32 %v4004_v56, %v8517_v0  ;;  %v4452_v31 = vrot.slane %v8244_v42, 5 }
 0x17a   : > { %v3987_v22 = vsel %vm7126_vm3, %v3982_v40, %v3986_v51  ;;  %v4451_v54 = vrot.slane %v4449_v36, 4  ;;  %v5568_v21 = vcombine.low %v3953_v34, %v3963_v17  ;;  %v4010_v8 = vrot.slane %v4008_v27, 5  ;;  %v5588_v17 = vld [vmem:[%s7088_s4 + $0x24] sm:$0xe] }
 0x17b   : > { %6079 = vmatmul.mubr.msk.bf16.gmra.mrb[4].mxu1 %vm703_vm4, %v6655_v29  ;;  %6231 = vmatmul.mubr.msk.bf16.gmra.mrb[20].mxu0 %vm703_vm4, %v8346_v5  ;;  %v3977_v5 = vsel %vm7126_vm3, %v3972_v55, %v8471_v1  ;;  %v4372_v29 = vrot.slane %v6705_v25, 5  ;;  %v6657_v1 = vld [vmem:[%s7088_s4 + $0x48] sm:$0xff]   ;;  %v5603_v50 = vrot.slane %v5587_v23, 9  ;;  %v6658_v55 = vld [vmem:[%s7088_s4 + $0x54] sm:$0xff]   ;;  %v3996_v7 = vrot.slane %v3995_v35, 4 }
 0x17c   : > { %6082 = vmatprep.mubr.msk.bf16.mxu1 %vm703_vm4, %v6656_v12  ;;  %6234 = vmatprep.mubr.msk.bf16.mxu0 %vm703_vm4, %v5567_v63  ;;  %v8552_v63 = vsel %vm7346_vm7, %v5614_v59, %v4449_v36  ;;  %v8558_v42 = vsel %vm7346_vm7, %v4451_v54, %v4452_v31  ;;  %v5569_v33 = vcombine.low %v3977_v5, %v3987_v22  ;;  %v4006_v3 = vrot.slane %v4005_v18, 4  ;;  %v6707_v36 = vld [vmem:[%s7088_s4 + $0x28] sm:$0xf]  ;;  %v5600_v35 = vld [vmem:[%s7088_s4 + $0xb4] sm:$0xe] }
 0x17d   : > { %v5630_v12 = vcombine.low %v8552_v63, %v8558_v42  ;;  %v4374_v56 = vrot.slane %v4372_v29, 4  ;;  %v4375_v40 = vrot.slane %v6706_v9, 5  ;;  %v5615_v51 = vrot.slane %v5599_v62, 9  ;;  %v5589_v31 = vld [vmem:[%s7088_s4 + $0x30] sm:$0xe] }
 0x17e   : > { %v4456_v34 = vrot.slane %v8252_v2, 5  ;;  %v4459_v59 = vrot.slane %v8316_v26, 5  ;;  %v4001_v2 = vsel %vm7126_vm3, %v3996_v7, %v8517_v0  ;;  %v4011_v26 = vsel %vm7126_vm3, %v4006_v3, %v4010_v8  ;;  %v6708_v22 = vld [vmem:[%s7088_s4 + $0x34] sm:$0xf]  ;;  %v9005_v8 = vld [vmem:[#allocation16_spill] sm:$0xff] }
 0x17f   : > { %v4379_v5 = vrot.slane %v6707_v36, 5  ;;  %v4373_v18 = vsel %vm7346_vm7, %v5603_v50, %v4372_v29  ;;  %v4376_v23 = vsel %vm7346_vm7, %v4374_v56, %v4375_v40  ;;  %v4386_v25 = vrot.slane %v6708_v22, 5 }
 0x180   : > { %v8571_v27 = vsel %vm7346_vm7, %v5615_v51, %v4456_v34  ;;  %v4458_v53 = vrot.slane %v4456_v34, 4  ;;  %v5604_v0 = vrot.slane %v5588_v17, 9  ;;  %v5616_v29 = vrot.slane %v5600_v35, 9  ;;  %v9006_v51 = vld [vmem:[#allocation17_spill] sm:$0xff]  ;;  %v5590_v35 = vld [vmem:[%s7088_s4 + $0x3c] sm:$0xe] }
 0x181   : > { %v4463_v50 = vrot.slane %v8326_v45, 5  ;;  %v5619_v7 = vcombine.low %v4373_v18, %v4376_v23  ;;  %v4381_v3 = vrot.slane %v4379_v5, 4  ;;  %v5605_v56 = vrot.slane %v5589_v31, 9  ;;  %v9007_v45 = vld [vmem:[#allocation18_spill] sm:$0xff] }
 0x182   : > { %v8590_v54 = vsel %vm7346_vm7, %v4458_v53, %v4459_v59  ;;  %v4466_v9 = vrot.slane %v8438_v47, 5  ;;  %v4388_v40 = vrot.slane %v4386_v25, 4  ;;  %v4389_v34 = vrot.slane %v9006_v51, 5  ;;  %v5601_v53 = vld [vmem:[%s7088_s4 + $0xc0] sm:$0xe] }
 0x183   : > { %6083 = vmatmul.mubr.msk.bf16.gmra.mrb[8].mxu1 %vm703_vm4, %v6657_v1  ;;  %6235 = vmatmul.mubr.msk.bf16.gmra.mrb[24].mxu0 %vm703_vm4, %v5568_v21  ;;  %v5631_v62 = vcombine.low %v8571_v27, %v8590_v54  ;;  %v6659_v1 = vld [vmem:[%s7088_s4 + $0x60] sm:$0xff]   ;;  %v5570_v21 = vcombine.low %v4001_v2, %v4011_v26  ;;  %v8602_v59 = vsel %vm7346_vm7, %v5616_v29, %v4463_v50  ;;  %v4465_v17 = vrot.slane %v4463_v50, 4  ;;  %v5602_v50 = vld [vmem:[%s7088_s4 + $0xcc] sm:$0xe] }
 0x184   : > { %6086 = vmatprep.mubr.msk.bf16.mxu1 %vm703_vm4, %v6658_v55  ;;  %6238 = vmatprep.mubr.msk.bf16.mxu0 %vm703_vm4, %v5569_v33  ;;  %v4382_v55 = vrot.slane %v9005_v8, 5  ;;  %v6660_v33 = vld [vmem:[%s7088_s4 + $0x6c] sm:$0xff]   ;;  %v4393_v2 = vrot.slane %v9007_v45, 5  ;;  %v4380_v26 = vsel %vm7346_vm7, %v5604_v0, %v4379_v5  ;;  %v4387_v23 = vsel %vm7346_vm7, %v5605_v56, %v4386_v25  ;;  %v6661_v5 = vld [vmem:[%s7088_s4 + $0x78] sm:$0xff]  }
 0x185   : > { %v8610_v47 = vsel %vm7346_vm7, %v4465_v17, %v4466_v9  ;;  %v4390_v31 = vsel %vm7346_vm7, %v4388_v40, %v4389_v34  ;;  %v5617_v22 = vrot.slane %v5601_v53, 9  ;;  %v4473_v8 = vrot.slane %v8485_v37, 5  ;;  %v6709_v34 = vld [vmem:[%s7088_s4 + $0x70] sm:$0xf] }
 0x186   : > { %v4383_v36 = vsel %vm7346_vm7, %v4381_v3, %v4382_v55  ;;  %v5632_v18 = vcombine.low %v8602_v59, %v8610_v47  ;;  %v5606_v55 = vrot.slane %v5590_v35, 9  ;;  %v4395_v29 = vrot.slane %v4393_v2, 4  ;;  %v9008_v3 = vld [vmem:[#allocation19_spill] sm:$0xff] }
 0x187   : > { %v5620_v0 = vcombine.low %v4380_v26, %v4383_v36  ;;  %v4396_v9 = vrot.slane %v9008_v3, 5  ;;  %v5618_v37 = vrot.slane %v5602_v50, 9  ;;  %v2275_v17 = vshll.u32 %v6709_v34, 16 }
 0x188   : > { %v2279_v53 = vshrl.u32 %v6709_v34, 16  ;;  %v4477_v26 = vrot.slane %v8467_v4, 5  ;;  %v4394_v36 = vsel %vm7346_vm7, %v5606_v55, %v4393_v2  ;;  %v6664_v55 = vld [vmem:[%s7088_s4 + $0x9c] sm:$0xff]   ;;  %v5332_v34 = vld [vmem:[%s7088_s4 + $0x90] sm:$0xf]  ;;  %v2443_v20 = vshll.u32 %v6720_v19, 16 }
 0x189   : > { %v4397_v35 = vsel %vm7346_vm7, %v4395_v29, %v4396_v9  ;;  %v5329_v29 = vld [vmem:[%s7088_s4 + $0x84] sm:$0xf]  ;;  %v2338_v28 = vshrl.u32 %v5332_v34, 16 }
 0x18a   : > { %v4479_v4 = vrot.slane %v4477_v26, 4  ;;  %v2314_v6 = vshrl.u32 %v5329_v29, 16  ;;  %v2317_v9 = vshll.u32 %v5329_v29, 16  ;;  %v2445_v38 = vrot.slane %v2443_v20, 5 }
 0x18b   : > { %6087 = vmatmul.mubr.msk.bf16.gmra.mrb[12].mxu1 %vm703_vm4, %v6659_v1  ;;  %6239 = vmatmul.mubr.msk.bf16.gmra.mrb[28].mxu0 %vm703_vm4, %v5570_v21  ;;  %v5323_v1 = vld [vmem:[%s7088_s4 + $0x6c] sm:$0xf]  ;;  %v4470_v21 = vrot.slane %v8387_v61, 5 }
 0x18c   : > { %6090 = vmatprep.mubr.msk.bf16.mxu1 %vm703_vm4, %v6660_v33  ;;  %6244 = vmatprep.mubr.msk.bf16.mxu0 %vm703_vm4, %v5619_v7  ;;  %v6662_v33 = vld [vmem:[%s7088_s4 + $0x84] sm:$0xff]   ;;  %v5621_v7 = vcombine.low %v4387_v23, %v4390_v31  ;;  %v2266_v40 = vshrl.u32 %v5323_v1, 16  ;;  %v2269_v51 = vshll.u32 %v5323_v1, 16  ;;  %v4480_v23 = vrot.slane %v8515_v52, 5 }
 0x18d   : > { %v8634_v25 = vsel %vm7346_vm7, %v5617_v22, %v4470_v21  ;;  %v4472_v56 = vrot.slane %v4470_v21, 4  ;;  %v8655_v1 = vsel %vm7346_vm7, %v5618_v37, %v4477_v26  ;;  %v6663_v21 = vld [vmem:[%s7088_s4 + $0x90] sm:$0xff]  }
 0x18e   : > { %v2268_v31 = vrot.slane %v2266_v40, 4  ;;  %v2271_v22 = vrot.slane %v2269_v51, 5  ;;  %v8660_v2 = vsel %vm7346_vm7, %v4479_v4, %v4480_v23  ;;  %v5335_v23 = vld [vmem:[%s7088_s4 + $0x9c] sm:$0xf] }
 0x18f   : > { %v8638_v61 = vsel %vm7346_vm7, %v4472_v56, %v4473_v8  ;;  %v5622_v8 = vcombine.low %v4394_v36, %v4397_v35  ;;  %v5634_v52 = vcombine.low %v8655_v1, %v8660_v2  ;;  %v6711_v56 = vld [vmem:[%s7088_s4 + $0x88] sm:$0xf]  ;;  %v2316_v36 = vrot.slane %v2314_v6, 4 }
 0x190   : > { %v5633_v45 = vcombine.low %v8634_v25, %v8638_v61  ;;  %v2272_v50 = vor.u32 %v2271_v22, %v2268_v31  ;;  %v2323_v40 = vshll.u32 %v6711_v56, 16  ;;  %v2327_v51 = vshrl.u32 %v6711_v56, 16  ;;  %v6666_v31 = vld [vmem:[%s7088_s4 + $0xb4] sm:$0xff]  }
 0x191   : > { %v2319_v35 = vrot.slane %v2317_v9, 5  ;;  %v2365_v29 = vshll.u32 %v5335_v23, 16 }
 0x192   : > { %v2273_v37 = vrot.slane %v2272_v50, 4  ;;  %v8679_v22 = vrot.slane %v2323_v40, 5  ;;  %v2329_v44 = vrot.slane %v2327_v51, 4 }
 0x193   : > { %6091 = vmatmul.mubr.msk.bf16.gmra.mrb[16].mxu1 %vm703_vm4, %v6661_v5  ;;  %6245 = vmatmul.mubr.msk.bf16.vlgmr.msra.gmra.mrb[0].mxu0 %vm703_vm4, %v5620_v0  ;;  %v2277_v5 = vrot.slane %v2275_v17, 5  ;;  %v2281_v0 = vrot.slane %v2279_v53, 4  ;;  %v6665_v17 = vld [vmem:[%s7088_s4 + $0xa8] sm:$0xff]   ;;  %v2320_v43 = vor.u32 %v2319_v35, %v2316_v36 }
 0x194   : > { %6094 = vmatprep.mubr.msk.bf16.mxu1 %vm703_vm4, %v6662_v33  ;;  %6248 = vmatprep.mubr.msk.bf16.mxu0 %vm703_vm4, %v5621_v7  ;;  %v6710_v7 = vld [vmem:[%s7088_s4 + $0x74] sm:$0x1]  ;;  %v2330_v32 = vor.u32 %v2329_v44, %v8679_v22 }
 0x195   : > { %v2282_v33 = vor.u32 %v2281_v0, %v2277_v5  ;;  %v2285_v3 = vshll.u32 %v6710_v7, 16  ;;  %v2278_v4 = vsel %vm7126_vm3, %v2273_v37, %v2277_v5  ;;  %v2367_v37 = vrot.slane %v2365_v29, 5  ;;  %v6717_v29 = vld [vmem:[%s7088_s4 + $0xac] sm:$0xf] }
 0x196   : > { %v2331_v36 = vrot.slane %v2330_v32, 4 }
 0x197   : > { %v2283_v53 = vrot.slane %v2282_v33, 4  ;;  %v2287_v26 = vrot.slane %v2285_v3, 5  ;;  %v6713_v33 = vld [vmem:[%s7088_s4 + $0x8c] sm:$0x1]  ;;  %v6714_v3 = vld [vmem:[%s7088_s4 + $0xa0] sm:$0xf] }
 0x198   : > { %v2333_v7 = vshll.u32 %v6713_v33, 16  ;;  %v2371_v5 = vshll.u32 %v6714_v3, 16  ;;  %v2375_v6 = vshrl.u32 %v6714_v3, 16  ;;  %v2399_v33 = vshrl.u32 %v6717_v29, 16 }
 0x199   : > { %v2288_v50 = vsel %vm7126_vm3, %v2283_v53, %v2287_v26 }
 0x19a   : > { %v2335_v53 = vrot.slane %v2333_v7, 5  ;;  %v8702_v26 = vrot.slane %v2371_v5, 5  ;;  %v2377_v14 = vrot.slane %v2375_v6, 4  ;;  %v6718_v6 = vld [vmem:[%s7088_s4 + $0xb8] sm:$0xf] }
 0x19b   : > { %6095 = vmatmul.mubr.msk.bf16.gmra.mrb[20].mxu1 %vm703_vm4, %v6663_v21  ;;  %6249 = vmatmul.mubr.msk.bf16.gmra.mrb[4].mxu0 %vm703_vm4, %v5622_v8  ;;  %v6712_v21 = vld [vmem:[%s7088_s4 + $0x94] sm:$0xf]  ;;  %v2423_v32 = vshrl.u32 %v6718_v6, 16 }
 0x19c   : > { %6098 = vmatprep.mubr.msk.bf16.mxu1 %vm703_vm4, %v6664_v55  ;;  %6252 = vmatprep.mubr.msk.bf16.mxu0 %vm703_vm4, %v5623_v60  ;;  %v2341_v60 = vshll.u32 %v5332_v34, 16  ;;  %v2347_v8 = vshll.u32 %v6712_v21, 16  ;;  %v2351_v0 = vshrl.u32 %v6712_v21, 16  ;;  %v2362_v55 = vshrl.u32 %v5335_v23, 16  ;;  %v6667_v34 = vld [vmem:[%s7088_s4 + $0xc0] sm:$0xff]  }
 0x19d   : > { %v6715_v23 = vld [vmem:[%s7088_s4 + $0x98] sm:$0x1]  ;;  %v2336_v49 = vsel %vm7126_vm3, %v2331_v36, %v2335_v53 }
 0x19e   : > { %v2343_v9 = vrot.slane %v2341_v60, 5  ;;  %v8699_v56 = vrot.slane %v2347_v8, 5  ;;  %v2353_v40 = vrot.slane %v2351_v0, 4  ;;  %v2364_v51 = vrot.slane %v2362_v55, 4  ;;  %v6716_v60 = vld [vmem:[%s7088_s4 + $0xa4] sm:$0x1] }
 0x19f   : > { %v2381_v21 = vshll.u32 %v6716_v60, 16  ;;  %v2386_v8 = vshrl.u32 %v5338_v57, 16  ;;  %v5341_v0 = vld [vmem:[%s7088_s4 + $0xb4] sm:$0xf]  ;;  %v2389_v55 = vshll.u32 %v5338_v57, 16  ;;  %v2447_v60 = vshrl.u32 %v6720_v19, 16 }
 0x1a0   : > { %v2354_v44 = vor.u32 %v2353_v40, %v8699_v56  ;;  %v2410_v3 = vshrl.u32 %v5341_v0, 16  ;;  %v2413_v5 = vshll.u32 %v5341_v0, 16  ;;  %v5344_v57 = vld [vmem:[%s7088_s4 + $0xc0] sm:$0xf] }
 0x1a1   : > { %v2383_v41 = vrot.slane %v2381_v21, 5  ;;  %v2388_v10 = vrot.slane %v2386_v8, 4  ;;  %v2391_v40 = vrot.slane %v2389_v55, 5  ;;  %v6721_v8 = vld [vmem:[%s7088_s4 + $0xbc] sm:$0x1]  ;;  %v2449_v11 = vrot.slane %v2447_v60, 4 }
 0x1a2   : > { %v2429_v0 = vshll.u32 %v6721_v8, 16 }
 0x1a3   : > { %6099 = vmatmul.mubr.msk.bf16.gmra.mrb[24].mxu1 %vm703_vm4, %v6665_v17  ;;  %6253 = vmatmul.mubr.msk.bf16.gmra.mrb[8].mxu0 %vm703_vm4, %v5624_v24  ;;  %v2340_v24 = vrot.slane %v2338_v28, 4  ;;  %v5355_v17 = vcombine.low %v2278_v4, %v2288_v50  ;;  %v2368_v28 = vor.u32 %v2367_v37, %v2364_v51  ;;  %v2378_v4 = vor.u32 %v2377_v14, %v8702_v26 }
 0x1a4   : > { %6102 = vmatprep.mubr.msk.bf16.mxu1 %vm703_vm4, %v6666_v31  ;;  %6256 = vmatprep.mubr.msk.bf16.mxu0 %vm703_vm4, %v5625_v15  ;;  %v2321_v15 = vrot.slane %v2320_v43, 4  ;;  %v2357_v31 = vshll.u32 %v6715_v23, 16  ;;  %v2395_v50 = vshll.u32 %v6717_v29, 16  ;;  %v2419_v43 = vshll.u32 %v6718_v6, 16 }
 0x1a5   : > { %v2344_v35 = vor.u32 %v2343_v9, %v2340_v24  ;;  %v2355_v24 = vrot.slane %v2354_v44, 4  ;;  %v2369_v9 = vrot.slane %v2368_v28, 4  ;;  %v2425_v14 = vrot.slane %v2423_v32, 4  ;;  %v6719_v44 = vld [vmem:[%s7088_s4 + $0xb0] sm:$0x1] }
 0x1a6   : > { %v2326_v7 = vsel %vm7126_vm3, %v2321_v15, %v8679_v22  ;;  %v2397_v51 = vrot.slane %v2395_v50, 5  ;;  %v2401_v22 = vrot.slane %v2399_v33, 4  ;;  %v2421_v53 = vrot.slane %v2419_v43, 5  ;;  %v6722_v32 = vld [vmem:[%s7088_s4 + $0xc8] sm:$0x1] }
 0x1a7   : > { %v2345_v16 = vrot.slane %v2344_v35, 4  ;;  %v5357_v37 = vcombine.low %v2326_v7, %v2336_v49  ;;  %v2374_v35 = vsel %vm7126_vm3, %v2369_v9, %v8702_v26  ;;  %v2405_v28 = vshll.u32 %v6719_v44, 16 }
 0x1a8   : > { %v2437_v26 = vshll.u32 %v5344_v57, 16  ;;  %v2426_v21 = vor.u32 %v2425_v14, %v2421_v53  ;;  %v2450_v43 = vor.u32 %v2449_v11, %v2445_v38  ;;  %v8798_v14 = vld [vmem:[#allocation7] ss:$0 sm:$0xff] }
 0x1a9   : > { %v2350_v15 = vsel %vm7126_vm3, %v2345_v16, %v8699_v56  ;;  %v2392_v56 = vor.u32 %v2391_v40, %v2388_v10  ;;  %v2407_v33 = vrot.slane %v2405_v28, 5 }
 0x1aa   : > { %v2439_v49 = vrot.slane %v2437_v26, 5  ;;  %v2427_v16 = vrot.slane %v2426_v21, 4  ;;  %v2451_v10 = vrot.slane %v2450_v43, 4 }
 0x1ab   : > { %6103 = vmatmul.mubr.msk.bf16.gmra.mrb[28].mxu1 %vm703_vm4, %v6667_v34  ;;  %6257 = vmatmul.mubr.msk.bf16.gmra.mrb[12].mxu0 %vm703_vm4, %v5626_v39  ;;  %v2359_v39 = vrot.slane %v2357_v31, 5  ;;  %v2412_v34 = vrot.slane %v2410_v3, 4  ;;  %v2402_v31 = vor.u32 %v2401_v22, %v2397_v51  ;;  %v2393_v29 = vrot.slane %v2392_v56, 4 }
 0x1ac   : > { %6124 = vmatprep.mubr.msk.bf16.mxu1 %vm703_vm4, %v5355_v17  ;;  %6260 = vmatprep.mubr.msk.bf16.mxu0 %vm703_vm4, %v5627_v13  ;;  %v2379_v13 = vrot.slane %v2378_v4, 4  ;;  %v2415_v17 = vrot.slane %v2413_v5, 5 }
 0x1ad   : > { %v2360_v36 = vsel %vm7126_vm3, %v2355_v24, %v2359_v39  ;;  %v2403_v50 = vrot.slane %v2402_v31, 4  ;;  %v2431_v39 = vrot.slane %v2429_v0, 5  ;;  %v2398_v3 = vsel %vm7126_vm3, %v2393_v29, %v2397_v51 }
 0x1ae   : > { %v2384_v23 = vsel %vm7126_vm3, %v2379_v13, %v2383_v41  ;;  %v5358_v4 = vcombine.low %v2350_v15, %v2360_v36  ;;  %v2453_v24 = vshll.u32 %v6722_v32, 16 }
 0x1af   : > { %v5359_v55 = vcombine.low %v2374_v35, %v2384_v23  ;;  %v2408_v5 = vsel %vm7126_vm3, %v2403_v50, %v2407_v33  ;;  %v2432_v42 = vsel %vm7126_vm3, %v2427_v16, %v2431_v39 }
 0x1b0   : > { %v2455_v27 = vrot.slane %v2453_v24, 5 }
 0x1b3   : > { %6125 = vmatmul.mubr.msk.bf16.vlgmr.msra.gmra.mrb[16].mxu1 %vm703_vm4, %v8507_v58  ;;  %6261 = vmatmul.mubr.msk.bf16.gmra.mrb[16].mxu0 %vm703_vm4, %v5628_v48  ;;  %v2434_v58 = vshrl.u32 %v5344_v57, 16  ;;  %v2416_v48 = vor.u32 %v2415_v17, %v2412_v34 }
 0x1b4   : > { %6128 = vmatprep.mubr.msk.bf16.mxu1 %vm703_vm4, %v5357_v37  ;;  %6264 = vmatprep.mubr.msk.bf16.mxu0 %vm703_vm4, %v5629_v46 }
 0x1b5   : > { %v2436_v7 = vrot.slane %v2434_v58, 4  ;;  %v2417_v46 = vrot.slane %v2416_v48, 4 }
 0x1b7   : > { %v2440_v6 = vor.u32 %v2439_v49, %v2436_v7  ;;  %v2422_v63 = vsel %vm7126_vm3, %v2417_v46, %v2421_v53 }
 0x1b8   : > { %v5361_v9 = vcombine.low %v2422_v63, %v2432_v42 }
 0x1b9   : > { %v2441_v41 = vrot.slane %v2440_v6, 4 }
 0x1bb   : > { %6129 = vmatmul.mubr.msk.bf16.gmra.mrb[20].mxu1 %vm703_vm4, %v5358_v4  ;;  %6265 = vmatmul.mubr.msk.bf16.gmra.mrb[20].mxu0 %vm703_vm4, %v5630_v12  ;;  %v5360_v12 = vcombine.low %v2398_v3, %v2408_v5  ;;  %v2446_v54 = vsel %vm7126_vm3, %v2441_v41, %v2445_v38 }
 0x1bc   : > { %6132 = vmatprep.mubr.msk.bf16.mxu1 %vm703_vm4, %v5359_v55  ;;  %6268 = vmatprep.mubr.msk.bf16.mxu0 %vm703_vm4, %v5631_v62  ;;  %v2456_v62 = vsel %vm7126_vm3, %v2451_v10, %v2455_v27 }
 0x1bd   : > { %v5362_v13 = vcombine.low %v2446_v54, %v2456_v62 }
 0x1c3   : > { %6133 = vmatmul.mubr.msk.bf16.gmra.mrb[24].mxu1 %vm703_vm4, %v5360_v12  ;;  %6269 = vmatmul.mubr.msk.bf16.gmra.mrb[24].mxu0 %vm703_vm4, %v5632_v18 }
 0x1c4   : > { %6136 = vmatprep.mubr.msk.bf16.mxu1 %vm703_vm4, %v5361_v9  ;;  %6272 = vmatprep.mubr.msk.bf16.mxu0 %vm703_vm4, %v5633_v45 }
 0x1cb   : > { %6137 = vmatmul.mubr.msk.bf16.gmra.mrb[28].mxu1 %vm703_vm4, %v5362_v13  ;;  %6273 = vmatmul.mubr.msk.bf16.gmra.mrb[28].mxu0 %vm703_vm4, %v5634_v52 }
 0x246   : > { %v6076_v59 = vpop.f32.mrb[0].mxu1 }
 0x247   : > { %v1866_v47 = vpop.f32.mrb[1].mxu1 }
 0x248   : > { %v6077_v18 = vpop.f32.mrb[2].mxu1 }
 0x249   : > { %v1869_v25 = vpop.f32.mrb[3].mxu1 }
 0x24e   : > { %v6080_v61 = vpop.f32.mrb[4].mxu1 }
 0x24f   : > { %v1882_v45 = vpop.f32.mrb[5].mxu1 }
 0x250   : > { %v6081_v40 = vpop.f32.mrb[6].mxu1 }
 0x251   : > { %v1885_v51 = vpop.f32.mrb[7].mxu1 }
 0x256   : > { %v6084_v22 = vpop.f32.mrb[8].mxu1 }
 0x257   : > { %v1898_v37 = vpop.f32.mrb[9].mxu1 }
 0x258   : > { %v6085_v30 = vpop.f32.mrb[10].mxu1 }
 0x259   : > { %v1901_v34 = vpop.f32.mrb[11].mxu1 }
 0x25e   : > { %v8790_v17 = vpop.f32.mrb[12].mxu1 }
 0x25f   : > { %v8792_v53 = vpop.f32.mrb[13].mxu1 }
 0x260   : > { %v8794_v1 = vpop.f32.mrb[14].mxu1 }
 0x261   : > { %v8796_v2 = vpop.f32.mrb[15].mxu1 }
 0x266   : > { %v6246_v52 = vpop.f32.mrb[0].mxu0 }
 0x267   : > { %v6278_v57 = vadd.f32 %v6246_v52, %v6076_v59  ;;  %v4617_v15 = vpop.f32.mrb[1].mxu0 }
 0x268   : > { %v6279_v36 = vadd.f32 %v4617_v15, %v1866_v47  ;;  %v6247_v35 = vpop.f32.mrb[2].mxu0 }
 0x269   : > { %v4785_v23 = vadd.f32 %v6278_v57, %v8798_v14  ;;  %v6280_v56 = vadd.f32 %v6247_v35, %v6077_v18  ;;  %v4620_v31 = vpop.f32.mrb[3].mxu0 }
 0x26a   : > { %v4783_v44 = vadd.f32 %v6279_v36, %v8798_v14  ;;  %v6281_v28 = vadd.f32 %v4620_v31, %v1869_v25 }
 0x26b   : > { %v4786_v58 = vadd.f32 %v6280_v56, %v8798_v14  ;;  %v4817_v19 = vmax.f32 %v4785_v23, 0.0 }
 0x26c   : > { %v4784_v26 = vadd.f32 %v6281_v28, %v8798_v14  ;;  %v4815_v60 = vmax.f32 %v4783_v44, 0.0 }
 0x26d   : > { %v4818_v20 = vmax.f32 %v4786_v58, 0.0 }
 0x26e   : > { %v4816_v48 = vmax.f32 %v4784_v26, 0.0  ;;  %v6250_v21 = vpop.f32.mrb[4].mxu0 }
 0x26f   : > { %v5730_v8 = vpack.c.bf16 %v4818_v20, %v4817_v19  ;;  %v6282_v0 = vadd.f32 %v6250_v21, %v6080_v61  ;;  %v4633_v4 = vpop.f32.mrb[5].mxu0 }
 0x270   : > { %v5725_v55 = vpack.c.bf16 %v4816_v48, %v4815_v60  ;;  %v6283_v29 = vadd.f32 %v4633_v4, %v1882_v45  ;;  %v6251_v50 = vpop.f32.mrb[6].mxu0 }
 0x271   : > { %5802 = vst [vmem:[%s8805_s20 + $0x8] sm:$0xff] %v5730_v8   ;;  %v4789_v33 = vadd.f32 %v6282_v0, %v8798_v14  ;;  %v6284_v7 = vadd.f32 %v6251_v50, %v6081_v40  ;;  %v4636_v49 = vpop.f32.mrb[7].mxu0 }
 0x272   : > { %5726 = vst [vmem:[%s8805_s20] sm:$0xff] %v5725_v55   ;;  %v4787_v38 = vadd.f32 %v6283_v29, %v8798_v14  ;;  %v6285_v11 = vadd.f32 %v4636_v49, %v1885_v51 }
 0x273   : > { %v4790_v46 = vadd.f32 %v6284_v7, %v8798_v14  ;;  %v4821_v39 = vmax.f32 %v4789_v33, 0.0 }
 0x274   : > { %v4788_v16 = vadd.f32 %v6285_v11, %v8798_v14  ;;  %v4819_v5 = vmax.f32 %v4787_v38, 0.0 }
 0x275   : > { %v4822_v3 = vmax.f32 %v4790_v46, 0.0 }
 0x276   : > { %v4820_v6 = vmax.f32 %v4788_v16, 0.0  ;;  %v6254_v43 = vpop.f32.mrb[8].mxu0 }
 0x277   : > { %v5740_v32 = vpack.c.bf16 %v4822_v3, %v4821_v39  ;;  %v6286_v24 = vadd.f32 %v6254_v43, %v6084_v22  ;;  %v4649_v63 = vpop.f32.mrb[9].mxu0 }
 0x278   : > { %v5735_v42 = vpack.c.bf16 %v4820_v6, %v4819_v5  ;;  %v6287_v12 = vadd.f32 %v4649_v63, %v1898_v37  ;;  %v6255_v9 = vpop.f32.mrb[10].mxu0 }
 0x279   : > { %5804 = vst [vmem:[%s8805_s20 + $0x18] sm:$0xff] %v5740_v32   ;;  %v4793_v41 = vadd.f32 %v6286_v24, %v8798_v14  ;;  %v6288_v10 = vadd.f32 %v6255_v9, %v6085_v30  ;;  %v4652_v27 = vpop.f32.mrb[11].mxu0 }
 0x27a   : > { %5803 = vst [vmem:[%s8805_s20 + $0x10] sm:$0xff] %v5735_v42   ;;  %v4791_v54 = vadd.f32 %v6287_v12, %v8798_v14  ;;  %v6289_v62 = vadd.f32 %v4652_v27, %v1901_v34 }
 0x27b   : > { %v4794_v13 = vadd.f32 %v6288_v10, %v8798_v14  ;;  %v4825_v47 = vmax.f32 %v4793_v41, 0.0 }
 0x27c   : > { %v4792_v59 = vadd.f32 %v6289_v62, %v8798_v14  ;;  %v4823_v25 = vmax.f32 %v4791_v54, 0.0 }
 0x27d   : > { %v4826_v18 = vmax.f32 %v4794_v13, 0.0 }
 0x27e   : > { %v4824_v61 = vmax.f32 %v4792_v59, 0.0  ;;  %v6258_v45 = vpop.f32.mrb[12].mxu0 }
 0x27f   : > { %v5750_v40 = vpack.c.bf16 %v4826_v18, %v4825_v47  ;;  %v6290_v51 = vadd.f32 %v6258_v45, %v8790_v17  ;;  %v4665_v22 = vpop.f32.mrb[13].mxu0 }
 0x280   : > { %v5745_v37 = vpack.c.bf16 %v4824_v61, %v4823_v25  ;;  %v6291_v30 = vadd.f32 %v4665_v22, %v8792_v53  ;;  %v6259_v52 = vpop.f32.mrb[14].mxu0 }
 0x281   : > { %5806 = vst [vmem:[%s8805_s20 + $0x28] sm:$0xff] %v5750_v40   ;;  %v4797_v34 = vadd.f32 %v6290_v51, %v8798_v14  ;;  %v6292_v57 = vadd.f32 %v6259_v52, %v8794_v1  ;;  %v4668_v15 = vpop.f32.mrb[15].mxu0 }
 0x282   : > { %5805 = vst [vmem:[%s8805_s20 + $0x20] sm:$0xff] %v5745_v37   ;;  %v4795_v36 = vadd.f32 %v6291_v30, %v8798_v14  ;;  %v6293_v35 = vadd.f32 %v4668_v15, %v8796_v2 }
 0x283   : > { %v4798_v23 = vadd.f32 %v6292_v57, %v8798_v14  ;;  %v4829_v56 = vmax.f32 %v4797_v34, 0.0 }
 0x284   : > { %v4796_v17 = vadd.f32 %v6293_v35, %v8798_v14  ;;  %v4827_v53 = vmax.f32 %v4795_v36, 0.0 }
 0x285   : > { %v4830_v31 = vmax.f32 %v4798_v23, 0.0 }
 0x286   : > { %v4828_v44 = vmax.f32 %v4796_v17, 0.0  ;;  %v6126_v28 = vpop.f32.mrb[16].mxu1  ;;  %v6262_v58 = vpop.f32.mrb[16].mxu0 }
 0x287   : > { %v5760_v26 = vpack.c.bf16 %v4830_v31, %v4829_v56  ;;  %v6294_v1 = vadd.f32 %v6262_v58, %v6126_v28  ;;  %v2656_v19 = vpop.f32.mrb[17].mxu1  ;;  %v4681_v20 = vpop.f32.mrb[17].mxu0 }
 0x288   : > { %v5755_v60 = vpack.c.bf16 %v4828_v44, %v4827_v53  ;;  %v6295_v48 = vadd.f32 %v4681_v20, %v2656_v19  ;;  %v6127_v21 = vpop.f32.mrb[18].mxu1  ;;  %v6263_v2 = vpop.f32.mrb[18].mxu0 }
 0x289   : > { %5808 = vst [vmem:[%s8805_s20 + $0x38] sm:$0xff] %v5760_v26   ;;  %v4801_v8 = vadd.f32 %v6294_v1, %v8798_v14  ;;  %v6296_v0 = vadd.f32 %v6263_v2, %v6127_v21  ;;  %v2659_v4 = vpop.f32.mrb[19].mxu1  ;;  %v4684_v55 = vpop.f32.mrb[19].mxu0 }
 0x28a   : > { %5807 = vst [vmem:[%s8805_s20 + $0x30] sm:$0xff] %v5755_v60   ;;  %v4799_v29 = vadd.f32 %v6295_v48, %v8798_v14  ;;  %v6297_v50 = vadd.f32 %v4684_v55, %v2659_v4 }
 0x28b   : > { %v4802_v33 = vadd.f32 %v6296_v0, %v8798_v14  ;;  %v4833_v49 = vmax.f32 %v4801_v8, 0.0 }
 0x28c   : > { %v4800_v7 = vadd.f32 %v6297_v50, %v8798_v14  ;;  %v4831_v11 = vmax.f32 %v4799_v29, 0.0 }
 0x28d   : > { %v4834_v38 = vmax.f32 %v4802_v33, 0.0 }
 0x28e   : > { %v4832_v46 = vmax.f32 %v4800_v7, 0.0  ;;  %v6130_v16 = vpop.f32.mrb[20].mxu1  ;;  %v6266_v39 = vpop.f32.mrb[20].mxu0 }
 0x28f   : > { %v5770_v3 = vpack.c.bf16 %v4834_v38, %v4833_v49  ;;  %v6298_v5 = vadd.f32 %v6266_v39, %v6130_v16  ;;  %v2672_v6 = vpop.f32.mrb[21].mxu1  ;;  %v4697_v43 = vpop.f32.mrb[21].mxu0 }
 0x290   : > { %v5765_v32 = vpack.c.bf16 %v4832_v46, %v4831_v11  ;;  %v6299_v24 = vadd.f32 %v4697_v43, %v2672_v6  ;;  %v6131_v63 = vpop.f32.mrb[22].mxu1  ;;  %v6267_v42 = vpop.f32.mrb[22].mxu0 }
 0x291   : > { %5810 = vst [vmem:[%s8805_s20 + $0x48] sm:$0xff] %v5770_v3   ;;  %v4805_v12 = vadd.f32 %v6298_v5, %v8798_v14  ;;  %v6300_v9 = vadd.f32 %v6267_v42, %v6131_v63  ;;  %v2675_v41 = vpop.f32.mrb[23].mxu1  ;;  %v4700_v10 = vpop.f32.mrb[23].mxu0 }
 0x292   : > { %5809 = vst [vmem:[%s8805_s20 + $0x40] sm:$0xff] %v5765_v32   ;;  %v4803_v27 = vadd.f32 %v6299_v24, %v8798_v14  ;;  %v6301_v54 = vadd.f32 %v4700_v10, %v2675_v41 }
 0x293   : > { %v4806_v62 = vadd.f32 %v6300_v9, %v8798_v14  ;;  %v4837_v59 = vmax.f32 %v4805_v12, 0.0 }
 0x294   : > { %v4804_v13 = vadd.f32 %v6301_v54, %v8798_v14  ;;  %v4835_v18 = vmax.f32 %v4803_v27, 0.0 }
 0x295   : > { %v4838_v47 = vmax.f32 %v4806_v62, 0.0 }
 0x296   : > { %v4836_v25 = vmax.f32 %v4804_v13, 0.0  ;;  %v6134_v61 = vpop.f32.mrb[24].mxu1  ;;  %v6270_v45 = vpop.f32.mrb[24].mxu0 }
 0x297   : > { %v5780_v40 = vpack.c.bf16 %v4838_v47, %v4837_v59  ;;  %v6302_v51 = vadd.f32 %v6270_v45, %v6134_v61  ;;  %v2688_v22 = vpop.f32.mrb[25].mxu1  ;;  %v4713_v37 = vpop.f32.mrb[25].mxu0 }
 0x298   : > { %v5775_v30 = vpack.c.bf16 %v4836_v25, %v4835_v18  ;;  %v6303_v52 = vadd.f32 %v4713_v37, %v2688_v22  ;;  %v6135_v34 = vpop.f32.mrb[26].mxu1  ;;  %v6271_v57 = vpop.f32.mrb[26].mxu0 }
 0x299   : > { %5812 = vst [vmem:[%s8805_s20 + $0x58] sm:$0xff] %v5780_v40   ;;  %v4809_v15 = vadd.f32 %v6302_v51, %v8798_v14  ;;  %v6304_v36 = vadd.f32 %v6271_v57, %v6135_v34  ;;  %v2691_v35 = vpop.f32.mrb[27].mxu1  ;;  %v4716_v23 = vpop.f32.mrb[27].mxu0 }
 0x29a   : > { %5811 = vst [vmem:[%s8805_s20 + $0x50] sm:$0xff] %v5775_v30   ;;  %v4807_v17 = vadd.f32 %v6303_v52, %v8798_v14  ;;  %v6305_v56 = vadd.f32 %v4716_v23, %v2691_v35 }
 0x29b   : > { %v4810_v31 = vadd.f32 %v6304_v36, %v8798_v14  ;;  %v4841_v44 = vmax.f32 %v4809_v15, 0.0 }
 0x29c   : > { %v4808_v53 = vadd.f32 %v6305_v56, %v8798_v14  ;;  %v4839_v58 = vmax.f32 %v4807_v17, 0.0 }
 0x29d   : > { %v4842_v28 = vmax.f32 %v4810_v31, 0.0 }
 0x29e   : > { %v4840_v26 = vmax.f32 %v4808_v53, 0.0  ;;  %v6138_v1 = vpop.f32.mrb[28].mxu1  ;;  %v6274_v19 = vpop.f32.mrb[28].mxu0 }
 0x29f   : > { %v5790_v20 = vpack.c.bf16 %v4842_v28, %v4841_v44  ;;  %v6306_v60 = vadd.f32 %v6274_v19, %v6138_v1  ;;  %v2704_v48 = vpop.f32.mrb[29].mxu1  ;;  %v4729_v21 = vpop.f32.mrb[29].mxu0 }
 0x2a0   : > { %v5785_v2 = vpack.c.bf16 %v4840_v26, %v4839_v58  ;;  %v6307_v8 = vadd.f32 %v4729_v21, %v2704_v48  ;;  %v6139_v0 = vpop.f32.mrb[30].mxu1  ;;  %v6275_v4 = vpop.f32.mrb[30].mxu0 }
 0x2a1   : > { %5814 = vst [vmem:[%s8805_s20 + $0x68] sm:$0xff] %v5790_v20   ;;  %v4813_v55 = vadd.f32 %v6306_v60, %v8798_v14  ;;  %v6308_v29 = vadd.f32 %v6275_v4, %v6139_v0  ;;  %v2707_v50 = vpop.f32.mrb[31].mxu1  ;;  %v4732_v33 = vpop.f32.mrb[31].mxu0 }
 0x2a2   : > { %5813 = vst [vmem:[%s8805_s20 + $0x60] sm:$0xff] %v5785_v2   ;;  %v4811_v7 = vadd.f32 %v6307_v8, %v8798_v14  ;;  %v6309_v49 = vadd.f32 %v4732_v33, %v2707_v50 }
 0x2a3   : > { %v4814_v38 = vadd.f32 %v6308_v29, %v8798_v14  ;;  %v4845_v46 = vmax.f32 %v4813_v55, 0.0 }
 0x2a4   : > { %v4812_v11 = vadd.f32 %v6309_v49, %v8798_v14  ;;  %v4843_v39 = vmax.f32 %v4811_v7, 0.0 }
 0x2a5   : > { %v4846_v16 = vmax.f32 %v4814_v38, 0.0 }
 0x2a6   : > { %v4844_v3 = vmax.f32 %v4812_v11, 0.0 }
 0x2a7   : > { %v5800_v5 = vpack.c.bf16 %v4846_v16, %v4845_v46 }
 0x2a8   : > { %v5795_v6 = vpack.c.bf16 %v4844_v3, %v4843_v39 }
 0x2a9   : > { %5816 = vst [vmem:[%s8805_s20 + $0x78] sm:$0xff] %v5800_v5  }
 0x2aa   : > { %5815 = vst [vmem:[%s8805_s20 + $0x70] sm:$0xff] %v5795_v6  }
 0x2ab   : > { %6822 = shalt.err (!%p6819_p2)
}
 0x2ac   : > { %s6823_s17 = scalar_lea.hbm %s8858_s23, 2048  ;;  %s6827_s29 = scalar_lea.hbm %s8909_s3, 4096 }
 0x2ad   : > { %p6824_p13 = scmp.ne.s32.totalorder %s8858_s23, %s6823_s17  ;;  %p6828_p4 = scmp.lt.u32.totalorder %s8858_s23, %s8909_s3 }
 0x2ae   : > { %p6829_p5 = scmp.lt.u32.totalorder %s6827_s29, %s6823_s17  ;;  %p6831_p11 = scmp.lt.u32.totalorder %s6823_s17, %s8858_s23 }
 0x2af   : > { %p6825_p6 = pnand %p6824_p13, %p9009_p0 }
 0x2b0   : > { %p6830_p8 = por %p6829_p5, %p6828_p4 }
 0x2b1   : > { %p6826_p10 = pneg %p6825_p6 }
 0x2b2   : > { %p6832_p1 = por %p6831_p11, %p6830_p8 }
 0x2b4   : > { %p6833_p3 = pnand %p6832_p1, %p6826_p10 }
 0x2b6   : > { %6836 = shalt.err (!%p6833_p3)
}
 0x2b7   : > { %s6889_s18 = smov 64   ;;  %s6890_s20 = smov 4  }
 0x2b8   : > { %6557 = dma.vmem_to_hbm [thread:$0]  (%p9009_p0), %s8860_s24, 2048, %s8858_s23, %s5008_s16, %s6889_s18, %s6889_s18, %s6890_s20  }
 0x2b9 PF: > { %s5036_s11 = sand.u32 1, %s6867_s12   ;;  %p9010_p7 = scmp.ne.s32.totalorder %s8933_s19, 0 }
 0x2ba   : > { %p9011_p9 = scmp.ge.s32.totalorder %s6879_s15, 2  ;;  %s5037_s27 = scalar_lea.sflag [#allocation4], %s5036_s11 }
 0x2bc   : > { %p6571_p12 = pnand %p9011_p9, %p9010_p7 }
 0x2be   : > { %6862 = dma.done.wait (!%p6571_p12), %s5037_s27, 2048  }
 0x2bf   : > { %6864 = vsyncadd (!%p6571_p12), %s5037_s27, 4294965248  ;;  %p17_p2 = scmp.ge.s32.totalorder %s7022_s5, 4   ;;  %s9012_s12 = smov %s6871_s13 }
 0x2c0   : > { %s9013_s13 = smov %s6875_s14  ;;  %s9014_s14 = smov %s7038_s8 }
 0x2c1   : > { %s9015_s15 = smov %s7022_s5  ;;  %19 = sbr.rel (!%p17_p2) target bundleno = 6 (0x6), region = 95 }
 0x2c8   :  { %5042 = vsyncpa [#allocation3], 1 }
 0x2c9   :  { %5044 = vsyncpa [#allocation3 + $0x1], 1 }
 0x2ca   :  { %5045 = vsyncpa [#allocation6], 1 }
 0x2cb   :  { %5046 = vsyncpa [#allocation4], 1 }
 0x2cc   :  { %5048 = vsyncpa [#allocation4 + $0x1], 1 }

</bundles_post_ra>
